<compile_context>
chip_gen: v5e
topology: v5e:2x2
jax: 0.10.0
libtpu: 0.0.40
codegen_flags: <defaults>
</compile_context>

<pallas_src>
import functools

import jax
import jax.numpy as jnp
import numpy as np
from jax.experimental import pallas as pl
from jax.experimental.pallas import tpu as pltpu

LANE = 128        # TPU lane width: keep channel (last) dims lane-dense.
TAP_GROUP = 3     # 3x3-conv taps per matmul -> K = 3*cpm (fills v6e/v7x MXU).


def _round_up(c, m=LANE):
    return ((c + m - 1) // m) * m


def _vmem_limit_bytes():
    """~75% of this generation's VMEM (48 MiB on v7x, 96 MiB on v5e/v6e)."""
    cap = 128 * 1024 * 1024
    try:
        cap = int(pltpu.get_tpu_info().vmem_capacity_bytes)
    except Exception:
        pass
    return min((cap * 3) // 4, 100 * 1024 * 1024)


# ---------------------------------------------------------------------------
# Fused kernel: one grid step == one batch element, everything stays in VMEM.
# ---------------------------------------------------------------------------
def _bottleneck_kernel(x_ref, w1_ref, w2_ref, w3_ref, b1_ref, b2_ref, b3_ref,
                       *rest, stride, hout, wout, has_ds):
    if has_ds:
        wd_ref, bd_ref, o_ref, t1_ref = rest
    else:
        o_ref, t1_ref = rest

    H, W, cpi = x_ref.shape[1], x_ref.shape[2], x_ref.shape[3]
    cpm = w1_ref.shape[1]
    cpo = w3_ref.shape[1]
    m2 = hout * wout

    x = x_ref[0]                                           # (H, W, Cpi) bf16

    # -- conv1: 1x1 == channel matmul (BN scale folded into w1) + bias + ReLU
    y1 = jnp.dot(x.reshape(H * W, cpi), w1_ref[...],
                 preferred_element_type=jnp.float32)
    y1 = jnp.maximum(y1 + b1_ref[...], 0.0).astype(jnp.bfloat16)

    # Stage into a bf16, spatially zero-padded VMEM scratch (halo for the 3x3).
    # Only the 1-wide border needs zeroing; the interior is overwritten below.
    zrow = jnp.zeros((1, W + 2, cpm), jnp.bfloat16)
    zcol = jnp.zeros((H + 2, 1, cpm), jnp.bfloat16)
    t1_ref[0:1] = zrow
    t1_ref[H + 1:H + 2] = zrow
    t1_ref[:, 0:1] = zcol
    t1_ref[:, W + 1:W + 2] = zcol
    t1_ref[1:H + 1, 1:W + 1, :] = y1.reshape(H, W, cpm)

    t1 = t1_ref[...]                                       # (H+2, W+2, Cpm) bf16

    # -- conv2: 3x3(stride), taps consumed in groups of TAP_GROUP and
    #    accumulated (no full im2col patches buffer is ever materialized).
    acc = jnp.zeros((m2, cpm), jnp.float32)
    group = []
    for t in range(9):
        ky, kx = divmod(t, 3)
        tap = jax.lax.slice(
            t1,
            (ky, kx, 0),
            (ky + (hout - 1) * stride + 1,
             kx + (wout - 1) * stride + 1,
             cpm),
            (stride, stride, 1),
        ).reshape(m2, cpm)                                 # (m2, Cpm) bf16
        group.append(tap)
        if len(group) == TAP_GROUP or t == 8:
            g0 = t + 1 - len(group)
            lhs = group[0] if len(group) == 1 else jnp.concatenate(group, -1)
            acc = acc + jnp.dot(lhs, w2_ref[g0 * cpm:(t + 1) * cpm, :],
                                preferred_element_type=jnp.float32)
            group = []
    y2 = jnp.maximum(acc + b2_ref[...], 0.0).astype(jnp.bfloat16)

    # -- conv3: 1x1 (BN scale folded) + bias --------------------------------
    y3 = jnp.dot(y2, w3_ref[...],
                 preferred_element_type=jnp.float32) + b3_ref[...]

    # -- identity / strided 1x1 downsample, residual add, final ReLU --------
    if has_ds:
        xs = jax.lax.slice(
            x, (0, 0, 0),
            ((hout - 1) * stride + 1, (wout - 1) * stride + 1, cpi),
            (stride, stride, 1),
        )
        idn = jnp.dot(xs.reshape(m2, cpi), wd_ref[...],
                      preferred_element_type=jnp.float32) + bd_ref[...]
    else:
        # bf16 view; the add below promotes to f32 (no explicit f32 copy).
        idn = x.reshape(m2, cpo)

    out = jnp.maximum(y3 + idn, 0.0)
    o_ref[0] = out.reshape(hout, wout, cpo).astype(o_ref.dtype)


# ---------------------------------------------------------------------------
# Wrapper: NCHW boundary, BN fold, lane padding, bf16 casts, one pallas_call.
# ---------------------------------------------------------------------------
def bottleneck_forward(x_nchw, params, stride=1):
    N, Cin, H, W = x_nchw.shape
    Cmid = params["w1"].shape[1]
    Cout = params["w3"].shape[1]
    cpi, cpm, cpo = _round_up(Cin), _round_up(Cmid), _round_up(Cout)
    hout = (H + 2 - 3) // stride + 1
    wout = (W + 2 - 3) // stride + 1
    has_ds = "wd" in params
    if not has_ds:
        assert stride == 1 and Cin == Cout, (
            "identity skip path requires stride == 1 and in_channels == out_channels")

    # NCHW -> NHWC at the PyTorch boundary; lane-pad channels; bf16 activations.
    x = jnp.transpose(x_nchw, (0, 2, 3, 1))
    x = jnp.pad(x, ((0, 0), (0, 0), (0, 0), (0, cpi - Cin))).astype(jnp.bfloat16)

    def pad_w(w, r, c):
        return jnp.pad(w, ((0, r - w.shape[0]),
                           (0, c - w.shape[1]))).astype(jnp.bfloat16)

    def pad_b(v, c):
        return jnp.pad(v, (0, c - v.shape[0])).astype(jnp.float32).reshape(1, c)

    # Fold the BN scales into the (bf16) weights; only biases go to the kernel.
    w1 = pad_w(params["w1"] * params["s1"][None, :], cpi, cpm)
    w2 = params["w2"] * params["s2"][None, None, None, :]        # (3,3,Cm,Cm)
    w2 = jnp.pad(w2, ((0, 0), (0, 0), (0, cpm - Cmid), (0, cpm - Cmid)))
    w2 = w2.reshape(9 * cpm, cpm).astype(jnp.bfloat16)           # tap-major
    w3 = pad_w(params["w3"] * params["s3"][None, :], cpm, cpo)
    b1, b2 = pad_b(params["b1"], cpm), pad_b(params["b2"], cpm)
    b3 = pad_b(params["b3"], cpo)

    const2 = lambda n: (0, 0)   # weights / BN biases resident across the grid
    wspec = lambda r, c: pl.BlockSpec((r, c), const2,
                                      pipeline_mode=pl.Buffered(1))

    in_specs = [
        pl.BlockSpec((1, H, W, cpi), lambda n: (n, 0, 0, 0)),    # x
        wspec(cpi, cpm),                                         # w1 (scaled)
        wspec(9 * cpm, cpm),                                     # w2 (scaled)
        wspec(cpm, cpo),                                         # w3 (scaled)
        wspec(1, cpm),                                           # b1
        wspec(1, cpm),                                           # b2
        wspec(1, cpo),                                           # b3
    ]
    args = [x, w1, w2, w3, b1, b2, b3]
    if has_ds:
        wd = pad_w(params["wd"] * params["sd"][None, :], cpi, cpo)
        bd = pad_b(params["bd"], cpo)
        in_specs += [wspec(cpi, cpo), wspec(1, cpo)]             # wd, bd
        args += [wd, bd]

    grid_spec = pltpu.PrefetchScalarGridSpec(
        num_scalar_prefetch=0,
        grid=(N,),
        in_specs=in_specs,
        out_specs=pl.BlockSpec((1, hout, wout, cpo), lambda n: (n, 0, 0, 0)),
        scratch_shapes=[pltpu.VMEM((H + 2, W + 2, cpm), jnp.bfloat16)],
    )

    out = pl.pallas_call(
        functools.partial(_bottleneck_kernel, stride=stride, hout=hout,
                          wout=wout, has_ds=has_ds),
        out_shape=jax.ShapeDtypeStruct((N, hout, wout, cpo), jnp.bfloat16),
        grid_spec=grid_spec,
        compiler_params=pltpu.CompilerParams(
            dimension_semantics=("parallel",),
            vmem_limit_bytes=_vmem_limit_bytes(),
        ),
    )(*args)

    out = out[..., :Cout]                                   # drop lane padding
    # NHWC -> NCHW, back to f32 at the PyTorch-facing boundary.
    return jnp.transpose(out, (0, 3, 1, 2)).astype(jnp.float32)


# ---------------------------------------------------------------------------
# Deterministic parameter init (BN folded into scale/bias, eval mode)
# ---------------------------------------------------------------------------
def init_params(key, cin, cmid, cout, stride):
    def bn_fold(k, c):
        kg, kb, km, kv = jax.random.split(k, 4)
        gamma = 1.0 + 0.1 * jax.random.normal(kg, (c,), jnp.float32)
        beta = 0.1 * jax.random.normal(kb, (c,), jnp.float32)
        mean = 0.1 * jax.random.normal(km, (c,), jnp.float32)
        var = jax.nn.softplus(jax.random.normal(kv, (c,), jnp.float32)) + 0.5
        s = gamma / jnp.sqrt(var + 1e-5)
        b = beta - mean * s
        return s, b

    keys = jax.random.split(key, 8)
    p = {}
    p["w1"] = 0.2 * jax.random.normal(keys[0], (cin, cmid), jnp.float32)
    p["s1"], p["b1"] = bn_fold(keys[1], cmid)
    p["w2"] = 0.2 * jax.random.normal(keys[2], (3, 3, cmid, cmid), jnp.float32)
    p["s2"], p["b2"] = bn_fold(keys[3], cmid)
    p["w3"] = 0.2 * jax.random.normal(keys[4], (cmid, cout), jnp.float32)
    p["s3"], p["b3"] = bn_fold(keys[5], cout)
    if stride != 1 or cin != cout:
        p["wd"] = 0.2 * jax.random.normal(keys[6], (cin, cout), jnp.float32)
        p["sd"], p["bd"] = bn_fold(keys[7], cout)
    return p


# ---------------------------------------------------------------------------
# Pure-JAX reference mirroring the kernel's bf16-in / f32-accumulate numerics
# ---------------------------------------------------------------------------
def reference_forward(x_nchw, p, stride):
    x = jnp.transpose(x_nchw, (0, 2, 3, 1)).astype(jnp.bfloat16)

    def conv(a, w, s, pad):
        return jax.lax.conv_general_dilated(
            a.astype(jnp.bfloat16), w.astype(jnp.bfloat16),
            window_strides=(s, s), padding=pad,
            dimension_numbers=("NHWC", "HWIO", "NHWC"),
            preferred_element_type=jnp.float32)

    y = conv(x, p["w1"][None, None], 1, "VALID") * p["s1"] + p["b1"]
    y = jnp.maximum(y, 0.0)
    y = conv(y, p["w2"], stride, [(1, 1), (1, 1)]) * p["s2"] + p["b2"]
    y = jnp.maximum(y, 0.0)
    y = conv(y, p["w3"][None, None], 1, "VALID") * p["s3"] + p["b3"]
    if "wd" in p:
        idn = conv(x, p["wd"][None, None], stride, "VALID") * p["sd"] + p["bd"]
    else:
        idn = x.astype(jnp.float32)
    y = jnp.maximum(y + idn, 0.0)
    return jnp.transpose(y, (0, 3, 1, 2))


if __name__ == "__main__":
    key = jax.random.PRNGKey(0)
    configs = [
        # (N, Cin, H, W, Cmid, Cout, stride)
        (2, 4, 16, 16, 8, 16, 1),    # downsample branch (Cin != Cout)
        (2, 4, 16, 16, 8, 16, 2),    # strided 3x3 + strided downsample
        (2, 16, 16, 16, 8, 16, 1),   # pure identity skip path
    ]
    for (N, Cin, H, W, Cmid, Cout, stride) in configs:
        kx, kp, key = jax.random.split(key, 3)
        x = jax.random.normal(kx, (N, Cin, H, W), jnp.float32)
        params = init_params(kp, Cin, Cmid, Cout, stride)
        y = jax.block_until_ready(bottleneck_forward(x, params, stride))
        y_ref = jax.block_until_ready(reference_forward(x, params, stride))
        # bf16 output + BN scales folded into bf16 weights -> bf16-level tolerance.
        np.testing.assert_allclose(np.asarray(y), np.asarray(y_ref),
                                   rtol=2e-2, atol=2e-2)
    print("KERNEL_OK")
</pallas_src>

<mosaic_0001>
module attributes {stable_mosaic.version = 11 : i64} {
  func.func @_bottleneck_kernel(%arg0: i32, %arg1: memref<1x16x16x128xbf16, #tpu.memory_space<vmem>>, %arg2: memref<128x128xbf16, #tpu.memory_space<vmem>>, %arg3: memref<1152x128xbf16, #tpu.memory_space<vmem>>, %arg4: memref<128x128xbf16, #tpu.memory_space<vmem>>, %arg5: memref<1x128xf32, #tpu.memory_space<vmem>>, %arg6: memref<1x128xf32, #tpu.memory_space<vmem>>, %arg7: memref<1x128xf32, #tpu.memory_space<vmem>>, %arg8: memref<128x128xbf16, #tpu.memory_space<vmem>>, %arg9: memref<1x128xf32, #tpu.memory_space<vmem>>, %arg10: memref<1x16x16x128xbf16, #tpu.memory_space<vmem>>, %arg11: memref<18x18x128xbf16, #tpu.memory_space<vmem>>) attributes {dimension_semantics = [#tpu.dimension_semantics<parallel>], iteration_bounds = array<i64: 2>, scalar_prefetch = 0 : i64, scratch_operands = 1 : i64, tpu.core_type = #tpu.core_type<tc>, window_params = [{transform_indices = @transform_0, window_bounds = array<i64: 1, 16, 16, 128>}, {pipeline_mode = #tpu.pipeline_mode<synchronous>, transform_indices = @transform_1, window_bounds = array<i64: 128, 128>}, {pipeline_mode = #tpu.pipeline_mode<synchronous>, transform_indices = @transform_2, window_bounds = array<i64: 1152, 128>}, {pipeline_mode = #tpu.pipeline_mode<synchronous>, transform_indices = @transform_3, window_bounds = array<i64: 128, 128>}, {pipeline_mode = #tpu.pipeline_mode<synchronous>, transform_indices = @transform_4, window_bounds = array<i64: 1, 128>}, {pipeline_mode = #tpu.pipeline_mode<synchronous>, transform_indices = @transform_5, window_bounds = array<i64: 1, 128>}, {pipeline_mode = #tpu.pipeline_mode<synchronous>, transform_indices = @transform_6, window_bounds = array<i64: 1, 128>}, {pipeline_mode = #tpu.pipeline_mode<synchronous>, transform_indices = @transform_7, window_bounds = array<i64: 128, 128>}, {pipeline_mode = #tpu.pipeline_mode<synchronous>, transform_indices = @transform_8, window_bounds = array<i64: 1, 128>}, {transform_indices = @transform_9, window_bounds = array<i64: 1, 16, 16, 128>}]} {
    %c0 = arith.constant 0 : index
    %c0_0 = arith.constant 0 : index
    %c0_1 = arith.constant 0 : index
    %c0_2 = arith.constant 0 : index
    %0 = vector.load %arg1[%c0, %c0_0, %c0_1, %c0_2] : memref<1x16x16x128xbf16, #tpu.memory_space<vmem>>, vector<1x16x16x128xbf16>
    %1 = vector.shape_cast %0 : vector<1x16x16x128xbf16> to vector<16x16x128xbf16>
    %2 = vector.shape_cast %1 : vector<16x16x128xbf16> to vector<256x128xbf16>
    %c0_3 = arith.constant 0 : index
    %c0_4 = arith.constant 0 : index
    %3 = vector.load %arg2[%c0_3, %c0_4] : memref<128x128xbf16, #tpu.memory_space<vmem>>, vector<128x128xbf16>
    %cst = arith.constant dense<0.000000e+00> : vector<256x128xf32>
    %4 = tpu.matmul %2, %3, %cst {dimension_numbers = #tpu.dot_dimension_numbers<[1], [0], [0], [1], [0, 0, 1, 1], [], []>} : vector<256x128xbf16>, vector<128x128xbf16>, vector<256x128xf32> -> vector<256x128xf32>
    %c0_5 = arith.constant 0 : index
    %c0_6 = arith.constant 0 : index
    %5 = vector.load %arg5[%c0_5, %c0_6] : memref<1x128xf32, #tpu.memory_space<vmem>>, vector<1x128xf32>
    %6 = vector.broadcast %5 : vector<1x128xf32> to vector<256x128xf32>
    %7 = arith.addf %4, %6 : vector<256x128xf32>
    %cst_7 = arith.constant 0.000000e+00 : f32
    %8 = vector.broadcast %cst_7 : f32 to vector<256x128xf32>
    %9 = arith.maximumf %7, %8 : vector<256x128xf32>
    %10 = arith.truncf %9 : vector<256x128xf32> to vector<256x128xbf16>
    %cst_8 = arith.constant 0.000000e+00 : bf16
    %11 = vector.broadcast %cst_8 : bf16 to vector<1x18x128xbf16>
    %cst_9 = arith.constant 0.000000e+00 : bf16
    %12 = vector.broadcast %cst_9 : bf16 to vector<18x1x128xbf16>
    %c0_10 = arith.constant 0 : index
    %c0_11 = arith.constant 0 : index
    %c0_12 = arith.constant 0 : index
    %13 = vector.load %arg11[%c0_10, %c0_11, %c0_12] : memref<18x18x128xbf16, #tpu.memory_space<vmem>>, vector<1x18x128xbf16>
    tpu.vector_store %arg11[%c0_10, %c0_11, %c0_12], %11 {strides = array<i32>} : memref<18x18x128xbf16, #tpu.memory_space<vmem>>, vector<1x18x128xbf16>,
    %c17 = arith.constant 17 : index
    %c0_13 = arith.constant 0 : index
    %c0_14 = arith.constant 0 : index
    %14 = vector.load %arg11[%c17, %c0_13, %c0_14] : memref<18x18x128xbf16, #tpu.memory_space<vmem>>, vector<1x18x128xbf16>
    tpu.vector_store %arg11[%c17, %c0_13, %c0_14], %11 {strides = array<i32>} : memref<18x18x128xbf16, #tpu.memory_space<vmem>>, vector<1x18x128xbf16>,
    %c0_15 = arith.constant 0 : index
    %c0_16 = arith.constant 0 : index
    %c0_17 = arith.constant 0 : index
    %15 = vector.load %arg11[%c0_15, %c0_16, %c0_17] : memref<18x18x128xbf16, #tpu.memory_space<vmem>>, vector<18x1x128xbf16>
    tpu.vector_store %arg11[%c0_15, %c0_16, %c0_17], %12 {strides = array<i32>} : memref<18x18x128xbf16, #tpu.memory_space<vmem>>, vector<18x1x128xbf16>,
    %c0_18 = arith.constant 0 : index
    %c17_19 = arith.constant 17 : index
    %c0_20 = arith.constant 0 : index
    %16 = vector.load %arg11[%c0_18, %c17_19, %c0_20] : memref<18x18x128xbf16, #tpu.memory_space<vmem>>, vector<18x1x128xbf16>
    tpu.vector_store %arg11[%c0_18, %c17_19, %c0_20], %12 {strides = array<i32>} : memref<18x18x128xbf16, #tpu.memory_space<vmem>>, vector<18x1x128xbf16>,
    %17 = vector.shape_cast %10 : vector<256x128xbf16> to vector<16x16x128xbf16>
    %c1 = arith.constant 1 : index
    %c1_21 = arith.constant 1 : index
    %c0_22 = arith.constant 0 : index
    %18 = vector.load %arg11[%c1, %c1_21, %c0_22] : memref<18x18x128xbf16, #tpu.memory_space<vmem>>, vector<16x16x128xbf16>
    tpu.vector_store %arg11[%c1, %c1_21, %c0_22], %17 {strides = array<i32>} : memref<18x18x128xbf16, #tpu.memory_space<vmem>>, vector<16x16x128xbf16>,
    %c0_23 = arith.constant 0 : index
    %c0_24 = arith.constant 0 : index
    %c0_25 = arith.constant 0 : index
    %19 = vector.load %arg11[%c0_23, %c0_24, %c0_25] : memref<18x18x128xbf16, #tpu.memory_space<vmem>>, vector<18x18x128xbf16>
    %cst_26 = arith.constant 0.000000e+00 : f32
    %20 = vector.broadcast %cst_26 : f32 to vector<256x128xf32>
    %21 = vector.extract_strided_slice %19 {offsets = [0, 0, 0], sizes = [16, 16, 128], strides = [1, 1, 1]} : vector<18x18x128xbf16> to vector<16x16x128xbf16>
    %22 = vector.shape_cast %21 : vector<16x16x128xbf16> to vector<256x128xbf16>
    %23 = vector.extract_strided_slice %19 {offsets = [0, 1, 0], sizes = [16, 16, 128], strides = [1, 1, 1]} : vector<18x18x128xbf16> to vector<16x16x128xbf16>
    %24 = vector.shape_cast %23 : vector<16x16x128xbf16> to vector<256x128xbf16>
    %25 = vector.extract_strided_slice %19 {offsets = [0, 2, 0], sizes = [16, 16, 128], strides = [1, 1, 1]} : vector<18x18x128xbf16> to vector<16x16x128xbf16>
    %26 = vector.shape_cast %25 : vector<16x16x128xbf16> to vector<256x128xbf16>
    %27 = tpu.concatenate %22, %24, %26 in 1 : vector<256x128xbf16>, vector<256x128xbf16>, vector<256x128xbf16> -> vector<256x384xbf16>
    %c0_27 = arith.constant 0 : index
    %c0_28 = arith.constant 0 : index
    %28 = vector.load %arg3[%c0_27, %c0_28] : memref<1152x128xbf16, #tpu.memory_space<vmem>>, vector<384x128xbf16>
    %cst_29 = arith.constant dense<0.000000e+00> : vector<256x128xf32>
    %29 = tpu.matmul %27, %28, %cst_29 {dimension_numbers = #tpu.dot_dimension_numbers<[1], [0], [0], [1], [0, 0, 1, 1], [], []>} : vector<256x384xbf16>, vector<384x128xbf16>, vector<256x128xf32> -> vector<256x128xf32>
    %30 = arith.addf %20, %29 : vector<256x128xf32>
    %31 = vector.extract_strided_slice %19 {offsets = [1, 0, 0], sizes = [16, 16, 128], strides = [1, 1, 1]} : vector<18x18x128xbf16> to vector<16x16x128xbf16>
    %32 = vector.shape_cast %31 : vector<16x16x128xbf16> to vector<256x128xbf16>
    %33 = vector.extract_strided_slice %19 {offsets = [1, 1, 0], sizes = [16, 16, 128], strides = [1, 1, 1]} : vector<18x18x128xbf16> to vector<16x16x128xbf16>
    %34 = vector.shape_cast %33 : vector<16x16x128xbf16> to vector<256x128xbf16>
    %35 = vector.extract_strided_slice %19 {offsets = [1, 2, 0], sizes = [16, 16, 128], strides = [1, 1, 1]} : vector<18x18x128xbf16> to vector<16x16x128xbf16>
    %36 = vector.shape_cast %35 : vector<16x16x128xbf16> to vector<256x128xbf16>
    %37 = tpu.concatenate %32, %34, %36 in 1 : vector<256x128xbf16>, vector<256x128xbf16>, vector<256x128xbf16> -> vector<256x384xbf16>
    %c384 = arith.constant 384 : index
    %c0_30 = arith.constant 0 : index
    %38 = vector.load %arg3[%c384, %c0_30] : memref<1152x128xbf16, #tpu.memory_space<vmem>>, vector<384x128xbf16>
    %cst_31 = arith.constant dense<0.000000e+00> : vector<256x128xf32>
    %39 = tpu.matmul %37, %38, %cst_31 {dimension_numbers = #tpu.dot_dimension_numbers<[1], [0], [0], [1], [0, 0, 1, 1], [], []>} : vector<256x384xbf16>, vector<384x128xbf16>, vector<256x128xf32> -> vector<256x128xf32>
    %40 = arith.addf %30, %39 : vector<256x128xf32>
    %41 = vector.extract_strided_slice %19 {offsets = [2, 0, 0], sizes = [16, 16, 128], strides = [1, 1, 1]} : vector<18x18x128xbf16> to vector<16x16x128xbf16>
    %42 = vector.shape_cast %41 : vector<16x16x128xbf16> to vector<256x128xbf16>
    %43 = vector.extract_strided_slice %19 {offsets = [2, 1, 0], sizes = [16, 16, 128], strides = [1, 1, 1]} : vector<18x18x128xbf16> to vector<16x16x128xbf16>
    %44 = vector.shape_cast %43 : vector<16x16x128xbf16> to vector<256x128xbf16>
    %45 = vector.extract_strided_slice %19 {offsets = [2, 2, 0], sizes = [16, 16, 128], strides = [1, 1, 1]} : vector<18x18x128xbf16> to vector<16x16x128xbf16>
    %46 = vector.shape_cast %45 : vector<16x16x128xbf16> to vector<256x128xbf16>
    %47 = tpu.concatenate %42, %44, %46 in 1 : vector<256x128xbf16>, vector<256x128xbf16>, vector<256x128xbf16> -> vector<256x384xbf16>
    %c768 = arith.constant 768 : index
    %c0_32 = arith.constant 0 : index
    %48 = vector.load %arg3[%c768, %c0_32] : memref<1152x128xbf16, #tpu.memory_space<vmem>>, vector<384x128xbf16>
    %cst_33 = arith.constant dense<0.000000e+00> : vector<256x128xf32>
    %49 = tpu.matmul %47, %48, %cst_33 {dimension_numbers = #tpu.dot_dimension_numbers<[1], [0], [0], [1], [0, 0, 1, 1], [], []>} : vector<256x384xbf16>, vector<384x128xbf16>, vector<256x128xf32> -> vector<256x128xf32>
    %50 = arith.addf %40, %49 : vector<256x128xf32>
    %c0_34 = arith.constant 0 : index
    %c0_35 = arith.constant 0 : index
    %51 = vector.load %arg6[%c0_34, %c0_35] : memref<1x128xf32, #tpu.memory_space<vmem>>, vector<1x128xf32>
    %52 = vector.broadcast %51 : vector<1x128xf32> to vector<256x128xf32>
    %53 = arith.addf %50, %52 : vector<256x128xf32>
    %cst_36 = arith.constant 0.000000e+00 : f32
    %54 = vector.broadcast %cst_36 : f32 to vector<256x128xf32>
    %55 = arith.maximumf %53, %54 : vector<256x128xf32>
    %56 = arith.truncf %55 : vector<256x128xf32> to vector<256x128xbf16>
    %c0_37 = arith.constant 0 : index
    %c0_38 = arith.constant 0 : index
    %57 = vector.load %arg4[%c0_37, %c0_38] : memref<128x128xbf16, #tpu.memory_space<vmem>>, vector<128x128xbf16>
    %cst_39 = arith.constant dense<0.000000e+00> : vector<256x128xf32>
    %58 = tpu.matmul %56, %57, %cst_39 {dimension_numbers = #tpu.dot_dimension_numbers<[1], [0], [0], [1], [0, 0, 1, 1], [], []>} : vector<256x128xbf16>, vector<128x128xbf16>, vector<256x128xf32> -> vector<256x128xf32>
    %c0_40 = arith.constant 0 : index
    %c0_41 = arith.constant 0 : index
    %59 = vector.load %arg7[%c0_40, %c0_41] : memref<1x128xf32, #tpu.memory_space<vmem>>, vector<1x128xf32>
    %60 = vector.broadcast %59 : vector<1x128xf32> to vector<256x128xf32>
    %61 = arith.addf %58, %60 : vector<256x128xf32>
    %62 = vector.extract_strided_slice %1 {offsets = [0, 0, 0], sizes = [16, 16, 128], strides = [1, 1, 1]} : vector<16x16x128xbf16> to vector<16x16x128xbf16>
    %63 = vector.shape_cast %62 : vector<16x16x128xbf16> to vector<256x128xbf16>
    %c0_42 = arith.constant 0 : index
    %c0_43 = arith.constant 0 : index
    %64 = vector.load %arg8[%c0_42, %c0_43] : memref<128x128xbf16, #tpu.memory_space<vmem>>, vector<128x128xbf16>
    %cst_44 = arith.constant dense<0.000000e+00> : vector<256x128xf32>
    %65 = tpu.matmul %63, %64, %cst_44 {dimension_numbers = #tpu.dot_dimension_numbers<[1], [0], [0], [1], [0, 0, 1, 1], [], []>} : vector<256x128xbf16>, vector<128x128xbf16>, vector<256x128xf32> -> vector<256x128xf32>
    %c0_45 = arith.constant 0 : index
    %c0_46 = arith.constant 0 : index
    %66 = vector.load %arg9[%c0_45, %c0_46] : memref<1x128xf32, #tpu.memory_space<vmem>>, vector<1x128xf32>
    %67 = vector.broadcast %66 : vector<1x128xf32> to vector<256x128xf32>
    %68 = arith.addf %65, %67 : vector<256x128xf32>
    %69 = arith.addf %61, %68 : vector<256x128xf32>
    %cst_47 = arith.constant 0.000000e+00 : f32
    %70 = vector.broadcast %cst_47 : f32 to vector<256x128xf32>
    %71 = arith.maximumf %69, %70 : vector<256x128xf32>
    %72 = vector.shape_cast %71 : vector<256x128xf32> to vector<16x16x128xf32>
    %73 = arith.truncf %72 : vector<16x16x128xf32> to vector<16x16x128xbf16>
    %c0_48 = arith.constant 0 : index
    %c0_49 = arith.constant 0 : index
    %c0_50 = arith.constant 0 : index
    %c0_51 = arith.constant 0 : index
    %74 = vector.load %arg10[%c0_48, %c0_49, %c0_50, %c0_51] : memref<1x16x16x128xbf16, #tpu.memory_space<vmem>>, vector<1x16x16x128xbf16>
    %75 = vector.shape_cast %74 : vector<1x16x16x128xbf16> to vector<16x16x128xbf16>
    %76 = vector.shape_cast %73 : vector<16x16x128xbf16> to vector<1x16x16x128xbf16>
    tpu.vector_store %arg10[%c0_48, %c0_49, %c0_50, %c0_51], %76 {strides = array<i32>} : memref<1x16x16x128xbf16, #tpu.memory_space<vmem>>, vector<1x16x16x128xbf16>,
    return
  }
  func.func @transform_0(%arg0: i32) -> (i32, i32, i32, i32) {
    %c0_i32 = arith.constant 0 : i32
    %c0_i32_0 = arith.constant 0 : i32
    %c0_i32_1 = arith.constant 0 : i32
    %c0_i32_2 = arith.constant 0 : i32
    return %arg0, %c0_i32, %c0_i32_0, %c0_i32_1 : i32, i32, i32, i32
  }
  func.func @transform_1(%arg0: i32) -> (i32, i32) {
    %c0_i32 = arith.constant 0 : i32
    %c0_i32_0 = arith.constant 0 : i32
    %c0_i32_1 = arith.constant 0 : i32
    return %c0_i32, %c0_i32_0 : i32, i32
  }
  func.func @transform_2(%arg0: i32) -> (i32, i32) {
    %c0_i32 = arith.constant 0 : i32
    %c0_i32_0 = arith.constant 0 : i32
    %c0_i32_1 = arith.constant 0 : i32
    return %c0_i32, %c0_i32_0 : i32, i32
  }
  func.func @transform_3(%arg0: i32) -> (i32, i32) {
    %c0_i32 = arith.constant 0 : i32
    %c0_i32_0 = arith.constant 0 : i32
    %c0_i32_1 = arith.constant 0 : i32
    return %c0_i32, %c0_i32_0 : i32, i32
  }
  func.func @transform_4(%arg0: i32) -> (i32, i32) {
    %c0_i32 = arith.constant 0 : i32
    %c0_i32_0 = arith.constant 0 : i32
    %c0_i32_1 = arith.constant 0 : i32
    return %c0_i32, %c0_i32_0 : i32, i32
  }
  func.func @transform_5(%arg0: i32) -> (i32, i32) {
    %c0_i32 = arith.constant 0 : i32
    %c0_i32_0 = arith.constant 0 : i32
    %c0_i32_1 = arith.constant 0 : i32
    return %c0_i32, %c0_i32_0 : i32, i32
  }
  func.func @transform_6(%arg0: i32) -> (i32, i32) {
    %c0_i32 = arith.constant 0 : i32
    %c0_i32_0 = arith.constant 0 : i32
    %c0_i32_1 = arith.constant 0 : i32
    return %c0_i32, %c0_i32_0 : i32, i32
  }
  func.func @transform_7(%arg0: i32) -> (i32, i32) {
    %c0_i32 = arith.constant 0 : i32
    %c0_i32_0 = arith.constant 0 : i32
    %c0_i32_1 = arith.constant 0 : i32
    return %c0_i32, %c0_i32_0 : i32, i32
  }
  func.func @transform_8(%arg0: i32) -> (i32, i32) {
    %c0_i32 = arith.constant 0 : i32
    %c0_i32_0 = arith.constant 0 : i32
    %c0_i32_1 = arith.constant 0 : i32
    return %c0_i32, %c0_i32_0 : i32, i32
  }
  func.func @transform_9(%arg0: i32) -> (i32, i32, i32, i32) {
    %c0_i32 = arith.constant 0 : i32
    %c0_i32_0 = arith.constant 0 : i32
    %c0_i32_1 = arith.constant 0 : i32
    %c0_i32_2 = arith.constant 0 : i32
    return %arg0, %c0_i32, %c0_i32_0, %c0_i32_1 : i32, i32, i32, i32
  }
}

</mosaic_0001>

<bundles_post_ra>
// kernel: tpu_custom_call.1
= control target key start
LH: loop header
LB: loop body
LE: loop exit
PB: predicated region body
PF: predicated region fallthrough
CT: control target
= control target key end

     0   :  { %s6985_s0 = inlined_call_operand.hbm [shape: bf16[2,16,16,128], index: 0, kind: input, shape index: {}]   ;;  %s6986_s1 = inlined_call_operand.hbm [shape: bf16[128,128], index: 1, kind: input, shape index: {}]   ;;  %s6987_s2 = inlined_call_operand.hbm [shape: bf16[1152,128], index: 2, kind: input, shape index: {}]   ;;  %s6988_s3 = inlined_call_operand.hbm [shape: bf16[128,128], index: 3, kind: input, shape index: {}]   ;;  %s6989_s4 = inlined_call_operand.vmem [shape: f32[1,128], index: 4, kind: input, shape index: {}]   ;;  %s6990_s5 = inlined_call_operand.vmem [shape: f32[1,128], index: 5, kind: input, shape index: {}]   ;;  %s6991_s6 = inlined_call_operand.vmem [shape: f32[1,128], index: 6, kind: input, shape index: {}]   ;;  %s6992_s7 = inlined_call_operand.hbm [shape: bf16[128,128], index: 7, kind: input, shape index: {}]   ;;  %s6993_s8 = inlined_call_operand.vmem [shape: f32[1,128], index: 8, kind: input, shape index: {}]   ;;  %s6994_s9 = inlined_call_operand.hbm [shape: bf16[2,16,16,128], index: 9, kind: output, shape index: {}]  }
   0x1   :  { %7048 = sst [smem:[#allocation49_spill]] %s6986_s1 }
   0x2   :  { %7049 = sst [smem:[#allocation50_spill]] %s6987_s2 }
   0x3   :  { %7050 = sst [smem:[#allocation51_spill]] %s6988_s3 }
   0x4   :  { %14 = vsyncpa [#allocation4], 0 }
   0x5   :  { %16 = vsyncpa [#allocation4 + $0x1], 0 }
   0x6   :  { %17 = vsyncpa [#allocation7], 0 }
   0x7   :  { %18 = vsyncpa [#allocation10], 0 }
   0x8   :  { %19 = vsyncpa [#allocation5], 0 }
   0x9   :  { %21 = vsyncpa [#allocation5 + $0x1], 0  ;;  %s5477_s30 = smov 0   ;;  %s5479_s10 = smov 0  }
   0xa   :  { %s5481_s11 = smov 0   ;;  %s5483_s12 = smov 0  }
   0xb LB: > { %s5498_s13 = sadd.s32 4294967295, %s5416_s12   ;;  %s4276_s14 = sadd.s32 4294967294, %s5416_s12   ;;  %s5416_s12 = sphi %s5483_s12, %s7192_s12   ;;  %s5412_s11 = sphi %s5481_s11, %s7191_s11   ;;  %s5408_s10 = sphi %s5479_s10, %s7190_s10   ;;  %s5404_s30 = sphi %s5477_s30, %s7189_s30  }
   0xc   : > { %p47_p0 = scmp.ne.s32.totalorder %s5408_s10, %s5404_s30  ;;  %p48_p1 = scmp.eq.s32.totalorder %s5498_s13, 0 }
   0xd   : > { %p239_p2 = scmp.eq.s32.totalorder %s5498_s13, 1  ;;  %p245_p3 = scmp.eq.s32.totalorder %s4276_s14, 1 }
   0xe   : > { %p5507_p4 = por %p48_p1, %p47_p0  ;;  %p4277_p5 = scmp.ge.s32.totalorder %s5416_s12, 1 }
   0xf   : > { %p5512_p6 = por %p245_p3, %p47_p0  ;;  %p252_p7 = scmp.lt.s32.totalorder %s5416_s12, 3 }
  0x10   : > { %s7053_s1 = sld [smem:[#allocation49_spill]]  ;;  %s5418_s21 = smov [#allocation6]  }
  0x11   : > { %p5520_p8 = pnand %p4277_p5, %p252_p7  ;;  %s265_s22 = sshll.u32 %s5418_s21, 4  ;;  %s266_s22 = int_to_ptr.vmem [resolvable:$true] %s265_s22 }
  0x12   : > { %s7056_s3 = sld [smem:[#allocation51_spill]]  ;;  %s6995_s27 = smov 64  }
  0x13   : > { %p5083_p9 = pneg %p5520_p8  ;;  %s6996_s28 = smov 4  }
  0x14   : > { %s5421_s29 = smov [#allocation9]   ;;  %s7057_s2 = sld [smem:[#allocation50_spill]] }
  0x15   : > { %p5528_p10 = pnand %p5083_p9, %p48_p1  ;;  %s293_s14 = sshll.u32 %s5421_s29, 4  ;;  %s294_s14 = int_to_ptr.vmem [resolvable:$true] %s293_s14 }
  0x16   : > { %s263_s19 = sshll.u32 %s7053_s1, 4  ;;  %s314_s24 = sshll.u32 %s6992_s7, 4  ;;  %s264_s19 = int_to_ptr.hbm [resolvable:$true] %s263_s19  ;;  %s315_s24 = int_to_ptr.hbm [resolvable:$true] %s314_s24 }
  0x17   : > { %5086 = dma.hbm_to_vmem [thread:$0]  (!%p5528_p10), %s264_s19, 1024, %s266_s22, [#allocation7], %s6995_s27, %s6995_s27, %s6996_s28  }
  0x18   : > { %s291_s26 = sshll.u32 %s7056_s3, 4  ;;  %s5422_s25 = smov [#allocation8]   ;;  %s292_s26 = int_to_ptr.hbm [resolvable:$true] %s291_s26 }
  0x19   : > { %5092 = dma.hbm_to_vmem [thread:$0]  (!%p5528_p10), %s292_s26, 1024, %s294_s14, [#allocation10], %s6995_s27, %s6995_s27, %s6996_s28  }
  0x1a   : > { %s277_s21 = sshll.u32 %s7057_s2, 4  ;;  %s279_s29 = sshll.u32 %s5422_s25, 4  ;;  %s278_s21 = int_to_ptr.hbm [resolvable:$true] %s277_s21  ;;  %s280_s29 = int_to_ptr.vmem [resolvable:$true] %s279_s29 }
  0x1b   : > { %5089 = dma.hbm_to_vmem [thread:$0]  (!%p5528_p10), %s278_s21, 9216, %s280_s29, [#allocation7], %s6995_s27, %s6995_s27, %s6996_s28  }
  0x1c   : > { %s5423_s17 = smov [#allocation11]   ;;  %s5563_s14 = sadd.s32 1, %s5416_s12  }
  0x1d   : > { %s316_s26 = sshll.u32 %s5423_s17, 4  ;;  %s34_s18 = sadd.s32 1, %s5412_s11  ;;  %s317_s26 = int_to_ptr.vmem [resolvable:$true] %s316_s26 }
  0x1e   : > { %5095 = dma.hbm_to_vmem [thread:$0]  (!%p5528_p10), %s315_s24, 1024, %s317_s26, [#allocation10], %s6995_s27, %s6995_s27, %s6996_s28  }
  0x1f   : > { %s31_s19 = ssub.s32 %s5416_s12, %s5563_s14  ;;  %p41_p12 = scmp.ne.s32.totalorder %s5412_s11, %s5408_s10 }
  0x20   : > { %p32_p13 = scmp.eq.s32.totalorder %s31_s19, 0  ;;  %p42_p0 = scmp.eq.s32.totalorder %s5416_s12, 0 }
  0x21   : > { %p5573_p3 = por %p239_p2, %p41_p12  ;;  %p5108_p5 = scmp.lt.s32.totalorder %s5416_s12, 2 }
  0x22   : > { %s5579_s22 = scalar_select %p32_p13, %s5412_s11, %s34_s18  }
  0x23   : > { %p43_p7 = por %p42_p0, %p41_p12  ;;  %s333_s23 = sand.u32 1, %s5412_s11  }
  0x24   : > { %s4283_s25 = sshll.u32 %s333_s23, 7  ;;  %s4836_s24 = sshll.u32 %s5416_s12, 7 }
  0x25   : > { %s342_s26 = scalar_lea.hbm %s6985_s0, %s4836_s24  ;;  %s337_s27 = scalar_lea.vmem [#allocation3], %s4283_s25 }
  0x26   : > { %s345_s28 = sshll.u32 %s337_s27, 4  ;;  %s343_s19 = sshll.u32 %s342_s26, 4  ;;  %s346_s28 = int_to_ptr.vmem [resolvable:$true] %s345_s28  ;;  %s344_s19 = int_to_ptr.hbm [resolvable:$true] %s343_s19 }
  0x27   : > { %p5586_p2 = pnand %p5108_p5, %p43_p7  ;;  %s334_s18 = scalar_lea.sflag [#allocation4], %s333_s23 }
  0x28   : > { %s5312_s2 = sshra.s32 %s344_s19, 4  ;;  %s5319_s27 = scalar_lea.hbm %s6985_s0, 256  ;;  %s5313_s2 = int_to_ptr.hbm [resolvable:$true] %s5312_s2 }
  0x29   : > { %s5314_s3 = scalar_lea.hbm %s5313_s2, 128  ;;  %p5316_p10 = pneg %p5586_p2 }
  0x2a   : > { %p5315_p9 = scmp.ne.s32.totalorder %s5313_s2, %s5314_s3  ;;  %p5320_p0 = scmp.lt.s32.totalorder %s5313_s2, %s6985_s0 }
  0x2b   : > { %p5321_p5 = scmp.lt.s32.totalorder %s5319_s27, %s5314_s3 }
  0x2c   : > { %p5317_p12 = pnand %p5316_p10, %p5315_p9 }
  0x2d   : > { %p5322_p7 = por %p5321_p5, %p5320_p0 }
  0x2e   : > { %p5318_p13 = pneg %p5317_p12 }
  0x30   : > { %p5323_p11 = pnand %p5322_p7, %p5318_p13 }
  0x32   : > { %5326 = shalt.err (!%p5323_p11)
}
  0x33   : > { %s7060_s23 = smov 4   ;;  %s7061_s26 = smov 64  }
  0x34   : > { %5099 = dma.hbm_to_vmem [thread:$0]  (!%p5586_p2), %s344_s19, 2048, %s346_s28, %s334_s18, %s7061_s26, %s7061_s26, %s7060_s23  }
  0x35   : > { %357 = sbr.rel (%p5520_p8) target bundleno = 1302 (0x516), region = 56 }
  0x3a   : > { %s5606_s24 = sand.u32 1, %s5408_s10  }
  0x3b   : > { %s4287_s2 = sshll.u32 %s5606_s24, 7  ;;  %s360_s3 = scalar_lea.sflag [#allocation4], %s5606_s24 }
  0x3c   : > { %s5612_s25 = scalar_lea.vmem [#allocation3], %s4287_s2 }
  0x3d   : > { %5387 = dma.done.wait (%p5507_p4), %s360_s3, 2048  }
  0x3e   : > { %5389 = vsyncadd (%p5507_p4), %s360_s3, 4294965248 }
  0x3f   : > { %5391 = dma.done.wait (%p48_p1), [#allocation7], 10240  }
  0x40   : > { %5393 = vsyncadd (%p48_p1), [#allocation7], 4294957056 }
  0x41   : > { %5395 = dma.done.wait (%p48_p1), [#allocation10], 2048  }
  0x42   : > { %5397 = vsyncadd (%p48_p1), [#allocation10], 4294965248  ;;  %v4860_v0 = vld [vmem:[#allocation6 + $0x38] sm:$0xff]  ;;  %v4859_v1 = vld [vmem:[#allocation6 + $0x30] sm:$0xff]  ;;  %vm776_vm0 = vcmask 1040384   ;;  %v7064_v22 = vmov 0 }
  0x43   : > { %616 = vmatpush.bf16.msra.mxu0 %v4860_v0  ;;  %v4858_v2 = vld [vmem:[#allocation6 + $0x28] sm:$0xff]  ;;  %v4857_v3 = vld [vmem:[#allocation6 + $0x20] sm:$0xff]  ;;  %v4856_v4 = vld [vmem:[#allocation6 + $0x18] sm:$0xff]  ;;  %vm777_vm1 = vsmask.f32 256  ;;  %vm1212_vm5 = vcmask 1043456  }
  0x44   : > { %v4855_v5 = vld [vmem:[#allocation6 + $0x10] sm:$0xff]  ;;  %v4854_v6 = vld [vmem:[#allocation6 + $0x8] sm:$0xff]  ;;  %v4853_v7 = vld [vmem:[#allocation6] sm:$0xff]  ;;  %vm833_vm3 = vsmask.f32 7938  ;;  %vm1815_vm9 = vcmask 1042432  }
  0x45   : > { %v4837_v8 = vld [vmem:[%s5612_s25] sm:$0xff]  ;;  %v4838_v9 = vld [vmem:[%s5612_s25 + $0x8] sm:$0xff]  ;;  %v4839_v10 = vld [vmem:[%s5612_s25 + $0x10] sm:$0xff]  ;;  %vm889_vm7 = vsmask.f32 4368  ;;  %vm1816_vm10 = vcmask 1046532  }
  0x46   : > { %v4840_v11 = vld [vmem:[%s5612_s25 + $0x18] sm:$0xff]  ;;  %v4841_v12 = vld [vmem:[%s5612_s25 + $0x20] sm:$0xff]  ;;  %v4842_v13 = vld [vmem:[%s5612_s25 + $0x28] sm:$0xff]  ;;  %vm1380_vm12 = vsmask.f32 3328  ;;  %s6815_s1 = scalar_lea.vmem [#allocation12], %s4287_s2 }
  0x47   : > { %617 = vmatpush.bf16.msra.mxu0 %v4859_v1  ;;  %v4910_v14 = vld [vmem:[#allocation8 + $0xf8] sm:$0xff]  ;;  %v4843_v15 = vld [vmem:[%s5612_s25 + $0x30] sm:$0xff]  ;;  %vm5634_vm2 = vmand %vm776_vm0, %vm777_vm1  ;;  %vm1381_vm13 = vsmask.f32 7440  ;;  %s4967_s2 = sshll.u32 %s5498_s13, 7  ;;  %s4162_s28 = sshll.u32 %s6815_s1, 4  ;;  %s4163_s28 = int_to_ptr.vmem [resolvable:$true] %s4162_s28 }
  0x48   : > { %2408 = vmatpush.bf16.msra.mxu1 %v4910_v14  ;;  %v4909_v16 = vld [vmem:[#allocation8 + $0xf0] sm:$0xff]  ;;  %v4926_v20 = vld [vmem:[#allocation8 + $0x178] sm:$0xff]  ;;  %v4908_v21 = vld [vmem:[#allocation8 + $0xe8] sm:$0xff]  ;;  %s4161_s20 = scalar_lea.hbm %s6994_s9, %s4967_s2  ;;  %s4150_s13 = scalar_lea.sflag [#allocation5], %s5606_s24 }
  0x49   : > { %v782_v18 = vld [vmem:[#allocation2 + $0xc] sm:$0x1]  ;;  %vm5641_vm4 = vmand %vm776_vm0, %vm833_vm3  ;;  %2586 = vmatpush.bf16.msra.mxu3 %v4926_v20  ;;  %v838_v23 = vld [vmem:[#allocation2 + $0x14] sm:$0x1]  ;;  %s4164_s19 = sshll.u32 %s4161_s20, 4  ;;  %s5362_s23 = scalar_lea.hbm %s6994_s9, 256  ;;  %s4165_s19 = int_to_ptr.hbm [resolvable:$true] %s4164_s19 }
  0x4a   : > { %v783_v19 = vsel %vm5634_vm2, 0, %v782_v18  ;;  %v7065_v22 = vsel %vm5641_vm4, 4294967295, %v7064_v22  ;;  %v4918_v24 = vld [vmem:[#allocation8 + $0x138] sm:$0xff]  ;;  %v4925_v25 = vld [vmem:[#allocation8 + $0x170] sm:$0xff]  ;;  %v839_v26 = vsel %vm5641_vm4, 0, %v838_v23  ;;  %v4907_v27 = vld [vmem:[#allocation8 + $0xe0] sm:$0xff] }
  0x4b   : > { %618 = vmatpush.bf16.msra.mxu0 %v4858_v2  ;;  %784 = vst [vmem:[#allocation2 + $0xc] sm:$0x1] %v783_v19  ;;  %2497 = vmatpush.bf16.msra.mxu2 %v4918_v24  ;;  %v4844_v28 = vld [vmem:[%s5612_s25 + $0x38] sm:$0xff]  ;;  %v4917_v29 = vld [vmem:[#allocation8 + $0x130] sm:$0xff]  ;;  %v4924_v30 = vld [vmem:[#allocation8 + $0x168] sm:$0xff]  ;;  %s5356_s18 = sshra.s32 %s4165_s19, 4  ;;  %s5357_s18 = int_to_ptr.hbm [resolvable:$true] %s5356_s18 }
  0x4c   : > { %2409 = vmatpush.bf16.msra.mxu1 %v4909_v16  ;;  %7066 = vst [vmem:[#allocation17_spill] sm:$0xff] %v7065_v22  ;;  %v4906_v31 = vld [vmem:[#allocation8 + $0xd8] sm:$0xff]  ;;  %v4916_v32 = vld [vmem:[#allocation8 + $0x128] sm:$0xff]  ;;  %v4923_v33 = vld [vmem:[#allocation8 + $0x160] sm:$0xff]  ;;  %s5358_s27 = scalar_lea.hbm %s5357_s18, 128  ;;  %p5363_p11 = scmp.lt.s32.totalorder %s5357_s18, %s6994_s9 }
  0x4d   : > { %840 = vst [vmem:[#allocation2 + $0x14] sm:$0x1] %v839_v26  ;;  %2587 = vmatpush.bf16.msra.mxu3 %v4925_v25  ;;  %v4905_v34 = vld [vmem:[#allocation8 + $0xd0] sm:$0xff]  ;;  %v785_v35 = vld [vmem:[#allocation2 + $0x18] sm:$0x1]  ;;  %v4922_v38 = vld [vmem:[#allocation8 + $0x158] sm:$0xff]  ;;  %p5359_p1 = scmp.ne.s32.totalorder %s5357_s18, %s5358_s27  ;;  %p5364_p2 = scmp.lt.s32.totalorder %s5362_s23, %s5358_s27 }
  0x4e   : > { %v786_v36 = vsel %vm5634_vm2, 0, %v785_v35  ;;  %v4915_v37 = vld [vmem:[#allocation8 + $0x120] sm:$0xff]  ;;  %v4904_v39 = vld [vmem:[#allocation8 + $0xc8] sm:$0xff]  ;;  %v4914_v40 = vld [vmem:[#allocation8 + $0x118] sm:$0xff] }
  0x4f   : > { %619 = vmatpush.bf16.msra.mxu0 %v4857_v3  ;;  %2498 = vmatpush.bf16.msra.mxu2 %v4917_v29  ;;  %787 = vst [vmem:[#allocation2 + $0x18] sm:$0x1] %v786_v36  ;;  %v4921_v41 = vld [vmem:[#allocation8 + $0x150] sm:$0xff]  ;;  %v4903_v42 = vld [vmem:[#allocation8 + $0xc0] sm:$0xff]  ;;  %v841_v43 = vld [vmem:[#allocation2 + $0x20] sm:$0x1]  ;;  %p5360_p4 = pnand %p5359_p1, %p5573_p3  ;;  %p5365_p9 = por %p5364_p2, %p5363_p11 }
  0x50   : > { %2410 = vmatpush.bf16.msra.mxu1 %v4908_v21  ;;  %v5653_v44 = vld [vmem:[%s6989_s4] ss:$0 sm:$0xff]  ;;  %v842_v45 = vsel %vm5641_vm4, 0, %v841_v43  ;;  %v4845_v46 = vld [vmem:[%s5612_s25 + $0x40] sm:$0xff]  ;;  %v4913_v47 = vld [vmem:[#allocation8 + $0x110] sm:$0xff] }
  0x51   : > { %2588 = vmatpush.bf16.msra.mxu3 %v4924_v30  ;;  %843 = vst [vmem:[#allocation2 + $0x20] sm:$0x1] %v842_v45  ;;  %v4920_v48 = vld [vmem:[#allocation8 + $0x148] sm:$0xff]  ;;  %v4919_v53 = vld [vmem:[#allocation8 + $0x140] sm:$0xff]  ;;  %v4886_v58 = vld [vmem:[#allocation8 + $0x38] sm:$0xff]  ;;  %p5361_p8 = pneg %p5360_p4 }
  0x52   : > { %v4912_v52 = vld [vmem:[#allocation8 + $0x108] sm:$0xff]  ;;  %v4911_v59 = vld [vmem:[#allocation8 + $0x100] sm:$0xff]  ;;  %vm5663_vm6 = vmand %vm1212_vm5, %vm833_vm3 }
  0x53   : > { %620 = vmatpush.bf16.msra.mxu0 %v4856_v4  ;;  %2499 = vmatpush.bf16.msra.mxu2 %v4916_v32  ;;  %v788_v54 = vld [vmem:[#allocation2 + $0x24] sm:$0x1]  ;;  %v1214_v1 = vld [vmem:[#allocation2 + $0xc] sm:$0xf]  ;;  %vm5674_vm8 = vmor %vm777_vm1, %vm889_vm7  ;;  %p5366_p10 = pnand %p5365_p9, %p5361_p8 }
  0x54   : > { %2411 = vmatpush.bf16.msra.mxu1 %v4907_v27  ;;  %v789_v56 = vsel %vm5634_vm2, 0, %v788_v54  ;;  %v844_v4 = vld [vmem:[#allocation2 + $0x2c] sm:$0x1]  ;;  %v1218_v16 = vld [vmem:[#allocation2 + $0x14] sm:$0x1]  ;;  %vm5685_vm11 = vmor %vm1815_vm9, %vm1816_vm10 }
  0x55   : > { %2589 = vmatpush.bf16.msra.mxu3 %v4923_v33  ;;  %790 = vst [vmem:[#allocation2 + $0x24] sm:$0x1] %v789_v56  ;;  %v791_v27 = vld [vmem:[#allocation2 + $0x30] sm:$0x1]  ;;  %vm5697_vm14 = vmor %vm1380_vm12, %vm1381_vm13 }
  0x57   : > { %621 = vmatpush.bf16.msra.mxu0 %v4855_v5  ;;  %2500 = vmatpush.bf16.msra.mxu2 %v4915_v37 }
  0x58   : > { %2412 = vmatpush.bf16.msra.mxu1 %v4906_v31  ;;  %v792_v31 = vsel %vm5634_vm2, 0, %v791_v27 }
  0x59   : > { %2590 = vmatpush.bf16.msra.mxu3 %v4922_v38  ;;  %793 = vst [vmem:[#allocation2 + $0x30] sm:$0x1] %v792_v31  ;;  %v1221_v38 = vld [vmem:[#allocation2 + $0x18] sm:$0xf] }
  0x5b   : > { %622 = vmatpush.bf16.msra.mxu0 %v4854_v6  ;;  %2501 = vmatpush.bf16.msra.mxu2 %v4914_v40 }
  0x5c   : > { %2413 = vmatpush.bf16.msra.mxu1 %v4905_v34 }
  0x5d   : > { %2591 = vmatpush.bf16.msra.mxu3 %v4921_v41 }
  0x5f   : > { %623 = vmatpush.bf16.msra.mxu0 %v4853_v7  ;;  %2502 = vmatpush.bf16.msra.mxu2 %v4913_v47  ;;  %v845_v7 = vsel %vm5641_vm4, 0, %v844_v4  ;;  %v4847_v47 = vld [vmem:[%s5612_s25 + $0x50] sm:$0xff] }
  0x60   : > { %2414 = vmatpush.bf16.msra.mxu1 %v4904_v39  ;;  %846 = vst [vmem:[#allocation2 + $0x2c] sm:$0x1] %v845_v7 }
  0x61   : > { %2592 = vmatpush.bf16.msra.mxu3 %v4920_v48 }
  0x62   : > { %624 = vmatmul.bf16.vlgmr.msra.gmra.mxu0 %v4837_v8  ;;  %v4894_v8 = vld [vmem:[#allocation8 + $0x78] sm:$0xff] }
  0x63   : > { %2503 = vmatpush.bf16.msra.mxu2 %v4912_v52  ;;  %2819 = vmatpush.bf16.msrb.mxu0 %v4886_v58 }
  0x64   : > { %2415 = vmatpush.bf16.msra.mxu1 %v4903_v42  ;;  %v7071_v42 = vmov 0 }
  0x65   : > { %2593 = vmatpush.bf16.msra.mxu3 %v4919_v53  ;;  %v7072_v42 = vsel %vm5685_vm11, 4294967295, %v7071_v42 }
  0x66   : > { %7073 = vst [vmem:[#allocation18_spill] sm:$0xff] %v7072_v42  ;;  %v4966_v42 = vld [vmem:[#allocation11 + $0x38] sm:$0xff] }
  0x67   : > { %2504 = vmatpush.bf16.msra.mxu2 %v4911_v59 }
  0x68   : > { %2908 = vmatpush.bf16.msrb.mxu1 %v4894_v8 }
  0x72   : > { %629 = vmatmul.bf16.gmra.mxu0 %v4838_v9 }
  0x82   : > { %634 = vmatmul.bf16.gmra.mxu0 %v4839_v10  ;;  %v4846_v10 = vld [vmem:[%s5612_s25 + $0x48] sm:$0xff] }
  0x92   : > { %639 = vmatmul.bf16.gmra.mxu0 %v4840_v11 }
  0xa2   : > { %644 = vmatmul.bf16.gmra.mxu0 %v4841_v12 }
  0xb2   : > { %649 = vmatmul.bf16.gmra.mxu0 %v4842_v13 }
  0xc2   : > { %654 = vmatmul.bf16.gmra.mxu0 %v4843_v15 }
  0xd2   : > { %659 = vmatmul.bf16.gmra.mxu0 %v4844_v28 }
  0xdf   : > { %v625_v49 = vpop.f32.mrf.mxu0 }
  0xe0   : > { %v626_v50 = vadd.f32 %v5653_v44, %v625_v49 }
  0xe2   : > { %v705_v51 = vmax.f32 %v626_v50, 0.0  ;;  %664 = vmatmul.bf16.gmra.mxu0 %v4845_v46 }
  0xe4   : > { %v737_v55 = vpack.c.bf16 %v705_v51, %v705_v51 }
  0xe6   : > { %v892_v57 = vshrl.u32 %v737_v55, 16  ;;  %v895_v62 = vshll.u32 %v737_v55, 16 }
  0xe7   : > { %v627_v60 = vpop.f32.mrf.mxu0 }
  0xe8   : > { %v894_v61 = vrot.slane %v892_v57, 7  ;;  %v628_v63 = vadd.f32 %v5653_v44, %v627_v60  ;;  %v847_v57 = vld [vmem:[#allocation2 + $0x38] sm:$0x1] }
  0xea   : > { %v897_v2 = vor.u32 %v895_v62, %v894_v61  ;;  %v706_v3 = vmax.f32 %v628_v63, 0.0  ;;  %v898_v18 = vrot.slane %v894_v61, 4 }
  0xec   : > { %v1215_v5 = vsel %vm5663_vm6, %v897_v2, %v1214_v1  ;;  %v738_v6 = vpack.c.bf16 %v706_v3, %v706_v3  ;;  %v7074_v3 = vmov 0 }
  0xed   : > { %1216 = vst [vmem:[#allocation2 + $0xc] sm:$0xf] %v1215_v5  ;;  %v7075_v3 = vsel %vm5697_vm14, 4294967295, %v7074_v3  ;;  %v1225_v5 = vld [vmem:[#allocation2 + $0x20] sm:$0x1] }
  0xee   : > { %v900_v9 = vshrl.u32 %v738_v6, 16  ;;  %v903_v13 = vshll.u32 %v738_v6, 16  ;;  %7076 = vst [vmem:[#allocation19_spill] sm:$0xff] %v7075_v3 }
  0xef   : > { %v630_v11 = vpop.f32.mrf.mxu0 }
  0xf0   : > { %v902_v12 = vrot.slane %v900_v9, 7  ;;  %v631_v14 = vadd.f32 %v5653_v44, %v630_v11  ;;  %v848_v9 = vsel %vm5641_vm4, 0, %v847_v57 }
  0xf1   : > { %849 = vst [vmem:[#allocation2 + $0x38] sm:$0x1] %v848_v9 }
  0xf2   : > { %v905_v19 = vor.u32 %v903_v13, %v902_v12  ;;  %v907_v20 = vrot.slane %v902_v12, 4  ;;  %v707_v21 = vmax.f32 %v631_v14, 0.0  ;;  %669 = vmatmul.bf16.gmra.mxu0 %v4846_v10 }
  0xf4   : > { %v906_v23 = vsel %vm5674_vm8, %v898_v18, %v905_v19  ;;  %v1219_v24 = vsel %vm5634_vm2, %v907_v20, %v1218_v16  ;;  %v739_v25 = vpack.c.bf16 %v707_v21, %v707_v21  ;;  %v1329_v26 = vld [vmem:[#allocation2 + $0xc] sm:$0xf] }
  0xf5   : > { %1217 = vst [vmem:[#allocation2 + $0x10] sm:$0xf] %v906_v23  ;;  %v1408_v28 = vshrl.u32 %v1329_v26, 16  ;;  %v1411_v30 = vshll.u32 %v1329_v26, 16  ;;  %v4390_v49 = vrot.slane %v1329_v26, 9 }
  0xf6   : > { %1220 = vst [vmem:[#allocation2 + $0x14] sm:$0x1] %v1219_v24  ;;  %v909_v29 = vshrl.u32 %v739_v25, 16  ;;  %v912_v35 = vshll.u32 %v739_v25, 16  ;;  %v794_v24 = vld [vmem:[#allocation2 + $0x3c] sm:$0x1] }
  0xf7   : > { %v632_v32 = vpop.f32.mrf.mxu0  ;;  %v1410_v33 = vrot.slane %v1408_v28, 4  ;;  %v1413_v37 = vrot.slane %v1411_v30, 5  ;;  %v4885_v30 = vld [vmem:[#allocation8 + $0x30] sm:$0xff]  ;;  %v795_v31 = vsel %vm5634_vm2, 0, %v794_v24 }
  0xf8   : > { %v911_v34 = vrot.slane %v909_v29, 7  ;;  %v633_v36 = vadd.f32 %v5653_v44, %v632_v32  ;;  %796 = vst [vmem:[#allocation2 + $0x3c] sm:$0x1] %v795_v31  ;;  %2820 = vmatpush.bf16.msrb.mxu0 %v4885_v30  ;;  %v797_v30 = vld [vmem:[#allocation2 + $0x48] sm:$0x1] }
  0xf9   : > { %v1414_v41 = vor.u32 %v1413_v37, %v1410_v33 }
  0xfa   : > { %v914_v39 = vor.u32 %v912_v35, %v911_v34  ;;  %v708_v40 = vmax.f32 %v633_v36, 0.0  ;;  %v915_v53 = vrot.slane %v911_v34, 4 }
  0xfb   : > { %v1415_v55 = vrot.slane %v1414_v41, 4  ;;  %v1228_v41 = vld [vmem:[#allocation2 + $0x24] sm:$0xf] }
  0xfc   : > { %v1222_v43 = vsel %vm5663_vm6, %v914_v39, %v1221_v38  ;;  %v740_v45 = vpack.c.bf16 %v708_v40, %v708_v40  ;;  %v4862_v46 = vld [vmem:[#allocation2 + $0xc] sm:$0xff] }
  0xfd   : > { %v1330_v48 = vld [vmem:[#allocation2 + $0x10] sm:$0xf]  ;;  %1223 = vst [vmem:[#allocation2 + $0x18] sm:$0xf] %v1222_v43  ;;  %v1331_v50 = vld [vmem:[#allocation2 + $0x14] sm:$0x1]  ;;  %2416 = vmatmul.bf16.vlgmr.msra.gmra.mxu1 %v4862_v46 }
  0xfe   : > { %v1827_v51 = vrot.slane %v1330_v48, 5  ;;  %v1417_v52 = vshll.u32 %v1330_v48, 16  ;;  %v917_v54 = vshrl.u32 %v740_v45, 16  ;;  %v1421_v56 = vshrl.u32 %v1330_v48, 16 }
  0xff   : > { %v635_v58 = vpop.f32.mrf.mxu0  ;;  %v1830_v61 = vrot.slane %v1331_v50, 5  ;;  %v920_v1 = vshll.u32 %v740_v45, 16  ;;  %v1427_v8 = vshll.u32 %v1331_v50, 16 }
 0x100   : > { %v1828_v59 = vsel %vm5685_vm11, %v4390_v49, %v1827_v51  ;;  %v1829_v60 = vrot.slane %v1827_v51, 4  ;;  %v1419_v62 = vrot.slane %v1417_v52, 5  ;;  %v919_v63 = vrot.slane %v917_v54, 7  ;;  %v4848_v51 = vld [vmem:[%s5612_s25 + $0x58] sm:$0xff] }
 0x101   : > { %v636_v2 = vadd.f32 %v5653_v44, %v635_v58  ;;  %v1423_v4 = vrot.slane %v1421_v56, 4  ;;  %v2060_v7 = vunpack.c.l.b16 %v1828_v59  ;;  %v1429_v26 = vrot.slane %v1427_v8, 5 }
 0x102   : > { %v1831_v6 = vsel %vm5685_vm11, %v1829_v60, %v1830_v61  ;;  %v922_v10 = vor.u32 %v920_v1, %v919_v63  ;;  %v924_v11 = vrot.slane %v919_v63, 4  ;;  %674 = vmatmul.bf16.gmra.mxu0 %v4847_v47  ;;  %v1420_v14 = vsel %vm5697_vm14, %v1415_v55, %v1419_v62  ;;  %v850_v61 = vld [vmem:[#allocation2 + $0x44] sm:$0x1] }
 0x103   : > { %v709_v12 = vmax.f32 %v636_v2, 0.0  ;;  %v2061_v13 = vunpack.c.l.b16 %v1831_v6  ;;  %v1424_v16 = vor.u32 %v1423_v4, %v1419_v62  ;;  %v1996_v34 = vunpack.c.l.b16 %v1420_v14 }
 0x104   : > { %v923_v18 = vsel %vm5674_vm8, %v915_v53, %v922_v10  ;;  %v1226_v19 = vsel %vm5634_vm2, %v924_v11, %v1225_v5  ;;  %v1332_v23 = vld [vmem:[#allocation2 + $0x18] sm:$0xf]  ;;  %v4893_v5 = vld [vmem:[#allocation8 + $0x70] sm:$0xff]  ;;  %v851_v14 = vsel %vm5641_vm4, 0, %v850_v61 }
 0x105   : > { %v741_v20 = vpack.c.bf16 %v709_v12, %v709_v12  ;;  %v5711_v21 = vpack.c.b16 %v2061_v13, %v2060_v7  ;;  %1224 = vst [vmem:[#allocation2 + $0x1c] sm:$0xf] %v923_v18  ;;  %v1425_v25 = vrot.slane %v1424_v16, 4  ;;  %v1432_v27 = vshrl.u32 %v1332_v23, 16  ;;  %v1232_v10 = vld [vmem:[#allocation2 + $0x2c] sm:$0x1]  ;;  %2909 = vmatpush.bf16.msrb.mxu1 %v4893_v5 }
 0x106   : > { %v1435_v28 = vshll.u32 %v1332_v23, 16  ;;  %1227 = vst [vmem:[#allocation2 + $0x20] sm:$0x1] %v1226_v19  ;;  %v4391_v53 = vrot.slane %v1332_v23, 9  ;;  %v853_v5 = vld [vmem:[#allocation2 + $0x50] sm:$0x1] }
 0x107   : > { %v926_v29 = vshrl.u32 %v741_v20, 16  ;;  %2594 = vmatmul.bf16.vlgmr.msra.gmra.mxu3 %v5711_v21  ;;  %v637_v32 = vpop.f32.mrf.mxu0  ;;  %v1430_v33 = vsel %vm5697_vm14, %v1425_v25, %v1429_v26  ;;  %v1434_v35 = vrot.slane %v1432_v27, 4  ;;  %v929_v38 = vshll.u32 %v741_v20, 16  ;;  %852 = vst [vmem:[#allocation2 + $0x44] sm:$0x1] %v851_v14 }
 0x108   : > { %v1437_v36 = vrot.slane %v1435_v28, 5  ;;  %v638_v39 = vadd.f32 %v5653_v44, %v637_v32  ;;  %v1997_v40 = vunpack.c.l.b16 %v1430_v33 }
 0x109   : > { %v928_v37 = vrot.slane %v926_v29, 7 }
 0x10a   : > { %v710_v45 = vmax.f32 %v638_v39, 0.0  ;;  %v5719_v46 = vpack.c.b16 %v1997_v40, %v1996_v34  ;;  %v1438_v47 = vor.u32 %v1437_v36, %v1434_v35  ;;  %v798_v36 = vsel %vm5634_vm2, 0, %v797_v30 }
 0x10b   : > { %v931_v43 = vor.u32 %v929_v38, %v928_v37  ;;  %v932_v57 = vrot.slane %v928_v37, 4  ;;  %799 = vst [vmem:[#allocation2 + $0x48] sm:$0x1] %v798_v36  ;;  %v800_v36 = vld [vmem:[#allocation2 + $0x54] sm:$0x1] }
 0x10c   : > { %v742_v49 = vpack.c.bf16 %v710_v45, %v710_v45  ;;  %2505 = vmatmul.bf16.vlgmr.msra.gmra.mxu2 %v5719_v46  ;;  %v4863_v50 = vld [vmem:[#allocation2 + $0x18] sm:$0xff]  ;;  %v1439_v59 = vrot.slane %v1438_v47, 4 }
 0x10d   : > { %v1229_v48 = vsel %vm5663_vm6, %v931_v43, %v1228_v41  ;;  %v1333_v52 = vld [vmem:[#allocation2 + $0x1c] sm:$0xf]  ;;  %v1334_v54 = vld [vmem:[#allocation2 + $0x20] sm:$0x1]  ;;  %2421 = vmatmul.bf16.gmra.mxu1 %v4863_v50 }
 0x10e   : > { %1230 = vst [vmem:[#allocation2 + $0x24] sm:$0xf] %v1229_v48  ;;  %v1834_v55 = vrot.slane %v1333_v52, 5  ;;  %v1441_v56 = vshll.u32 %v1333_v52, 16  ;;  %v934_v58 = vshrl.u32 %v742_v49, 16  ;;  %v1445_v60 = vshrl.u32 %v1333_v52, 16 }
 0x10f   : > { %v640_v62 = vpop.f32.mrf.mxu0  ;;  %v1837_v2 = vrot.slane %v1334_v54, 5  ;;  %v937_v7 = vshll.u32 %v742_v49, 16  ;;  %v1451_v13 = vshll.u32 %v1334_v54, 16  ;;  %v1235_v49 = vld [vmem:[#allocation2 + $0x30] sm:$0xf] }
 0x110   : > { %v1835_v63 = vsel %vm5685_vm11, %v4391_v53, %v1834_v55  ;;  %v1836_v1 = vrot.slane %v1834_v55, 4  ;;  %v1443_v4 = vrot.slane %v1441_v56, 5  ;;  %v936_v6 = vrot.slane %v934_v58, 7 }
 0x111   : > { %v641_v8 = vadd.f32 %v5653_v44, %v640_v62  ;;  %v1447_v9 = vrot.slane %v1445_v60, 4  ;;  %v2062_v12 = vunpack.c.l.b16 %v1835_v63  ;;  %v1453_v32 = vrot.slane %v1451_v13, 5 }
 0x112   : > { %v1838_v11 = vsel %vm5685_vm11, %v1836_v1, %v1837_v2  ;;  %v939_v16 = vor.u32 %v937_v7, %v936_v6  ;;  %v941_v18 = vrot.slane %v936_v6, 4  ;;  %679 = vmatmul.bf16.gmra.mxu0 %v4848_v51  ;;  %v1444_v23 = vsel %vm5697_vm14, %v1439_v59, %v1443_v4 }
 0x113   : > { %v711_v19 = vmax.f32 %v641_v8, 0.0  ;;  %v2063_v20 = vunpack.c.l.b16 %v1838_v11  ;;  %v1448_v24 = vor.u32 %v1447_v9, %v1443_v4  ;;  %v1998_v39 = vunpack.c.l.b16 %v1444_v23 }
 0x114   : > { %v940_v25 = vsel %vm5674_vm8, %v932_v57, %v939_v16  ;;  %v1233_v26 = vsel %vm5634_vm2, %v941_v18, %v1232_v10  ;;  %v4849_v57 = vld [vmem:[%s5612_s25 + $0x60] sm:$0xff]  ;;  %v854_v23 = vsel %vm5641_vm4, 0, %v853_v5 }
 0x115   : > { %v743_v27 = vpack.c.bf16 %v711_v19, %v711_v19  ;;  %v5738_v28 = vpack.c.b16 %v2063_v20, %v2062_v12  ;;  %v1335_v29 = vld [vmem:[#allocation2 + $0x24] sm:$0xf]  ;;  %1231 = vst [vmem:[#allocation2 + $0x28] sm:$0xf] %v940_v25  ;;  %v1449_v31 = vrot.slane %v1448_v24, 4 }
 0x116   : > { %v1456_v33 = vshrl.u32 %v1335_v29, 16  ;;  %v1459_v34 = vshll.u32 %v1335_v29, 16  ;;  %1234 = vst [vmem:[#allocation2 + $0x2c] sm:$0x1] %v1233_v26  ;;  %v4392_v59 = vrot.slane %v1335_v29, 9 }
 0x117   : > { %v943_v35 = vshrl.u32 %v743_v27, 16  ;;  %2599 = vmatmul.bf16.gmra.mxu3 %v5738_v28  ;;  %v642_v37 = vpop.f32.mrf.mxu0  ;;  %v1454_v38 = vsel %vm5697_vm14, %v1449_v31, %v1453_v32  ;;  %v946_v45 = vshll.u32 %v743_v27, 16  ;;  %v1239_v16 = vld [vmem:[#allocation2 + $0x38] sm:$0x1]  ;;  %855 = vst [vmem:[#allocation2 + $0x50] sm:$0x1] %v854_v23 }
 0x118   : > { %v1458_v40 = vrot.slane %v1456_v33, 4  ;;  %v1461_v41 = vrot.slane %v1459_v34, 5  ;;  %v643_v47 = vadd.f32 %v5653_v44, %v642_v37  ;;  %v1999_v48 = vunpack.c.l.b16 %v1454_v38  ;;  %v4892_v23 = vld [vmem:[#allocation8 + $0x68] sm:$0xff] }
 0x119   : > { %v945_v43 = vrot.slane %v943_v35, 7  ;;  %2910 = vmatpush.bf16.msrb.mxu1 %v4892_v23  ;;  %v4851_v23 = vld [vmem:[%s5612_s25 + $0x70] sm:$0xff] }
 0x11a   : > { %v712_v51 = vmax.f32 %v643_v47, 0.0  ;;  %v5746_v52 = vpack.c.b16 %v1999_v48, %v1998_v39  ;;  %v1462_v53 = vor.u32 %v1461_v41, %v1458_v40 }
 0x11b   : > { %v948_v50 = vor.u32 %v946_v45, %v945_v43  ;;  %v949_v63 = vrot.slane %v945_v43, 4  ;;  %v4884_v43 = vld [vmem:[#allocation8 + $0x28] sm:$0xff]  ;;  %v801_v45 = vsel %vm5634_vm2, 0, %v800_v36 }
 0x11c   : > { %v744_v55 = vpack.c.bf16 %v712_v51, %v712_v51  ;;  %2510 = vmatmul.bf16.gmra.mxu2 %v5746_v52  ;;  %v4864_v56 = vld [vmem:[#allocation2 + $0x24] sm:$0xff]  ;;  %v1463_v2 = vrot.slane %v1462_v53, 4  ;;  %802 = vst [vmem:[#allocation2 + $0x54] sm:$0x1] %v801_v45  ;;  %2821 = vmatpush.bf16.msrb.mxu0 %v4884_v43  ;;  %v4882_v43 = vld [vmem:[#allocation8 + $0x18] sm:$0xff] }
 0x11d   : > { %v1236_v54 = vsel %vm5663_vm6, %v948_v50, %v1235_v49  ;;  %v1336_v58 = vld [vmem:[#allocation2 + $0x28] sm:$0xf]  ;;  %v1337_v60 = vld [vmem:[#allocation2 + $0x2c] sm:$0x1]  ;;  %2426 = vmatmul.bf16.gmra.mxu1 %v4864_v56 }
 0x11e   : > { %1237 = vst [vmem:[#allocation2 + $0x30] sm:$0xf] %v1236_v54  ;;  %v1841_v61 = vrot.slane %v1336_v58, 5  ;;  %v1465_v62 = vshll.u32 %v1336_v58, 16  ;;  %v951_v1 = vshrl.u32 %v744_v55, 16  ;;  %v1469_v4 = vshrl.u32 %v1336_v58, 16 }
 0x11f   : > { %v645_v6 = vpop.f32.mrf.mxu0  ;;  %v1844_v9 = vrot.slane %v1337_v60, 5  ;;  %v954_v12 = vshll.u32 %v744_v55, 16  ;;  %v1475_v20 = vshll.u32 %v1337_v60, 16 }
 0x120   : > { %v1842_v7 = vsel %vm5685_vm11, %v4392_v59, %v1841_v61  ;;  %v1843_v8 = vrot.slane %v1841_v61, 4  ;;  %v1467_v10 = vrot.slane %v1465_v62, 5  ;;  %v953_v11 = vrot.slane %v951_v1, 7 }
 0x121   : > { %v646_v13 = vadd.f32 %v5653_v44, %v645_v6  ;;  %v1471_v14 = vrot.slane %v1469_v4, 4  ;;  %v2064_v19 = vunpack.c.l.b16 %v1842_v7  ;;  %v1477_v38 = vrot.slane %v1475_v20, 5 }
 0x122   : > { %v1845_v18 = vsel %vm5685_vm11, %v1843_v8, %v1844_v9  ;;  %v956_v24 = vor.u32 %v954_v12, %v953_v11  ;;  %v958_v25 = vrot.slane %v953_v11, 4  ;;  %684 = vmatmul.bf16.gmra.mxu0 %v4849_v57  ;;  %v1468_v29 = vsel %vm5697_vm14, %v1463_v2, %v1467_v10  ;;  %v1242_v57 = vld [vmem:[#allocation2 + $0x3c] sm:$0xf]  ;;  %v4850_v2 = vld [vmem:[%s5612_s25 + $0x68] sm:$0xff] }
 0x123   : > { %v713_v26 = vmax.f32 %v646_v13, 0.0  ;;  %v2065_v27 = vunpack.c.l.b16 %v1845_v18  ;;  %v1472_v30 = vor.u32 %v1471_v14, %v1467_v10  ;;  %v2000_v49 = vunpack.c.l.b16 %v1468_v29  ;;  %v856_v13 = vld [vmem:[#allocation2 + $0x5c] sm:$0x1] }
 0x124   : > { %v957_v31 = vsel %vm5674_vm8, %v949_v63, %v956_v24  ;;  %v1240_v32 = vsel %vm5634_vm2, %v958_v25, %v1239_v16  ;;  %v4883_v24 = vld [vmem:[#allocation8 + $0x20] sm:$0xff] }
 0x125   : > { %v745_v33 = vpack.c.bf16 %v713_v26, %v713_v26  ;;  %v5765_v34 = vpack.c.b16 %v2065_v27, %v2064_v19  ;;  %v1338_v35 = vld [vmem:[#allocation2 + $0x30] sm:$0xf]  ;;  %1238 = vst [vmem:[#allocation2 + $0x34] sm:$0xf] %v957_v31  ;;  %v1473_v37 = vrot.slane %v1472_v30, 4  ;;  %2822 = vmatpush.bf16.msrb.mxu0 %v4883_v24 }
 0x126   : > { %v1480_v39 = vshrl.u32 %v1338_v35, 16  ;;  %v1483_v40 = vshll.u32 %v1338_v35, 16  ;;  %1241 = vst [vmem:[#allocation2 + $0x38] sm:$0x1] %v1240_v32  ;;  %v4393_v5 = vrot.slane %v1338_v35, 9  ;;  %v857_v35 = vsel %vm5641_vm4, 0, %v856_v13 }
 0x127   : > { %v960_v41 = vshrl.u32 %v745_v33, 16  ;;  %2604 = vmatmul.bf16.gmra.mxu3 %v5765_v34  ;;  %v647_v47 = vpop.f32.mrf.mxu0  ;;  %v1478_v48 = vsel %vm5697_vm14, %v1473_v37, %v1477_v38  ;;  %v963_v54 = vshll.u32 %v745_v33, 16  ;;  %v1246_v30 = vld [vmem:[#allocation2 + $0x44] sm:$0x1]  ;;  %858 = vst [vmem:[#allocation2 + $0x5c] sm:$0x1] %v857_v35 }
 0x128   : > { %v1482_v50 = vrot.slane %v1480_v39, 4  ;;  %v1485_v51 = vrot.slane %v1483_v40, 5  ;;  %v648_v55 = vadd.f32 %v5653_v44, %v647_v47  ;;  %v2001_v56 = vunpack.c.l.b16 %v1478_v48 }
 0x129   : > { %v962_v53 = vrot.slane %v960_v41, 7  ;;  %2823 = vmatpush.bf16.msrb.mxu0 %v4882_v43  ;;  %v4879_v43 = vld [vmem:[#allocation8] sm:$0xff] }
 0x12a   : > { %v714_v59 = vmax.f32 %v648_v55, 0.0  ;;  %v5773_v60 = vpack.c.b16 %v2001_v56, %v2000_v49  ;;  %v1486_v61 = vor.u32 %v1485_v51, %v1482_v50  ;;  %v803_v51 = vld [vmem:[#allocation2 + $0x60] sm:$0x1] }
 0x12b   : > { %v965_v58 = vor.u32 %v963_v54, %v962_v53  ;;  %v966_v9 = vrot.slane %v962_v53, 4  ;;  %v5424_v53 = vmov 0  }
 0x12c   : > { %v746_v63 = vpack.c.bf16 %v714_v59, %v714_v59  ;;  %2515 = vmatmul.bf16.gmra.mxu2 %v5773_v60  ;;  %v4865_v1 = vld [vmem:[#allocation2 + $0x30] sm:$0xff]  ;;  %v1487_v11 = vrot.slane %v1486_v61, 4  ;;  %769 = vst [vmem:[#allocation2] sm:$0xf] %v5424_v53  ;;  %v804_v59 = vsel %vm5634_vm2, 0, %v803_v51 }
 0x12d   : > { %v1243_v62 = vsel %vm5663_vm6, %v965_v58, %v1242_v57  ;;  %v1339_v4 = vld [vmem:[#allocation2 + $0x34] sm:$0xf]  ;;  %v1340_v6 = vld [vmem:[#allocation2 + $0x38] sm:$0x1]  ;;  %2431 = vmatmul.bf16.gmra.mxu1 %v4865_v1  ;;  %805 = vst [vmem:[#allocation2 + $0x60] sm:$0x1] %v804_v59 }
 0x12e   : > { %1244 = vst [vmem:[#allocation2 + $0x3c] sm:$0xf] %v1243_v62  ;;  %v1848_v7 = vrot.slane %v1339_v4, 5  ;;  %v1489_v8 = vshll.u32 %v1339_v4, 16  ;;  %v968_v10 = vshrl.u32 %v746_v63, 16  ;;  %v1493_v12 = vshrl.u32 %v1339_v4, 16 }
 0x12f   : > { %v650_v14 = vpop.f32.mrf.mxu0  ;;  %v1851_v19 = vrot.slane %v1340_v6, 5  ;;  %v971_v26 = vshll.u32 %v746_v63, 16  ;;  %v1499_v33 = vshll.u32 %v1340_v6, 16  ;;  %v4881_v4 = vld [vmem:[#allocation8 + $0x10] sm:$0xff]  ;;  %770 = vst [vmem:[#allocation2 + $0x4] sm:$0xf] %v5424_v53 }
 0x130   : > { %v1849_v16 = vsel %vm5685_vm11, %v4393_v5, %v1848_v7  ;;  %v1850_v18 = vrot.slane %v1848_v7, 4  ;;  %v1491_v20 = vrot.slane %v1489_v8, 5  ;;  %v970_v25 = vrot.slane %v968_v10, 7  ;;  %2824 = vmatpush.bf16.msrb.mxu0 %v4881_v4  ;;  %771 = vst [vmem:[#allocation2 + $0x8] sm:$0x1] %v5424_v53 }
 0x131   : > { %v651_v27 = vadd.f32 %v5653_v44, %v650_v14  ;;  %v1495_v29 = vrot.slane %v1493_v12, 4  ;;  %v2066_v32 = vunpack.c.l.b16 %v1849_v16  ;;  %v1501_v55 = vrot.slane %v1499_v33, 5  ;;  %773 = vst [vmem:[#allocation2 + $0xcc] sm:$0xf] %v5424_v53  ;;  %v4880_v14 = vld [vmem:[#allocation8 + $0x8] sm:$0xff] }
 0x132   : > { %v1852_v31 = vsel %vm5685_vm11, %v1850_v18, %v1851_v19  ;;  %v973_v36 = vor.u32 %v971_v26, %v970_v25  ;;  %v975_v37 = vrot.slane %v970_v25, 4  ;;  %689 = vmatmul.bf16.gmra.mxu0 %v4850_v2  ;;  %v1492_v40 = vsel %vm5697_vm14, %v1487_v11, %v1491_v20  ;;  %774 = vst [vmem:[#allocation2 + $0xd0] sm:$0xf] %v5424_v53  ;;  %v1253_v51 = vld [vmem:[#allocation2 + $0x50] sm:$0x1] }
 0x133   : > { %v715_v38 = vmax.f32 %v651_v27, 0.0  ;;  %v2067_v39 = vunpack.c.l.b16 %v1852_v31  ;;  %v1496_v41 = vor.u32 %v1495_v29, %v1491_v20  ;;  %v2002_v63 = vunpack.c.l.b16 %v1492_v40  ;;  %v779_v16 = vld [vmem:[#allocation2] sm:$0x1]  ;;  %775 = vst [vmem:[#allocation2 + $0xd4] sm:$0x1] %v5424_v53 }
 0x134   : > { %v974_v45 = vsel %vm5674_vm8, %v966_v9, %v973_v36  ;;  %v1247_v47 = vsel %vm5634_vm2, %v975_v37, %v1246_v30  ;;  %v1249_v9 = vld [vmem:[#allocation2 + $0x48] sm:$0xf]  ;;  %v780_v26 = vsel %vm5634_vm2, 0, %v779_v16  ;;  %2825 = vmatpush.bf16.msrb.mxu0 %v4880_v14 }
 0x135   : > { %v747_v48 = vpack.c.bf16 %v715_v38, %v715_v38  ;;  %v5792_v49 = vpack.c.b16 %v2067_v39, %v2066_v32  ;;  %v1341_v50 = vld [vmem:[#allocation2 + $0x3c] sm:$0xf]  ;;  %1245 = vst [vmem:[#allocation2 + $0x40] sm:$0xf] %v974_v45  ;;  %v1497_v54 = vrot.slane %v1496_v41, 4 }
 0x136   : > { %v1504_v56 = vshrl.u32 %v1341_v50, 16  ;;  %v1507_v57 = vshll.u32 %v1341_v50, 16  ;;  %1248 = vst [vmem:[#allocation2 + $0x44] sm:$0x1] %v1247_v47  ;;  %v4394_v25 = vrot.slane %v1341_v50, 9 }
 0x137   : > { %7077 = vst [vmem:[#allocation20_spill] sm:$0xff] %v5792_v49  ;;  %v977_v58 = vshrl.u32 %v747_v48, 16  ;;  %2609 = vmatmul.bf16.gmra.mxu3 %v5792_v49  ;;  %v652_v61 = vpop.f32.mrf.mxu0  ;;  %v1502_v62 = vsel %vm5697_vm14, %v1497_v54, %v1501_v55  ;;  %v980_v6 = vshll.u32 %v747_v48, 16  ;;  %v859_v36 = vld [vmem:[#allocation2 + $0x68] sm:$0x1] }
 0x138   : > { %v1506_v1 = vrot.slane %v1504_v56, 4  ;;  %v1509_v2 = vrot.slane %v1507_v57, 5  ;;  %v653_v7 = vadd.f32 %v5653_v44, %v652_v61  ;;  %v2003_v8 = vunpack.c.l.b16 %v1502_v62  ;;  %781 = vst [vmem:[#allocation2] sm:$0x1] %v780_v26  ;;  %2826 = vmatpush.bf16.msrb.mxu0 %v4879_v43 }
 0x139   : > { %v5800_v5 = vrot.slane %v977_v58, 7  ;;  %v860_v57 = vsel %vm5641_vm4, 0, %v859_v36 }
 0x13a   : > { %v716_v11 = vmax.f32 %v653_v7, 0.0  ;;  %v5806_v12 = vpack.c.b16 %v2003_v8, %v2002_v63  ;;  %v1510_v13 = vor.u32 %v1509_v2, %v1506_v1  ;;  %861 = vst [vmem:[#allocation2 + $0x68] sm:$0x1] %v860_v57  ;;  %v806_v7 = vld [vmem:[#allocation2 + $0x6c] sm:$0x1] }
 0x13b   : > { %v982_v10 = vor.u32 %v980_v6, %v5800_v5  ;;  %v983_v31 = vrot.slane %v5800_v5, 4  ;;  %v807_v14 = vsel %vm5634_vm2, 0, %v806_v7 }
 0x13c   : > { %v748_v19 = vpack.c.bf16 %v716_v11, %v716_v11  ;;  %2520 = vmatmul.bf16.gmra.mxu2 %v5806_v12  ;;  %v4866_v20 = vld [vmem:[#allocation2 + $0x3c] sm:$0xff]  ;;  %v1511_v33 = vrot.slane %v1510_v13, 4  ;;  %808 = vst [vmem:[#allocation2 + $0x6c] sm:$0x1] %v807_v14 }
 0x13d   : > { %v1250_v18 = vsel %vm5663_vm6, %v982_v10, %v1249_v9  ;;  %v1342_v24 = vld [vmem:[#allocation2 + $0x40] sm:$0xf]  ;;  %v1343_v27 = vld [vmem:[#allocation2 + $0x44] sm:$0x1]  ;;  %2436 = vmatmul.bf16.gmra.mxu1 %v4866_v20 }
 0x13e   : > { %1251 = vst [vmem:[#allocation2 + $0x48] sm:$0xf] %v1250_v18  ;;  %v1855_v29 = vrot.slane %v1342_v24, 5  ;;  %v1513_v30 = vshll.u32 %v1342_v24, 16  ;;  %v985_v32 = vshrl.u32 %v748_v19, 16  ;;  %v1517_v35 = vshrl.u32 %v1342_v24, 16 }
 0x13f   : > { %v655_v37 = vpop.f32.mrf.mxu0  ;;  %v1858_v40 = vrot.slane %v1343_v27, 5  ;;  %v988_v47 = vshll.u32 %v748_v19, 16  ;;  %v1523_v56 = vshll.u32 %v1343_v27, 16 }
 0x140   : > { %v1856_v38 = vsel %vm5685_vm11, %v4394_v25, %v1855_v29  ;;  %v1857_v39 = vrot.slane %v1855_v29, 4  ;;  %v1515_v41 = vrot.slane %v1513_v30, 5  ;;  %v987_v45 = vrot.slane %v985_v32, 7  ;;  %v1256_v29 = vld [vmem:[#allocation2 + $0x54] sm:$0xf] }
 0x141   : > { %v656_v48 = vadd.f32 %v5653_v44, %v655_v37  ;;  %v1519_v50 = vrot.slane %v1517_v35, 4  ;;  %v2068_v55 = vunpack.c.l.b16 %v1856_v38  ;;  %v1525_v9 = vrot.slane %v1523_v56, 5  ;;  %v4852_v38 = vld [vmem:[%s5612_s25 + $0x78] sm:$0xff] }
 0x142   : > { %v1859_v54 = vsel %vm5685_vm11, %v1857_v39, %v1858_v40  ;;  %v990_v58 = vor.u32 %v988_v47, %v987_v45  ;;  %v992_v59 = vrot.slane %v987_v45, 4  ;;  %694 = vmatmul.bf16.gmra.mxu0 %v4851_v23  ;;  %v1516_v63 = vsel %vm5697_vm14, %v1511_v33, %v1515_v41 }
 0x143   : > { %v717_v61 = vmax.f32 %v656_v48, 0.0  ;;  %v2069_v62 = vunpack.c.l.b16 %v1859_v54  ;;  %v1520_v53 = vor.u32 %v1519_v50, %v1515_v41  ;;  %v2004_v19 = vunpack.c.l.b16 %v1516_v63  ;;  %v862_v54 = vld [vmem:[#allocation2 + $0x74] sm:$0x1] }
 0x144   : > { %v991_v1 = vsel %vm5674_vm8, %v983_v31, %v990_v58  ;;  %v1254_v2 = vsel %vm5634_vm2, %v992_v59, %v1253_v51 }
 0x145   : > { %v749_v4 = vpack.c.bf16 %v717_v61, %v717_v61  ;;  %v5831_v5 = vpack.c.b16 %v2069_v62, %v2068_v55  ;;  %v1344_v6 = vld [vmem:[#allocation2 + $0x48] sm:$0xf]  ;;  %1252 = vst [vmem:[#allocation2 + $0x4c] sm:$0xf] %v991_v1  ;;  %v1521_v8 = vrot.slane %v1520_v53, 4  ;;  %v4891_v61 = vld [vmem:[#allocation8 + $0x60] sm:$0xff] }
 0x146   : > { %v1528_v10 = vshrl.u32 %v1344_v6, 16  ;;  %v1531_v11 = vshll.u32 %v1344_v6, 16  ;;  %1255 = vst [vmem:[#allocation2 + $0x50] sm:$0x1] %v1254_v2  ;;  %v4395_v40 = vrot.slane %v1344_v6, 9  ;;  %2911 = vmatpush.bf16.msrb.mxu1 %v4891_v61 }
 0x147   : > { %7078 = vst [vmem:[#allocation21_spill] sm:$0xff] %v5831_v5  ;;  %v994_v13 = vshrl.u32 %v749_v4, 16  ;;  %2614 = vmatmul.bf16.gmra.mxu3 %v5831_v5  ;;  %v657_v16 = vpop.f32.mrf.mxu0  ;;  %v1526_v18 = vsel %vm5697_vm14, %v1521_v8, %v1525_v9  ;;  %v997_v25 = vshll.u32 %v749_v4, 16  ;;  %v1260_v2 = vld [vmem:[#allocation2 + $0x5c] sm:$0x1]  ;;  %v863_v8 = vsel %vm5641_vm4, 0, %v862_v54 }
 0x148   : > { %v1530_v20 = vrot.slane %v1528_v10, 4  ;;  %v1533_v23 = vrot.slane %v1531_v11, 5  ;;  %v658_v26 = vadd.f32 %v5653_v44, %v657_v16  ;;  %v2005_v27 = vunpack.c.l.b16 %v1526_v18  ;;  %864 = vst [vmem:[#allocation2 + $0x74] sm:$0x1] %v863_v8 }
 0x149   : > { %v996_v24 = vrot.slane %v994_v13, 7 }
 0x14a   : > { %v718_v31 = vmax.f32 %v658_v26, 0.0  ;;  %v5839_v32 = vpack.c.b16 %v2005_v27, %v2004_v19  ;;  %v1534_v33 = vor.u32 %v1533_v23, %v1530_v20 }
 0x14b   : > { %v999_v30 = vor.u32 %v997_v25, %v996_v24  ;;  %v1000_v47 = vrot.slane %v996_v24, 4  ;;  %v809_v24 = vld [vmem:[#allocation2 + $0x78] sm:$0x1] }
 0x14c   : > { %7079 = vst [vmem:[#allocation22_spill] sm:$0xff] %v5839_v32  ;;  %v750_v36 = vpack.c.bf16 %v718_v31, %v718_v31  ;;  %2525 = vmatmul.bf16.gmra.mxu2 %v5839_v32  ;;  %v4867_v37 = vld [vmem:[#allocation2 + $0x48] sm:$0xff]  ;;  %v1535_v50 = vrot.slane %v1534_v33, 4  ;;  %v810_v31 = vsel %vm5634_vm2, 0, %v809_v24 }
 0x14d   : > { %v1257_v35 = vsel %vm5663_vm6, %v999_v30, %v1256_v29  ;;  %v1345_v39 = vld [vmem:[#allocation2 + $0x4c] sm:$0xf]  ;;  %v1346_v41 = vld [vmem:[#allocation2 + $0x50] sm:$0x1]  ;;  %2441 = vmatmul.bf16.gmra.mxu1 %v4867_v37  ;;  %811 = vst [vmem:[#allocation2 + $0x78] sm:$0x1] %v810_v31 }
 0x14e   : > { %1258 = vst [vmem:[#allocation2 + $0x54] sm:$0xf] %v1257_v35  ;;  %v1862_v43 = vrot.slane %v1345_v39, 5  ;;  %v1537_v45 = vshll.u32 %v1345_v39, 16  ;;  %v1002_v48 = vshrl.u32 %v750_v36, 16  ;;  %v1541_v51 = vshrl.u32 %v1345_v39, 16 }
 0x14f   : > { %v660_v55 = vpop.f32.mrf.mxu0  ;;  %v1865_v58 = vrot.slane %v1346_v41, 5  ;;  %v1005_v63 = vshll.u32 %v750_v36, 16  ;;  %v1547_v7 = vshll.u32 %v1346_v41, 16  ;;  %v5868_v41 = vld [vmem:[%s6989_s4] ss:$0 sm:$0xff] }
 0x150   : > { %v1863_v56 = vsel %vm5685_vm11, %v4395_v40, %v1862_v43  ;;  %v1864_v57 = vrot.slane %v1862_v43, 4  ;;  %v1539_v59 = vrot.slane %v1537_v45, 5  ;;  %v1004_v62 = vrot.slane %v1002_v48, 7 }
 0x151   : > { %v661_v53 = vadd.f32 %v5653_v44, %v660_v55  ;;  %v1543_v1 = vrot.slane %v1541_v51, 4  ;;  %v2070_v6 = vunpack.c.l.b16 %v1863_v56  ;;  %v1549_v26 = vrot.slane %v1547_v7, 5  ;;  %v865_v7 = vld [vmem:[#allocation2 + $0x80] sm:$0x1] }
 0x152   : > { %v1866_v4 = vsel %vm5685_vm11, %v1864_v57, %v1865_v58  ;;  %v1007_v9 = vor.u32 %v1005_v63, %v1004_v62  ;;  %v1009_v10 = vrot.slane %v1004_v62, 4  ;;  %699 = vmatmul.bf16.gmra.mxu0 %v4852_v38  ;;  %v1540_v44 = vsel %vm5697_vm14, %v1535_v50, %v1539_v59  ;;  %v4861_v58 = vld [vmem:[#allocation2] sm:$0xff] }
 0x153   : > { %v719_v11 = vmax.f32 %v661_v53, 0.0  ;;  %v2071_v13 = vunpack.c.l.b16 %v1866_v4  ;;  %v1544_v14 = vor.u32 %v1543_v1, %v1539_v59  ;;  %v2006_v36 = vunpack.c.l.b16 %v1540_v44 }
 0x154   : > { %v1008_v16 = vsel %vm5674_vm8, %v1000_v47, %v1007_v9  ;;  %v1261_v18 = vsel %vm5634_vm2, %v1009_v10, %v1260_v2  ;;  %v1263_v47 = vld [vmem:[#allocation2 + $0x60] sm:$0xf] }
 0x155   : > { %v751_v19 = vpack.c.bf16 %v719_v11, %v719_v11  ;;  %v5858_v20 = vpack.c.b16 %v2071_v13, %v2070_v6  ;;  %v1347_v23 = vld [vmem:[#allocation2 + $0x54] sm:$0xf]  ;;  %1259 = vst [vmem:[#allocation2 + $0x58] sm:$0xf] %v1008_v16  ;;  %v1545_v25 = vrot.slane %v1544_v14, 4 }
 0x156   : > { %v1552_v27 = vshrl.u32 %v1347_v23, 16  ;;  %v1555_v29 = vshll.u32 %v1347_v23, 16  ;;  %1262 = vst [vmem:[#allocation2 + $0x5c] sm:$0x1] %v1261_v18  ;;  %v4396_v61 = vrot.slane %v1347_v23, 9 }
 0x157   : > { %7080 = vst [vmem:[#allocation23_spill] sm:$0xff] %v5858_v20  ;;  %v1011_v30 = vshrl.u32 %v751_v19, 16  ;;  %2619 = vmatmul.bf16.gmra.mxu3 %v5858_v20  ;;  %v662_v33 = vpop.f32.mrf.mxu0  ;;  %v1550_v35 = vsel %vm5697_vm14, %v1545_v25, %v1549_v26  ;;  %v1014_v40 = vshll.u32 %v751_v19, 16  ;;  %v1267_v19 = vld [vmem:[#allocation2 + $0x68] sm:$0x1]  ;;  %v866_v26 = vsel %vm5641_vm4, 0, %v865_v7 }
 0x158   : > { %v1554_v37 = vrot.slane %v1552_v27, 4  ;;  %v1557_v38 = vrot.slane %v1555_v29, 5  ;;  %v663_v43 = vadd.f32 %v5868_v41, %v662_v33  ;;  %v2007_v45 = vunpack.c.l.b16 %v1550_v35  ;;  %867 = vst [vmem:[#allocation2 + $0x80] sm:$0x1] %v866_v26  ;;  %v868_v26 = vld [vmem:[#allocation2 + $0x8c] sm:$0x1] }
 0x159   : > { %v1013_v39 = vrot.slane %v1011_v30, 7 }
 0x15a   : > { %v720_v50 = vmax.f32 %v663_v43, 0.0  ;;  %v5871_v51 = vpack.c.b16 %v2007_v45, %v2006_v36  ;;  %v1558_v54 = vor.u32 %v1557_v38, %v1554_v37  ;;  %v812_v43 = vld [vmem:[#allocation2 + $0x84] sm:$0x1] }
 0x15b   : > { %v1016_v48 = vor.u32 %v1014_v40, %v1013_v39  ;;  %v1017_v1 = vrot.slane %v1013_v39, 4 }
 0x15c   : > { %7081 = vst [vmem:[#allocation24_spill] sm:$0xff] %v5871_v51  ;;  %v752_v56 = vpack.c.bf16 %v720_v50, %v720_v50  ;;  %2530 = vmatmul.bf16.gmra.mxu2 %v5871_v51  ;;  %v4868_v57 = vld [vmem:[#allocation2 + $0x54] sm:$0xff]  ;;  %v1559_v4 = vrot.slane %v1558_v54, 4 }
 0x15d   : > { %v1264_v55 = vsel %vm5663_vm6, %v1016_v48, %v1263_v47  ;;  %v1348_v59 = vld [vmem:[#allocation2 + $0x58] sm:$0xf]  ;;  %v1349_v62 = vld [vmem:[#allocation2 + $0x5c] sm:$0x1]  ;;  %2446 = vmatmul.bf16.gmra.mxu1 %v4868_v57 }
 0x15e   : > { %1265 = vst [vmem:[#allocation2 + $0x60] sm:$0xf] %v1264_v55  ;;  %v1869_v63 = vrot.slane %v1348_v59, 5  ;;  %v1561_v53 = vshll.u32 %v1348_v59, 16  ;;  %v1019_v2 = vshrl.u32 %v752_v56, 16  ;;  %v1565_v6 = vshrl.u32 %v1348_v59, 16 }
 0x15f   : > { %v665_v8 = vpop.f32.mrf.mxu0  ;;  %v1872_v11 = vrot.slane %v1349_v62, 5  ;;  %v1022_v14 = vshll.u32 %v752_v56, 16  ;;  %v1571_v25 = vshll.u32 %v1349_v62, 16  ;;  %v813_v55 = vsel %vm5634_vm2, 0, %v812_v43  ;;  %v1274_v43 = vld [vmem:[#allocation2 + $0x74] sm:$0x1] }
 0x160   : > { %v1870_v9 = vsel %vm5685_vm11, %v4396_v61, %v1869_v63  ;;  %v1871_v10 = vrot.slane %v1869_v63, 4  ;;  %v1563_v13 = vrot.slane %v1561_v53, 5  ;;  %v1021_v44 = vrot.slane %v1019_v2, 7  ;;  %814 = vst [vmem:[#allocation2 + $0x84] sm:$0x1] %v813_v55 }
 0x161   : > { %v666_v16 = vadd.f32 %v5868_v41, %v665_v8  ;;  %v1567_v18 = vrot.slane %v1565_v6, 4  ;;  %v2072_v24 = vunpack.c.l.b16 %v1870_v9  ;;  %v1573_v47 = vrot.slane %v1571_v25, 5  ;;  %v1270_v2 = vld [vmem:[#allocation2 + $0x6c] sm:$0xf] }
 0x162   : > { %v1873_v23 = vsel %vm5685_vm11, %v1871_v10, %v1872_v11  ;;  %v1024_v27 = vor.u32 %v1022_v14, %v1021_v44  ;;  %v1026_v29 = vrot.slane %v1021_v44, 4  ;;  %2827 = vmatmul.bf16.vlgmr.msrb.gmra.mxu0 %v4861_v58  ;;  %v1564_v33 = vsel %vm5697_vm14, %v1559_v4, %v1563_v13 }
 0x163   : > { %v721_v30 = vmax.f32 %v666_v16, 0.0  ;;  %v2073_v31 = vunpack.c.l.b16 %v1873_v23  ;;  %v1568_v35 = vor.u32 %v1567_v18, %v1563_v13  ;;  %v2008_v58 = vunpack.c.l.b16 %v1564_v33 }
 0x164   : > { %v1025_v36 = vsel %vm5674_vm8, %v1017_v1, %v1024_v27  ;;  %v1268_v37 = vsel %vm5634_vm2, %v1026_v29, %v1267_v19 }
 0x165   : > { %v753_v38 = vpack.c.bf16 %v721_v30, %v721_v30  ;;  %v5889_v39 = vpack.c.b16 %v2073_v31, %v2072_v24  ;;  %v1350_v40 = vld [vmem:[#allocation2 + $0x60] sm:$0xf]  ;;  %1266 = vst [vmem:[#allocation2 + $0x64] sm:$0xf] %v1025_v36  ;;  %v1569_v45 = vrot.slane %v1568_v35, 4  ;;  %v4890_v35 = vld [vmem:[#allocation8 + $0x58] sm:$0xff] }
 0x166   : > { %v1576_v48 = vshrl.u32 %v1350_v40, 16  ;;  %v1579_v50 = vshll.u32 %v1350_v40, 16  ;;  %1269 = vst [vmem:[#allocation2 + $0x68] sm:$0x1] %v1268_v37  ;;  %v4397_v44 = vrot.slane %v1350_v40, 9  ;;  %2912 = vmatpush.bf16.msrb.mxu1 %v4890_v35 }
 0x167   : > { %7082 = vst [vmem:[#allocation25_spill] sm:$0xff] %v5889_v39  ;;  %v1028_v54 = vshrl.u32 %v753_v38, 16  ;;  %2624 = vmatmul.bf16.gmra.mxu3 %v5889_v39  ;;  %v667_v56 = vpop.f32.mrf.mxu0  ;;  %v1574_v57 = vsel %vm5697_vm14, %v1569_v45, %v1573_v47  ;;  %v1031_v63 = vshll.u32 %v753_v38, 16 }
 0x168   : > { %v1578_v59 = vrot.slane %v1576_v48, 4  ;;  %v1581_v61 = vrot.slane %v1579_v50, 5  ;;  %v668_v53 = vadd.f32 %v5868_v41, %v667_v56  ;;  %v2009_v1 = vunpack.c.l.b16 %v1574_v57  ;;  %v5160_v57 = vld [vmem:[#allocation2 + $0xc] sm:$0xff] }
 0x169   : > { %v1030_v62 = vrot.slane %v1028_v54, 7  ;;  %v869_v50 = vsel %vm5641_vm4, 0, %v868_v26 }
 0x16a   : > { %v722_v6 = vmax.f32 %v668_v53, 0.0  ;;  %v5897_v7 = vpack.c.b16 %v2009_v1, %v2008_v58  ;;  %v1582_v8 = vor.u32 %v1581_v61, %v1578_v59  ;;  %870 = vst [vmem:[#allocation2 + $0x8c] sm:$0x1] %v869_v50 }
 0x16b   : > { %v1033_v4 = vor.u32 %v1031_v63, %v1030_v62  ;;  %v1034_v19 = vrot.slane %v1030_v62, 4 }
 0x16c   : > { %7083 = vst [vmem:[#allocation26_spill] sm:$0xff] %v5897_v7  ;;  %v754_v10 = vpack.c.bf16 %v722_v6, %v722_v6  ;;  %2535 = vmatmul.bf16.gmra.mxu2 %v5897_v7  ;;  %v4869_v11 = vld [vmem:[#allocation2 + $0x60] sm:$0xff]  ;;  %v1583_v24 = vrot.slane %v1582_v8, 4 }
 0x16d   : > { %v1271_v9 = vsel %vm5663_vm6, %v1033_v4, %v1270_v2  ;;  %v1351_v13 = vld [vmem:[#allocation2 + $0x64] sm:$0xf]  ;;  %v1352_v14 = vld [vmem:[#allocation2 + $0x68] sm:$0x1]  ;;  %2451 = vmatmul.bf16.gmra.mxu1 %v4869_v11  ;;  %v815_v4 = vld [vmem:[#allocation2 + $0x90] sm:$0x1] }
 0x16e   : > { %1272 = vst [vmem:[#allocation2 + $0x6c] sm:$0xf] %v1271_v9  ;;  %v1876_v16 = vrot.slane %v1351_v13, 5  ;;  %v1585_v18 = vshll.u32 %v1351_v13, 16  ;;  %v1036_v23 = vshrl.u32 %v754_v10, 16  ;;  %v1589_v25 = vshrl.u32 %v1351_v13, 16 }
 0x16f   : > { %v670_v27 = vpop.f32.mrf.mxu0  ;;  %v1879_v31 = vrot.slane %v1352_v14, 5  ;;  %v1039_v37 = vshll.u32 %v754_v10, 16  ;;  %v1595_v48 = vshll.u32 %v1352_v14, 16  ;;  %v816_v13 = vsel %vm5634_vm2, 0, %v815_v4  ;;  %v4934_v4 = vld [vmem:[#allocation8 + $0x1b8] sm:$0xff] }
 0x170   : > { %v1877_v29 = vsel %vm5685_vm11, %v4397_v44, %v1876_v16  ;;  %v1878_v30 = vrot.slane %v1876_v16, 4  ;;  %v1587_v33 = vrot.slane %v1585_v18, 5  ;;  %v1038_v36 = vrot.slane %v1036_v23, 7  ;;  %817 = vst [vmem:[#allocation2 + $0x90] sm:$0x1] %v816_v13  ;;  %3324 = vmatpush.bf16.msrb.mxu3 %v4934_v4 }
 0x171   : > { %v671_v38 = vadd.f32 %v5868_v41, %v670_v27  ;;  %v1591_v40 = vrot.slane %v1589_v25, 4  ;;  %v2074_v47 = vunpack.c.l.b16 %v1877_v29  ;;  %v1597_v8 = vrot.slane %v1595_v48, 5  ;;  %v1277_v27 = vld [vmem:[#allocation2 + $0x78] sm:$0xf] }
 0x172   : > { %v1880_v45 = vsel %vm5685_vm11, %v1878_v30, %v1879_v31  ;;  %v1041_v54 = vor.u32 %v1039_v37, %v1038_v36  ;;  %v1043_v55 = vrot.slane %v1038_v36, 4  ;;  %2832 = vmatmul.bf16.gmra.mxu0 %v5160_v57  ;;  %v1588_v59 = vsel %vm5697_vm14, %v1583_v24, %v1587_v33  ;;  %v871_v57 = vld [vmem:[#allocation2 + $0x98] sm:$0x1] }
 0x173   : > { %v723_v56 = vmax.f32 %v671_v38, 0.0  ;;  %v2075_v58 = vunpack.c.l.b16 %v1880_v45  ;;  %v1592_v61 = vor.u32 %v1591_v40, %v1587_v33  ;;  %v2010_v16 = vunpack.c.l.b16 %v1588_v59 }
 0x174   : > { %v1042_v62 = vsel %vm5674_vm8, %v1034_v19, %v1041_v54  ;;  %v1275_v63 = vsel %vm5634_vm2, %v1043_v55, %v1274_v43 }
 0x175   : > { %v755_v53 = vpack.c.bf16 %v723_v56, %v723_v56  ;;  %v5915_v1 = vpack.c.b16 %v2075_v58, %v2074_v47  ;;  %v1353_v2 = vld [vmem:[#allocation2 + $0x6c] sm:$0xf]  ;;  %1273 = vst [vmem:[#allocation2 + $0x70] sm:$0xf] %v1042_v62  ;;  %v1593_v6 = vrot.slane %v1592_v61, 4 }
 0x176   : > { %v1600_v9 = vshrl.u32 %v1353_v2, 16  ;;  %v1603_v10 = vshll.u32 %v1353_v2, 16  ;;  %1276 = vst [vmem:[#allocation2 + $0x74] sm:$0x1] %v1275_v63  ;;  %v4398_v43 = vrot.slane %v1353_v2, 9 }
 0x177   : > { %7084 = vst [vmem:[#allocation27_spill] sm:$0xff] %v5915_v1  ;;  %v1045_v11 = vshrl.u32 %v755_v53, 16  ;;  %2629 = vmatmul.bf16.gmra.mxu3 %v5915_v1  ;;  %v672_v44 = vpop.f32.mrf.mxu0  ;;  %v1598_v14 = vsel %vm5697_vm14, %v1593_v6, %v1597_v8  ;;  %v1048_v24 = vshll.u32 %v755_v53, 16  ;;  %v4902_v53 = vld [vmem:[#allocation8 + $0xb8] sm:$0xff] }
 0x178   : > { %v1602_v18 = vrot.slane %v1600_v9, 4  ;;  %v1605_v19 = vrot.slane %v1603_v10, 5  ;;  %v673_v25 = vadd.f32 %v5868_v41, %v672_v44  ;;  %v2011_v26 = vunpack.c.l.b16 %v1598_v14  ;;  %v1281_v10 = vld [vmem:[#allocation2 + $0x80] sm:$0x1]  ;;  %2997 = vmatpush.bf16.msrb.mxu2 %v4902_v53  ;;  %v1284_v53 = vld [vmem:[#allocation2 + $0x84] sm:$0xf] }
 0x179   : > { %v1047_v23 = vrot.slane %v1045_v11, 7  ;;  %v872_v14 = vsel %vm5641_vm4, 0, %v871_v57 }
 0x17a   : > { %v724_v30 = vmax.f32 %v673_v25, 0.0  ;;  %v5923_v31 = vpack.c.b16 %v2011_v26, %v2010_v16  ;;  %v1606_v33 = vor.u32 %v1605_v19, %v1602_v18  ;;  %v5925_v35 = vpop.f32.mrf.mxu1  ;;  %873 = vst [vmem:[#allocation2 + $0x98] sm:$0x1] %v872_v14 }
 0x17b   : > { %v1050_v29 = vor.u32 %v1048_v24, %v1047_v23  ;;  %v1051_v50 = vrot.slane %v1047_v23, 4  ;;  %v5161_v23 = vld [vmem:[#allocation2 + $0x18] sm:$0xff] }
 0x17c   : > { %7085 = vst [vmem:[#allocation28_spill] sm:$0xff] %v5923_v31  ;;  %v756_v37 = vpack.c.bf16 %v724_v30, %v724_v30  ;;  %2540 = vmatmul.bf16.gmra.mxu2 %v5923_v31  ;;  %v4870_v38 = vld [vmem:[#allocation2 + $0x6c] sm:$0xff]  ;;  %v1607_v55 = vrot.slane %v1606_v33, 4 }
 0x17d   : > { %v1278_v36 = vsel %vm5663_vm6, %v1050_v29, %v1277_v27  ;;  %v1354_v40 = vld [vmem:[#allocation2 + $0x70] sm:$0xf]  ;;  %v1355_v45 = vld [vmem:[#allocation2 + $0x74] sm:$0x1]  ;;  %2456 = vmatmul.bf16.gmra.mxu1 %v4870_v38  ;;  %v818_v38 = vld [vmem:[#allocation2 + $0x9c] sm:$0x1] }
 0x17e   : > { %1279 = vst [vmem:[#allocation2 + $0x78] sm:$0xf] %v1278_v36  ;;  %v1883_v47 = vrot.slane %v1354_v40, 5  ;;  %v1609_v48 = vshll.u32 %v1354_v40, 16  ;;  %v1053_v54 = vshrl.u32 %v756_v37, 16  ;;  %v1613_v56 = vshrl.u32 %v1354_v40, 16 }
 0x17f   : > { %v675_v58 = vpop.f32.mrf.mxu0  ;;  %v1886_v62 = vrot.slane %v1355_v45, 5  ;;  %v1056_v6 = vshll.u32 %v756_v37, 16  ;;  %v1619_v44 = vshll.u32 %v1355_v45, 16 }
 0x180   : > { %v1884_v59 = vsel %vm5685_vm11, %v4398_v43, %v1883_v47  ;;  %v1885_v61 = vrot.slane %v1883_v47, 4  ;;  %v1611_v63 = vrot.slane %v1609_v48, 5  ;;  %v1055_v2 = vrot.slane %v1053_v54, 7 }
 0x181   : > { %v676_v8 = vadd.f32 %v5868_v41, %v675_v58  ;;  %v1615_v9 = vrot.slane %v1613_v56, 4  ;;  %v2076_v13 = vunpack.c.l.b16 %v1884_v59  ;;  %v1621_v43 = vrot.slane %v1619_v44, 5 }
 0x182   : > { %v1887_v11 = vsel %vm5685_vm11, %v1885_v61, %v1886_v62  ;;  %v1058_v16 = vor.u32 %v1056_v6, %v1055_v2  ;;  %v1060_v18 = vrot.slane %v1055_v2, 4  ;;  %2837 = vmatmul.bf16.gmra.mxu0 %v5161_v23  ;;  %v5937_v25 = vpop.f32.mrf.mxu1  ;;  %v1612_v26 = vsel %vm5697_vm14, %v1607_v55, %v1611_v63 }
 0x183   : > { %v725_v19 = vmax.f32 %v676_v8, 0.0  ;;  %v2077_v24 = vunpack.c.l.b16 %v1887_v11  ;;  %v1616_v27 = vor.u32 %v1615_v9, %v1611_v63  ;;  %v2012_v56 = vunpack.c.l.b16 %v1612_v26 }
 0x184   : > { %v1059_v29 = vsel %vm5674_vm8, %v1051_v50, %v1058_v16  ;;  %v1282_v30 = vsel %vm5634_vm2, %v1060_v18, %v1281_v10  ;;  %v819_v50 = vsel %vm5634_vm2, 0, %v818_v38 }
 0x185   : > { %v757_v33 = vpack.c.bf16 %v725_v19, %v725_v19  ;;  %v5945_v36 = vpack.c.b16 %v2077_v24, %v2076_v13  ;;  %v1356_v37 = vld [vmem:[#allocation2 + $0x78] sm:$0xf]  ;;  %1280 = vst [vmem:[#allocation2 + $0x7c] sm:$0xf] %v1059_v29  ;;  %v1617_v40 = vrot.slane %v1616_v27, 4 }
 0x186   : > { %v1624_v45 = vshrl.u32 %v1356_v37, 16  ;;  %v1627_v47 = vshll.u32 %v1356_v37, 16  ;;  %1283 = vst [vmem:[#allocation2 + $0x80] sm:$0x1] %v1282_v30  ;;  %v4399_v16 = vrot.slane %v1356_v37, 9 }
 0x187   : > { %7086 = vst [vmem:[#allocation29_spill] sm:$0xff] %v5945_v36  ;;  %v1062_v48 = vshrl.u32 %v757_v33, 16  ;;  %2634 = vmatmul.bf16.gmra.mxu3 %v5945_v36  ;;  %v677_v54 = vpop.f32.mrf.mxu0  ;;  %v1622_v55 = vsel %vm5697_vm14, %v1617_v40, %v1621_v43  ;;  %v1065_v61 = vshll.u32 %v757_v33, 16 }
 0x188   : > { %v1626_v57 = vrot.slane %v1624_v45, 4  ;;  %v1629_v58 = vrot.slane %v1627_v47, 5  ;;  %820 = vst [vmem:[#allocation2 + $0x9c] sm:$0x1] %v819_v50  ;;  %v678_v62 = vadd.f32 %v5868_v41, %v677_v54  ;;  %v2013_v63 = vunpack.c.l.b16 %v1622_v55  ;;  %v4889_v47 = vld [vmem:[#allocation8 + $0x50] sm:$0xff] }
 0x189   : > { %v1064_v59 = vrot.slane %v1062_v48, 7  ;;  %v874_v55 = vld [vmem:[#allocation2 + $0xa4] sm:$0x1]  ;;  %2913 = vmatpush.bf16.msrb.mxu1 %v4889_v47 }
 0x18a   : > { %v2595_v4 = vpop.f32.mrf.mxu3  ;;  %v726_v6 = vmax.f32 %v678_v62, 0.0  ;;  %v5953_v8 = vpack.c.b16 %v2013_v63, %v2012_v56  ;;  %v1630_v9 = vor.u32 %v1629_v58, %v1626_v57  ;;  %v5955_v10 = vpop.f32.mrf.mxu1  ;;  %v1288_v56 = vld [vmem:[#allocation2 + $0x8c] sm:$0x1] }
 0x18b   : > { %v1067_v2 = vor.u32 %v1065_v61, %v1064_v59  ;;  %v1068_v24 = vrot.slane %v1064_v59, 4 }
 0x18c   : > { %7087 = vst [vmem:[#allocation30_spill] sm:$0xff] %v5953_v8  ;;  %v758_v13 = vpack.c.bf16 %v726_v6, %v726_v6  ;;  %2545 = vmatmul.bf16.gmra.mxu2 %v5953_v8  ;;  %v4871_v44 = vld [vmem:[#allocation2 + $0x78] sm:$0xff]  ;;  %v1631_v27 = vrot.slane %v1630_v9, 4  ;;  %v5162_v6 = vld [vmem:[#allocation2 + $0x24] sm:$0xff] }
 0x18d   : > { %v1285_v11 = vsel %vm5663_vm6, %v1067_v2, %v1284_v53  ;;  %v1357_v14 = vld [vmem:[#allocation2 + $0x7c] sm:$0xf]  ;;  %v1358_v18 = vld [vmem:[#allocation2 + $0x80] sm:$0x1]  ;;  %2461 = vmatmul.bf16.gmra.mxu1 %v4871_v44  ;;  %v875_v44 = vsel %vm5641_vm4, 0, %v874_v55 }
 0x18e   : > { %1286 = vst [vmem:[#allocation2 + $0x84] sm:$0xf] %v1285_v11  ;;  %v1890_v19 = vrot.slane %v1357_v14, 5  ;;  %v1633_v23 = vshll.u32 %v1357_v14, 16  ;;  %v1070_v26 = vshrl.u32 %v758_v13, 16  ;;  %v1637_v29 = vshrl.u32 %v1357_v14, 16 }
 0x18f   : > { %v2506_v30 = vpop.f32.mrf.mxu2  ;;  %v680_v33 = vpop.f32.mrf.mxu0  ;;  %v1893_v43 = vrot.slane %v1358_v18, 5  ;;  %v1073_v37 = vshll.u32 %v758_v13, 16  ;;  %v1643_v62 = vshll.u32 %v1358_v18, 16  ;;  %876 = vst [vmem:[#allocation2 + $0xa4] sm:$0x1] %v875_v44 }
 0x190   : > { %v1891_v38 = vsel %vm5685_vm11, %v4399_v16, %v1890_v19  ;;  %v1892_v40 = vrot.slane %v1890_v19, 4  ;;  %v1635_v45 = vrot.slane %v1633_v23, 5  ;;  %v1072_v48 = vrot.slane %v1070_v26, 7 }
 0x191   : > { %v2507_v50 = vadd.f32 %v2506_v30, %v5925_v35  ;;  %v681_v54 = vadd.f32 %v5868_v41, %v680_v33  ;;  %v2078_v59 = vunpack.c.l.b16 %v1891_v38  ;;  %v1639_v61 = vrot.slane %v1637_v29, 4  ;;  %v821_v29 = vld [vmem:[#allocation2 + $0xa8] sm:$0x1] }
 0x192   : > { %v2597_v57 = vpop.f32.mrf.mxu3  ;;  %v1894_v58 = vsel %vm5685_vm11, %v1892_v40, %v1893_v43  ;;  %v1075_v63 = vor.u32 %v1073_v37, %v1072_v48  ;;  %v1077_v53 = vrot.slane %v1072_v48, 4  ;;  %2842 = vmatmul.bf16.gmra.mxu0 %v5162_v6  ;;  %v5966_v11 = vpop.f32.mrf.mxu1  ;;  %v1636_v35 = vsel %vm5697_vm14, %v1631_v27, %v1635_v45 }
 0x193   : > { %v727_v2 = vmax.f32 %v681_v54, 0.0  ;;  %v2079_v9 = vunpack.c.l.b16 %v1894_v58  ;;  %v1640_v13 = vor.u32 %v1639_v61, %v1635_v45  ;;  %v5972_v14 = vadd.f32 %v2595_v4, %v2507_v50 }
 0x194   : > { %v1076_v16 = vsel %vm5674_vm8, %v1068_v24, %v1075_v63  ;;  %v1289_v18 = vsel %vm5634_vm2, %v1077_v53, %v1288_v56  ;;  %v1645_v30 = vrot.slane %v1643_v62, 5  ;;  %v2014_v40 = vunpack.c.l.b16 %v1636_v35 }
 0x195   : > { %v759_v19 = vpack.c.bf16 %v727_v2, %v727_v2  ;;  %v5978_v23 = vpack.c.b16 %v2079_v9, %v2078_v59  ;;  %v1359_v26 = vld [vmem:[#allocation2 + $0x84] sm:$0xf]  ;;  %1287 = vst [vmem:[#allocation2 + $0x88] sm:$0xf] %v1076_v16  ;;  %v1641_v27 = vrot.slane %v1640_v13, 4  ;;  %v822_v24 = vsel %vm5634_vm2, 0, %v821_v29 }
 0x196   : > { %v1648_v33 = vshrl.u32 %v1359_v26, 16  ;;  %v1651_v38 = vshll.u32 %v1359_v26, 16  ;;  %1290 = vst [vmem:[#allocation2 + $0x8c] sm:$0x1] %v1289_v18  ;;  %v1291_v59 = vld [vmem:[#allocation2 + $0x90] sm:$0xf] }
 0x197   : > { %7088 = vst [vmem:[#allocation31_spill] sm:$0xff] %v5978_v23  ;;  %v1079_v4 = vshrl.u32 %v759_v19, 16  ;;  %2639 = vmatmul.bf16.gmra.mxu3 %v5978_v23  ;;  %v1082_v43 = vshll.u32 %v759_v19, 16  ;;  %v2508_v45 = vpop.f32.mrf.mxu2  ;;  %v682_v47 = vpop.f32.mrf.mxu0  ;;  %v1646_v48 = vsel %vm5697_vm14, %v1641_v27, %v1645_v30  ;;  %v4400_v16 = vrot.slane %v1359_v26, 9  ;;  %v4933_v26 = vld [vmem:[#allocation8 + $0x1b0] sm:$0xff] }
 0x198   : > { %v1650_v37 = vrot.slane %v1648_v33, 4  ;;  %v1653_v50 = vrot.slane %v1651_v38, 5  ;;  %823 = vst [vmem:[#allocation2 + $0xa8] sm:$0x1] %v822_v24  ;;  %v2509_v55 = vadd.f32 %v2508_v45, %v5937_v25  ;;  %v683_v56 = vadd.f32 %v5868_v41, %v682_v47  ;;  %v4901_v47 = vld [vmem:[#allocation8 + $0xb0] sm:$0xff]  ;;  %3325 = vmatpush.bf16.msrb.mxu3 %v4933_v26 }
 0x199   : > { %v1081_v54 = vrot.slane %v1079_v4, 7  ;;  %v2015_v58 = vunpack.c.l.b16 %v1646_v48  ;;  %2998 = vmatpush.bf16.msrb.mxu2 %v4901_v47  ;;  %v824_v47 = vld [vmem:[#allocation2 + $0xb4] sm:$0x1] }
 0x19a   : > { %v2600_v61 = vpop.f32.mrf.mxu3  ;;  %v728_v63 = vmax.f32 %v683_v56, 0.0  ;;  %v1654_v2 = vor.u32 %v1653_v50, %v1650_v37  ;;  %v5989_v6 = vpop.f32.mrf.mxu1  ;;  %v5991_v9 = vadd.f32 %v2597_v57, %v2509_v55  ;;  %v877_v55 = vld [vmem:[#allocation2 + $0xb0] sm:$0x1]  ;;  %v1295_v56 = vld [vmem:[#allocation2 + $0x98] sm:$0x1] }
 0x19b   : > { %v1084_v62 = vor.u32 %v1082_v43, %v1081_v54  ;;  %v5987_v53 = vpack.c.b16 %v2015_v58, %v2014_v40  ;;  %v1085_v27 = vrot.slane %v1081_v54, 4 }
 0x19c   : > { %v760_v13 = vpack.c.bf16 %v728_v63, %v728_v63  ;;  %v5996_v25 = vld [vmem:[#allocation2 + $0x84] sm:$0xff]  ;;  %v1655_v57 = vrot.slane %v1654_v2, 4 }
 0x19d   : > { %7089 = vst [vmem:[#allocation32_spill] sm:$0xff] %v5987_v53  ;;  %v1292_v35 = vsel %vm5663_vm6, %v1084_v62, %v1291_v59  ;;  %2550 = vmatmul.bf16.gmra.mxu2 %v5987_v53  ;;  %v1360_v44 = vld [vmem:[#allocation2 + $0x88] sm:$0xf]  ;;  %v1361_v18 = vld [vmem:[#allocation2 + $0x8c] sm:$0x1]  ;;  %2466 = vmatmul.bf16.gmra.mxu1 %v5996_v25  ;;  %v6047_v53 = vld [vmem:[#allocation2 + $0x3c] sm:$0xff] }
 0x19e   : > { %1293 = vst [vmem:[#allocation2 + $0x90] sm:$0xf] %v1292_v35  ;;  %v1897_v19 = vrot.slane %v1360_v44, 5  ;;  %v1657_v29 = vshll.u32 %v1360_v44, 16  ;;  %v1087_v30 = vshrl.u32 %v760_v13, 16  ;;  %v1661_v33 = vshrl.u32 %v1360_v44, 16 }
 0x19f   : > { %v2511_v38 = vpop.f32.mrf.mxu2  ;;  %v685_v4 = vpop.f32.mrf.mxu0  ;;  %v1900_v43 = vrot.slane %v1361_v18, 5  ;;  %v1090_v37 = vshll.u32 %v760_v13, 16  ;;  %v1667_v2 = vshll.u32 %v1361_v18, 16 }
 0x1a0   : > { %v1898_v40 = vsel %vm5685_vm11, %v4400_v16, %v1897_v19  ;;  %v1899_v24 = vrot.slane %v1897_v19, 4  ;;  %v1659_v45 = vrot.slane %v1657_v29, 5  ;;  %v1089_v48 = vrot.slane %v1087_v30, 7  ;;  %v6005_v19 = vld [vmem:[#allocation2 + $0x30] sm:$0xff] }
 0x1a1   : > { %v2512_v50 = vadd.f32 %v2511_v38, %v5955_v10  ;;  %v686_v54 = vadd.f32 %v5868_v41, %v685_v4  ;;  %v2080_v62 = vunpack.c.l.b16 %v1898_v40  ;;  %v1663_v63 = vrot.slane %v1661_v33, 4 }
 0x1a2   : > { %v2602_v58 = vpop.f32.mrf.mxu3  ;;  %v1901_v59 = vsel %vm5685_vm11, %v1899_v24, %v1900_v43  ;;  %v1092_v35 = vor.u32 %v1090_v37, %v1089_v48  ;;  %v1094_v44 = vrot.slane %v1089_v48, 4  ;;  %2847 = vmatmul.bf16.gmra.mxu0 %v6005_v19  ;;  %v6008_v13 = vpop.f32.mrf.mxu1  ;;  %v1660_v29 = vsel %vm5697_vm14, %v1655_v57, %v1659_v45 }
 0x1a3   : > { %v729_v16 = vmax.f32 %v686_v54, 0.0  ;;  %v2081_v10 = vunpack.c.l.b16 %v1901_v59  ;;  %v1664_v30 = vor.u32 %v1663_v63, %v1659_v45  ;;  %v878_v33 = vsel %vm5641_vm4, 0, %v877_v55 }
 0x1a4   : > { %v6014_v18 = vadd.f32 %v2600_v61, %v2512_v50  ;;  %v1093_v38 = vsel %vm5674_vm8, %v1085_v27, %v1092_v35  ;;  %v1296_v4 = vsel %vm5634_vm2, %v1094_v44, %v1295_v56  ;;  %879 = vst [vmem:[#allocation2 + $0xb0] sm:$0x1] %v878_v33  ;;  %v1669_v45 = vrot.slane %v1667_v2, 5 }
 0x1a5   : > { %v761_v40 = vpack.c.bf16 %v729_v16, %v729_v16  ;;  %v6020_v24 = vpack.c.b16 %v2081_v10, %v2080_v62  ;;  %v1362_v43 = vld [vmem:[#allocation2 + $0x90] sm:$0xf]  ;;  %1294 = vst [vmem:[#allocation2 + $0x94] sm:$0xf] %v1093_v38  ;;  %v1665_v57 = vrot.slane %v1664_v30, 4  ;;  %v2016_v37 = vunpack.c.l.b16 %v1660_v29 }
 0x1a6   : > { %v1672_v26 = vshrl.u32 %v1362_v43, 16  ;;  %v1675_v48 = vshll.u32 %v1362_v43, 16  ;;  %1297 = vst [vmem:[#allocation2 + $0x98] sm:$0x1] %v1296_v4  ;;  %v825_v27 = vsel %vm5634_vm2, 0, %v824_v47 }
 0x1a7   : > { %7090 = vst [vmem:[#allocation33_spill] sm:$0xff] %v6020_v24  ;;  %v1096_v61 = vshrl.u32 %v761_v40, 16  ;;  %2644 = vmatmul.bf16.gmra.mxu3 %v6020_v24  ;;  %v1099_v50 = vshll.u32 %v761_v40, 16  ;;  %v2513_v54 = vpop.f32.mrf.mxu2  ;;  %v687_v55 = vpop.f32.mrf.mxu0  ;;  %v1670_v56 = vsel %vm5697_vm14, %v1665_v57, %v1669_v45  ;;  %v1298_v16 = vld [vmem:[#allocation2 + $0x9c] sm:$0xf] }
 0x1a8   : > { %v1674_v59 = vrot.slane %v1672_v26, 4  ;;  %v1677_v62 = vrot.slane %v1675_v48, 5  ;;  %826 = vst [vmem:[#allocation2 + $0xb4] sm:$0x1] %v825_v27  ;;  %v2514_v2 = vadd.f32 %v2513_v54, %v5966_v11  ;;  %v688_v35 = vadd.f32 %v5868_v41, %v687_v55 }
 0x1a9   : > { %v1098_v63 = vrot.slane %v1096_v61, 7  ;;  %v2017_v44 = vunpack.c.l.b16 %v1670_v56  ;;  %v4401_v26 = vrot.slane %v1362_v43, 9 }
 0x1aa   : > { %v2605_v10 = vpop.f32.mrf.mxu3  ;;  %v730_v30 = vmax.f32 %v688_v35, 0.0  ;;  %v1678_v38 = vor.u32 %v1677_v62, %v1674_v59  ;;  %v6031_v4 = vpop.f32.mrf.mxu1  ;;  %v6033_v40 = vadd.f32 %v2602_v58, %v2514_v2 }
 0x1ab   : > { %v1101_v29 = vor.u32 %v1099_v50, %v1098_v63  ;;  %v6029_v33 = vpack.c.b16 %v2017_v44, %v2016_v37  ;;  %v1102_v27 = vrot.slane %v1098_v63, 4  ;;  %v4888_v44 = vld [vmem:[#allocation8 + $0x48] sm:$0xff]  ;;  %v1309_v36 = vld [vmem:[#allocation2 + $0xb0] sm:$0x1] }
 0x1ac   : > { %v762_v57 = vpack.c.bf16 %v730_v30, %v730_v30  ;;  %v6038_v11 = vld [vmem:[#allocation2 + $0x90] sm:$0xff]  ;;  %v1679_v58 = vrot.slane %v1678_v38, 4  ;;  %v880_v30 = vld [vmem:[#allocation2 + $0xbc] sm:$0x1]  ;;  %2914 = vmatpush.bf16.msrb.mxu1 %v4888_v44 }
 0x1ad   : > { %7091 = vst [vmem:[#allocation34_spill] sm:$0xff] %v6029_v33  ;;  %v1299_v47 = vsel %vm5663_vm6, %v1101_v29, %v1298_v16  ;;  %2555 = vmatmul.bf16.gmra.mxu2 %v6029_v33  ;;  %v1363_v45 = vld [vmem:[#allocation2 + $0x94] sm:$0xf]  ;;  %v1364_v48 = vld [vmem:[#allocation2 + $0x98] sm:$0x1]  ;;  %2471 = vmatmul.bf16.gmra.mxu1 %v6038_v11 }
 0x1ae   : > { %1300 = vst [vmem:[#allocation2 + $0x9c] sm:$0xf] %v1299_v47  ;;  %v1904_v61 = vrot.slane %v1363_v45, 5  ;;  %v1681_v37 = vshll.u32 %v1363_v45, 16  ;;  %v1104_v50 = vshrl.u32 %v762_v57, 16  ;;  %v1685_v54 = vshrl.u32 %v1363_v45, 16 }
 0x1af   : > { %v2516_v55 = vpop.f32.mrf.mxu2  ;;  %v690_v56 = vpop.f32.mrf.mxu0  ;;  %v1907_v2 = vrot.slane %v1364_v48, 5  ;;  %v1107_v16 = vshll.u32 %v762_v57, 16  ;;  %v1302_v47 = vld [vmem:[#allocation2 + $0xa4] sm:$0x1]  ;;  %v1691_v23 = vshll.u32 %v1364_v48, 16 }
 0x1b0   : > { %v1905_v59 = vsel %vm5685_vm11, %v4401_v26, %v1904_v61  ;;  %v1906_v62 = vrot.slane %v1904_v61, 4  ;;  %v1683_v35 = vrot.slane %v1681_v37, 5  ;;  %v1106_v43 = vrot.slane %v1104_v50, 7 }
 0x1b1   : > { %v2517_v29 = vadd.f32 %v2516_v55, %v5989_v6  ;;  %v691_v63 = vadd.f32 %v5868_v41, %v690_v56  ;;  %v2082_v45 = vunpack.c.l.b16 %v1905_v59  ;;  %v1687_v33 = vrot.slane %v1685_v54, 4 }
 0x1b2   : > { %v2607_v24 = vpop.f32.mrf.mxu3  ;;  %v1908_v38 = vsel %vm5685_vm11, %v1906_v62, %v1907_v2  ;;  %v1109_v26 = vor.u32 %v1107_v16, %v1106_v43  ;;  %v1111_v61 = vrot.slane %v1106_v43, 4  ;;  %2852 = vmatmul.bf16.gmra.mxu0 %v6047_v53  ;;  %v6050_v57 = vpop.f32.mrf.mxu1  ;;  %v1684_v50 = vsel %vm5697_vm14, %v1679_v58, %v1683_v35  ;;  %v827_v43 = vld [vmem:[#allocation2 + $0xc0] sm:$0x1] }
 0x1b3   : > { %v731_v37 = vmax.f32 %v691_v63, 0.0  ;;  %v2083_v6 = vunpack.c.l.b16 %v1908_v38  ;;  %v1688_v55 = vor.u32 %v1687_v33, %v1683_v35  ;;  %v881_v56 = vsel %vm5641_vm4, 0, %v880_v30 }
 0x1b4   : > { %v6056_v54 = vadd.f32 %v2605_v10, %v2517_v29  ;;  %v1110_v48 = vsel %vm5674_vm8, %v1102_v27, %v1109_v26  ;;  %v1303_v59 = vsel %vm5634_vm2, %v1111_v61, %v1302_v47  ;;  %882 = vst [vmem:[#allocation2 + $0xbc] sm:$0x1] %v881_v56  ;;  %v1693_v33 = vrot.slane %v1691_v23, 5 }
 0x1b5   : > { %v763_v62 = vpack.c.bf16 %v731_v37, %v731_v37  ;;  %v6062_v2 = vpack.c.b16 %v2083_v6, %v2082_v45  ;;  %v1365_v44 = vld [vmem:[#allocation2 + $0x9c] sm:$0xf]  ;;  %1301 = vst [vmem:[#allocation2 + $0xa0] sm:$0xf] %v1110_v48  ;;  %v1689_v58 = vrot.slane %v1688_v55, 4  ;;  %v2018_v29 = vunpack.c.l.b16 %v1684_v50 }
 0x1b6   : > { %v1696_v35 = vshrl.u32 %v1365_v44, 16  ;;  %v1699_v16 = vshll.u32 %v1365_v44, 16  ;;  %1304 = vst [vmem:[#allocation2 + $0xa4] sm:$0x1] %v1303_v59  ;;  %v828_v27 = vsel %vm5634_vm2, 0, %v827_v43 }
 0x1b7   : > { %7092 = vst [vmem:[#allocation35_spill] sm:$0xff] %v6062_v2  ;;  %v1113_v10 = vshrl.u32 %v763_v62, 16  ;;  %2649 = vmatmul.bf16.gmra.mxu3 %v6062_v2  ;;  %v1116_v63 = vshll.u32 %v763_v62, 16  ;;  %v2518_v30 = vpop.f32.mrf.mxu2  ;;  %v692_v47 = vpop.f32.mrf.mxu0  ;;  %v1694_v38 = vsel %vm5697_vm14, %v1689_v58, %v1693_v33  ;;  %v1305_v55 = vld [vmem:[#allocation2 + $0xa8] sm:$0xf] }
 0x1b8   : > { %v1698_v45 = vrot.slane %v1696_v35, 4  ;;  %v1701_v26 = vrot.slane %v1699_v16, 5  ;;  %829 = vst [vmem:[#allocation2 + $0xc0] sm:$0x1] %v828_v27  ;;  %v2519_v61 = vadd.f32 %v2518_v30, %v6008_v13  ;;  %v693_v37 = vadd.f32 %v5868_v41, %v692_v47 }
 0x1b9   : > { %v1115_v23 = vrot.slane %v1113_v10, 7  ;;  %v2019_v6 = vunpack.c.l.b16 %v1694_v38  ;;  %v4402_v16 = vrot.slane %v1365_v44, 9  ;;  %v4932_v44 = vld [vmem:[#allocation8 + $0x1a8] sm:$0xff] }
 0x1ba   : > { %v2610_v50 = vpop.f32.mrf.mxu3  ;;  %v732_v48 = vmax.f32 %v693_v37, 0.0  ;;  %v1702_v62 = vor.u32 %v1701_v26, %v1698_v45  ;;  %v6073_v43 = vpop.f32.mrf.mxu1  ;;  %v6075_v2 = vadd.f32 %v2607_v24, %v2519_v61  ;;  %3326 = vmatpush.bf16.msrb.mxu3 %v4932_v44 }
 0x1bb   : > { %v1118_v56 = vor.u32 %v1116_v63, %v1115_v23  ;;  %v6071_v59 = vpack.c.b16 %v2019_v6, %v2018_v29  ;;  %v1119_v63 = vrot.slane %v1115_v23, 4  ;;  %v1316_v39 = vld [vmem:[#allocation2 + $0xbc] sm:$0x1] }
 0x1bc   : > { %v764_v33 = vpack.c.bf16 %v732_v48, %v732_v48  ;;  %v6080_v13 = vld [vmem:[#allocation2 + $0x9c] sm:$0xff]  ;;  %v1703_v24 = vrot.slane %v1702_v62, 4 }
 0x1bd   : > { %7093 = vst [vmem:[#allocation36_spill] sm:$0xff] %v6071_v59  ;;  %v1306_v58 = vsel %vm5663_vm6, %v1118_v56, %v1305_v55  ;;  %2560 = vmatmul.bf16.gmra.mxu2 %v6071_v59  ;;  %v1366_v35 = vld [vmem:[#allocation2 + $0xa0] sm:$0xf]  ;;  %v1367_v10 = vld [vmem:[#allocation2 + $0xa4] sm:$0x1]  ;;  %2476 = vmatmul.bf16.gmra.mxu1 %v6080_v13 }
 0x1be   : > { %1307 = vst [vmem:[#allocation2 + $0xa8] sm:$0xf] %v1306_v58  ;;  %v1911_v27 = vrot.slane %v1366_v35, 5  ;;  %v1705_v29 = vshll.u32 %v1366_v35, 16  ;;  %v1121_v30 = vshrl.u32 %v764_v33, 16  ;;  %v1709_v47 = vshrl.u32 %v1366_v35, 16 }
 0x1bf   : > { %v2521_v38 = vpop.f32.mrf.mxu2  ;;  %v695_v45 = vpop.f32.mrf.mxu0  ;;  %v1914_v37 = vrot.slane %v1367_v10, 5  ;;  %v4900_v55 = vld [vmem:[#allocation8 + $0xa8] sm:$0xff]  ;;  %v1124_v48 = vshll.u32 %v764_v33, 16  ;;  %v883_v59 = vld [vmem:[#allocation2 + $0xc8] sm:$0x1] }
 0x1c0   : > { %v1912_v26 = vsel %vm5685_vm11, %v4402_v16, %v1911_v27  ;;  %v1913_v61 = vrot.slane %v1911_v27, 4  ;;  %v1707_v6 = vrot.slane %v1705_v29, 5  ;;  %v1123_v56 = vrot.slane %v1121_v30, 7  ;;  %2999 = vmatpush.bf16.msrb.mxu2 %v4900_v55  ;;  %v6089_v30 = vld [vmem:[#allocation2 + $0x48] sm:$0xff] }
 0x1c1   : > { %v2522_v58 = vadd.f32 %v2521_v38, %v6031_v4  ;;  %v696_v23 = vadd.f32 %v5868_v41, %v695_v45  ;;  %v2084_v8 = vunpack.c.l.b16 %v1912_v26  ;;  %v1711_v1 = vrot.slane %v1709_v47, 4 }
 0x1c2   : > { %v2612_v62 = vpop.f32.mrf.mxu3  ;;  %v1915_v35 = vsel %vm5685_vm11, %v1913_v61, %v1914_v37  ;;  %v1715_v16 = vshll.u32 %v1367_v10, 16  ;;  %v1126_v27 = vor.u32 %v1124_v48, %v1123_v56  ;;  %v1128_v29 = vrot.slane %v1123_v56, 4  ;;  %2857 = vmatmul.bf16.gmra.mxu0 %v6089_v30  ;;  %v6092_v41 = vpop.f32.mrf.mxu1  ;;  %v4887_v56 = vld [vmem:[#allocation8 + $0x40] sm:$0xff] }
 0x1c3   : > { %v733_v31 = vmax.f32 %v696_v23, 0.0  ;;  %v2085_v4 = vunpack.c.l.b16 %v1915_v35  ;;  %v1708_v33 = vsel %vm5697_vm14, %v1703_v24, %v1707_v6  ;;  %v1712_v38 = vor.u32 %v1711_v1, %v1707_v6  ;;  %2915 = vmatpush.bf16.msrb.mxu1 %v4887_v56 }
 0x1c4   : > { %v884_v47 = vsel %vm5641_vm4, 0, %v883_v59  ;;  %v6098_v10 = vadd.f32 %v2610_v50, %v2522_v58  ;;  %v1127_v45 = vsel %vm5674_vm8, %v1119_v63, %v1126_v27  ;;  %v1310_v26 = vsel %vm5634_vm2, %v1128_v29, %v1309_v36 }
 0x1c5   : > { %v765_v61 = vpack.c.bf16 %v733_v31, %v733_v31  ;;  %v6104_v37 = vpack.c.b16 %v2085_v4, %v2084_v8  ;;  %v1368_v55 = vld [vmem:[#allocation2 + $0xa8] sm:$0xf]  ;;  %885 = vst [vmem:[#allocation2 + $0xc8] sm:$0x1] %v884_v47  ;;  %v1713_v44 = vrot.slane %v1712_v38, 4  ;;  %v1717_v24 = vrot.slane %v1715_v16, 5 }
 0x1c6   : > { %1308 = vst [vmem:[#allocation2 + $0xac] sm:$0xf] %v1127_v45  ;;  %v1720_v1 = vshrl.u32 %v1368_v55, 16  ;;  %v1723_v6 = vshll.u32 %v1368_v55, 16  ;;  %v2020_v50 = vunpack.c.l.b16 %v1708_v33  ;;  %v6115_v16 = vld [vmem:[%s6989_s4] ss:$0 sm:$0xff] }
 0x1c7   : > { %7094 = vst [vmem:[#allocation37_spill] sm:$0xff] %v6104_v37  ;;  %v1130_v59 = vshrl.u32 %v765_v61, 16  ;;  %2654 = vmatmul.bf16.gmra.mxu3 %v6104_v37  ;;  %v1133_v63 = vshll.u32 %v765_v61, 16  ;;  %v2523_v48 = vpop.f32.mrf.mxu2  ;;  %v697_v58 = vpop.f32.mrf.mxu0  ;;  %v1718_v31 = vsel %vm5697_vm14, %v1713_v44, %v1717_v24  ;;  %v1312_v4 = vld [vmem:[#allocation2 + $0xb4] sm:$0xf]  ;;  %v4931_v37 = vld [vmem:[#allocation8 + $0x1a0] sm:$0xff] }
 0x1c8   : > { %1311 = vst [vmem:[#allocation2 + $0xb0] sm:$0x1] %v1310_v26  ;;  %v1722_v36 = vrot.slane %v1720_v1, 4  ;;  %v1725_v8 = vrot.slane %v1723_v6, 5  ;;  %v2524_v35 = vadd.f32 %v2523_v48, %v6050_v57  ;;  %v698_v27 = vadd.f32 %v6115_v16, %v697_v58  ;;  %3327 = vmatpush.bf16.msrb.mxu3 %v4931_v37 }
 0x1c9   : > { %v6109_v23 = vrot.slane %v1130_v59, 7  ;;  %v2021_v29 = vunpack.c.l.b16 %v1718_v31  ;;  %v4403_v59 = vrot.slane %v1368_v55, 9 }
 0x1ca   : > { %v2615_v33 = vpop.f32.mrf.mxu3  ;;  %v734_v47 = vmax.f32 %v698_v27, 0.0  ;;  %v1726_v26 = vor.u32 %v1725_v8, %v1722_v36  ;;  %v6121_v61 = vpop.f32.mrf.mxu1  ;;  %v6123_v57 = vadd.f32 %v2612_v62, %v2524_v35 }
 0x1cb   : > { %v1135_v38 = vor.u32 %v1133_v63, %v6109_v23  ;;  %v6119_v45 = vpack.c.b16 %v2021_v29, %v2020_v50  ;;  %v1136_v48 = vrot.slane %v6109_v23, 4  ;;  %v4899_v23 = vld [vmem:[#allocation8 + $0xa0] sm:$0xff] }
 0x1cc   : > { %v766_v24 = vpack.c.bf16 %v734_v47, %v734_v47  ;;  %v1727_v62 = vrot.slane %v1726_v26, 4  ;;  %3000 = vmatpush.bf16.msrb.mxu2 %v4899_v23 }
 0x1cd   : > { %7095 = vst [vmem:[#allocation38_spill] sm:$0xff] %v6119_v45  ;;  %v1313_v44 = vsel %vm5663_vm6, %v1135_v38, %v1312_v4  ;;  %2565 = vmatmul.bf16.gmra.mxu2 %v6119_v45  ;;  %v6128_v1 = vld [vmem:[#allocation2 + $0xa8] sm:$0xff] }
 0x1ce   : > { %v1369_v6 = vld [vmem:[#allocation2 + $0xac] sm:$0xf]  ;;  %1314 = vst [vmem:[#allocation2 + $0xb4] sm:$0xf] %v1313_v44  ;;  %v1138_v58 = vshrl.u32 %v766_v24, 16  ;;  %2481 = vmatmul.bf16.gmra.mxu1 %v6128_v1  ;;  %v1141_v38 = vshll.u32 %v766_v24, 16 }
 0x1cf   : > { %v1370_v56 = vld [vmem:[#allocation2 + $0xb0] sm:$0x1]  ;;  %v1918_v63 = vrot.slane %v1369_v6, 5  ;;  %v1729_v50 = vshll.u32 %v1369_v6, 16  ;;  %v1733_v31 = vshrl.u32 %v1369_v6, 16  ;;  %v2526_v36 = vpop.f32.mrf.mxu2  ;;  %v700_v8 = vpop.f32.mrf.mxu0 }
 0x1d0   : > { %v1921_v29 = vrot.slane %v1370_v56, 5  ;;  %v1140_v55 = vrot.slane %v1138_v58, 7  ;;  %v2527_v47 = vadd.f32 %v2526_v36, %v6073_v43  ;;  %v701_v44 = vadd.f32 %v6115_v16, %v700_v8  ;;  %v835_v45 = vld [vmem:[#allocation2 + $0x8] sm:$0x1]  ;;  %v6138_v58 = vld [vmem:[#allocation2 + $0x54] sm:$0xff] }
 0x1d1   : > { %v1919_v35 = vsel %vm5685_vm11, %v4403_v59, %v1918_v63  ;;  %v1920_v27 = vrot.slane %v1918_v63, 4  ;;  %v1731_v4 = vrot.slane %v1729_v50, 5  ;;  %v1735_v20 = vrot.slane %v1733_v31, 4  ;;  %7096 = vst [vmem:[#allocation39_spill] sm:$0xff] %v6138_v58 }
 0x1d2   : > { %v2617_v26 = vpop.f32.mrf.mxu3  ;;  %v2086_v7 = vunpack.c.l.b16 %v1919_v35  ;;  %v1739_v59 = vshll.u32 %v1370_v56, 16  ;;  %v1143_v63 = vor.u32 %v1141_v38, %v1140_v55  ;;  %v1145_v51 = vrot.slane %v1140_v55, 4  ;;  %2862 = vmatmul.bf16.gmra.mxu0 %v6138_v58  ;;  %v6141_v24 = vpop.f32.mrf.mxu1  ;;  %v1323_v58 = vld [vmem:[#allocation2 + $0xc8] sm:$0x1] }
 0x1d3   : > { %v1922_v6 = vsel %vm5685_vm11, %v1920_v27, %v1921_v29  ;;  %v735_v50 = vmax.f32 %v701_v44, 0.0  ;;  %v1732_v36 = vsel %vm5697_vm14, %v1727_v62, %v1731_v4  ;;  %v1736_v8 = vor.u32 %v1735_v20, %v1731_v4 }
 0x1d4   : > { %v2087_v43 = vunpack.c.l.b16 %v1922_v6  ;;  %v836_v31 = vsel %vm5641_vm4, 0, %v835_v45  ;;  %v6147_v56 = vadd.f32 %v2615_v33, %v2527_v47  ;;  %v1144_v35 = vsel %vm5674_vm8, %v1136_v48, %v1143_v63 }
 0x1d5   : > { %v1317_v27 = vsel %vm5634_vm2, %v1145_v51, %v1316_v39  ;;  %v767_v29 = vpack.c.bf16 %v735_v50, %v735_v50  ;;  %v1371_v38 = vld [vmem:[#allocation2 + $0xb4] sm:$0xf]  ;;  %837 = vst [vmem:[#allocation2 + $0x8] sm:$0x1] %v836_v31  ;;  %v1737_v62 = vrot.slane %v1736_v8, 4  ;;  %v1741_v20 = vrot.slane %v1739_v59, 5 }
 0x1d6   : > { %v6153_v55 = vpack.c.b16 %v2087_v43, %v2086_v7  ;;  %1315 = vst [vmem:[#allocation2 + $0xb8] sm:$0xf] %v1144_v35  ;;  %v1744_v37 = vshrl.u32 %v1371_v38, 16  ;;  %v1747_v4 = vshll.u32 %v1371_v38, 16  ;;  %v2022_v33 = vunpack.c.l.b16 %v1732_v36  ;;  %v4930_v50 = vld [vmem:[#allocation8 + $0x198] sm:$0xff] }
 0x1d7   : > { %1318 = vst [vmem:[#allocation2 + $0xbc] sm:$0x1] %v1317_v27  ;;  %v1147_v45 = vshrl.u32 %v767_v29, 16  ;;  %v1150_v47 = vshll.u32 %v767_v29, 16  ;;  %v2528_v48 = vpop.f32.mrf.mxu2  ;;  %v702_v44 = vpop.f32.mrf.mxu0  ;;  %v1742_v51 = vsel %vm5697_vm14, %v1737_v62, %v1741_v20  ;;  %v6162_v43 = vld [vmem:[#allocation2] sm:$0xf]  ;;  %3328 = vmatpush.bf16.msrb.mxu3 %v4930_v50 }
 0x1d8   : > { %7097 = vst [vmem:[#allocation40_spill] sm:$0xff] %v6153_v55  ;;  %2659 = vmatmul.bf16.gmra.mxu3 %v6153_v55  ;;  %v1746_v39 = vrot.slane %v1744_v37, 4  ;;  %v1749_v7 = vrot.slane %v1747_v4, 5  ;;  %v2529_v6 = vadd.f32 %v2528_v48, %v6092_v41  ;;  %v703_v59 = vadd.f32 %v6115_v16, %v702_v44  ;;  %v1319_v8 = vld [vmem:[#allocation2 + $0xc0] sm:$0xf] }
 0x1d9   : > { %v6158_v23 = vrot.slane %v1147_v45, 7  ;;  %v2023_v63 = vunpack.c.l.b16 %v1742_v51  ;;  %v6166_v31 = vld [vmem:[#allocation2 + $0x4] sm:$0xf]  ;;  %v4404_v41 = vrot.slane %v1371_v38, 9  ;;  %v1384_v16 = vshrl.u32 %v6162_v43, 16 }
 0x1da   : > { %v6164_v36 = vpop.f32.mrf.mxu3  ;;  %v736_v27 = vmax.f32 %v703_v59, 0.0  ;;  %v1750_v62 = vor.u32 %v1749_v7, %v1746_v39  ;;  %v6171_v20 = vpop.f32.mrf.mxu1  ;;  %v6174_v37 = vadd.f32 %v2617_v26, %v2529_v6  ;;  %v1387_v44 = vshll.u32 %v6162_v43, 16 }
 0x1db   : > { %v1152_v35 = vor.u32 %v1150_v47, %v6158_v23  ;;  %v6169_v29 = vpack.c.b16 %v2023_v63, %v2022_v33  ;;  %v4898_v33 = vld [vmem:[#allocation8 + $0x98] sm:$0xff]  ;;  %v1393_v51 = vshll.u32 %v6166_v31, 16  ;;  %v1153_v26 = vrot.slane %v6158_v23, 4  ;;  %v4929_v63 = vld [vmem:[#allocation8 + $0x190] sm:$0xff] }
 0x1dc   : > { %v768_v45 = vpack.c.bf16 %v736_v27, %v736_v27  ;;  %v6185_v0 = vrot.slane %v1750_v62, 4  ;;  %3001 = vmatpush.bf16.msrb.mxu2 %v4898_v33  ;;  %3329 = vmatpush.bf16.msrb.mxu3 %v4929_v63  ;;  %v4942_v62 = vld [vmem:[#allocation8 + $0x1f8] sm:$0xff]  ;;  %v4928_v33 = vld [vmem:[#allocation8 + $0x188] sm:$0xff] }
 0x1dd   : > { %7098 = vst [vmem:[#allocation41_spill] sm:$0xff] %v6169_v29  ;;  %v1320_v4 = vsel %vm5663_vm6, %v1152_v35, %v1319_v8  ;;  %2570 = vmatmul.bf16.gmra.mxu2 %v6169_v29  ;;  %v6179_v48 = vld [vmem:[#allocation2 + $0xb4] sm:$0xff]  ;;  %3413 = vmatpush.bf16.msra.mxu0 %v4942_v62  ;;  %v6211_v15 = vrot.slane %v1393_v51, 5 }
 0x1de   : > { %7099 = vst [vmem:[#allocation42_spill] sm:$0xff] %v6179_v48  ;;  %v1372_v47 = vld [vmem:[#allocation2 + $0xb8] sm:$0xf]  ;;  %v1373_v38 = vld [vmem:[#allocation2 + $0xbc] sm:$0x1]  ;;  %v1155_v6 = vshrl.u32 %v768_v45, 16  ;;  %2486 = vmatmul.bf16.gmra.mxu1 %v6179_v48 }
 0x1df   : > { %1321 = vst [vmem:[#allocation2 + $0xc0] sm:$0xf] %v1320_v4  ;;  %v1925_v39 = vrot.slane %v1372_v47, 5  ;;  %v1753_v7 = vshll.u32 %v1372_v47, 16  ;;  %v1757_v59 = vshrl.u32 %v1372_v47, 16  ;;  %v2531_v50 = vpop.f32.mrf.mxu2  ;;  %v2828_v8 = vpop.f32.mrf.mxu0  ;;  %v1928_v4 = vrot.slane %v1373_v38, 5 }
 0x1e0   : > { %v1157_v55 = vrot.slane %v1155_v6, 7  ;;  %v1158_v29 = vshll.u32 %v768_v45, 16  ;;  %v2532_v23 = vadd.f32 %v2531_v50, %v6121_v61  ;;  %v6191_v5 = vadd.f32 %v2828_v8, %v5972_v14  ;;  %v4897_v47 = vld [vmem:[#allocation8 + $0x90] sm:$0xff]  ;;  %v4950_v6 = vld [vmem:[#allocation8 + $0x238] sm:$0xff]  ;;  %v6196_v61 = vld [vmem:[#allocation2 + $0x60] sm:$0xff]  ;;  %3330 = vmatpush.bf16.msrb.mxu3 %v4928_v33 }
 0x1e1   : > { %v1926_v35 = vsel %vm5685_vm11, %v4404_v41, %v1925_v39  ;;  %v1927_v27 = vrot.slane %v1925_v39, 4  ;;  %v1755_v22 = vrot.slane %v1753_v7, 5  ;;  %v1759_v41 = vrot.slane %v1757_v59, 4  ;;  %3002 = vmatpush.bf16.msrb.mxu2 %v4897_v47  ;;  %v4896_v50 = vld [vmem:[#allocation8 + $0x88] sm:$0xff]  ;;  %3502 = vmatpush.bf16.msra.mxu1 %v4950_v6  ;;  %v4895_v51 = vld [vmem:[#allocation8 + $0x80] sm:$0xff] }
 0x1e2   : > { %7100 = vst [vmem:[#allocation43_spill] sm:$0xff] %v6191_v5  ;;  %v2622_v48 = vpop.f32.mrf.mxu3  ;;  %v1763_v39 = vshll.u32 %v1373_v38, 16  ;;  %v1397_v7 = vshrl.u32 %v6166_v31, 16  ;;  %v1160_v45 = vor.u32 %v1158_v29, %v1157_v55  ;;  %v1162_v49 = vrot.slane %v1157_v55, 4  ;;  %2867 = vmatmul.bf16.gmra.mxu0 %v6196_v61  ;;  %v6199_v8 = vpop.f32.mrf.mxu1 }
 0x1e3   : > { %v1929_v32 = vsel %vm5685_vm11, %v1927_v27, %v1928_v4  ;;  %v2088_v14 = vunpack.c.l.b16 %v1926_v35  ;;  %v1760_v5 = vor.u32 %v1759_v41, %v1755_v22  ;;  %v1386_v27 = vrot.slane %v1384_v16, 4  ;;  %v4927_v4 = vld [vmem:[#allocation8 + $0x180] sm:$0xff] }
 0x1e4   : > { %v2089_v63 = vunpack.c.l.b16 %v1929_v32  ;;  %v1389_v59 = vrot.slane %v1387_v44, 5  ;;  %v1161_v38 = vsel %vm5674_vm8, %v1153_v26, %v1160_v45  ;;  %v1324_v55 = vsel %vm5634_vm2, %v1162_v49, %v1323_v58  ;;  %3331 = vmatpush.bf16.msrb.mxu3 %v4927_v4 }
 0x1e5   : > { %v1756_v32 = vsel %vm5697_vm14, %v6185_v0, %v1755_v22  ;;  %1322 = vst [vmem:[#allocation2 + $0xc4] sm:$0xf] %v1161_v38  ;;  %v1761_v62 = vrot.slane %v1760_v5, 4  ;;  %v1765_v16 = vrot.slane %v1763_v39, 5  ;;  %v1399_v49 = vrot.slane %v1397_v7, 4  ;;  %3003 = vmatpush.bf16.msrb.mxu2 %v4896_v50 }
 0x1e6   : > { %v6205_v29 = vpack.c.b16 %v2089_v63, %v2088_v14  ;;  %v1374_v35 = vld [vmem:[#allocation2 + $0xc0] sm:$0xf]  ;;  %1325 = vst [vmem:[#allocation2 + $0xc8] sm:$0x1] %v1324_v55  ;;  %v6215_v0 = vld [vmem:[#allocation2 + $0x8] sm:$0x1]  ;;  %v1390_v33 = vor.u32 %v1389_v59, %v1386_v27  ;;  %v2024_v39 = vunpack.c.l.b16 %v1756_v32  ;;  %v6222_v63 = vadd.f32 %v6164_v36, %v2532_v23 }
 0x1e7   : > { %v2171_v44 = vshrl.u32 %v1374_v35, 16  ;;  %v2174_v47 = vshll.u32 %v1374_v35, 16  ;;  %v2533_v58 = vpop.f32.mrf.mxu2  ;;  %v2830_v26 = vpop.f32.mrf.mxu0  ;;  %v1766_v22 = vsel %vm5697_vm14, %v1761_v62, %v1765_v16  ;;  %v1400_v38 = vor.u32 %v1399_v49, %v6211_v15 }
 0x1e8   : > { %2664 = vmatmul.bf16.gmra.mxu3 %v6205_v29  ;;  %v2534_v5 = vadd.f32 %v2533_v58, %v6141_v24  ;;  %v6219_v41 = vadd.f32 %v2830_v26, %v5991_v9  ;;  %v2025_v6 = vunpack.c.l.b16 %v1766_v22  ;;  %v1403_v27 = vshll.u32 %v6215_v0, 16 }
 0x1e9   : > { %v2173_v7 = vrot.slane %v2171_v44, 4  ;;  %v2176_v14 = vrot.slane %v2174_v47, 5  ;;  %3004 = vmatpush.bf16.msrb.mxu2 %v4895_v51  ;;  %v4469_v32 = vrot.slane %v1374_v35, 9  ;;  %v1391_v4 = vrot.slane %v1390_v33, 4  ;;  %3932 = vmatpush.bf16.msra.mxu3 %v4966_v42 }
 0x1ea   : > { %v2625_v45 = vpop.f32.mrf.mxu3  ;;  %v6224_v50 = vpack.c.b16 %v2025_v6, %v2024_v39  ;;  %v6228_v24 = vadd.f32 %v2622_v48, %v2534_v5  ;;  %v6230_v9 = vpop.f32.mrf.mxu1  ;;  %v1401_v48 = vrot.slane %v1400_v38, 4  ;;  %v1405_v58 = vrot.slane %v1403_v27, 5  ;;  %v6244_v27 = vld [vmem:[#allocation2 + $0x6c] sm:$0xff] }
 0x1eb   : > { %v2177_v62 = vor.u32 %v2176_v14, %v2173_v7 }
 0x1ec   : > { %v6233_v59 = vld [vmem:[#allocation2 + $0xc0] sm:$0xff] }
 0x1ed   : > { %2575 = vmatmul.bf16.gmra.mxu2 %v6224_v50  ;;  %v1375_v55 = vld [vmem:[#allocation2 + $0xc4] sm:$0xf]  ;;  %v1376_v36 = vld [vmem:[#allocation2 + $0xc8] sm:$0x1] }
 0x1ee   : > { %v2199_v23 = vrot.slane %v1375_v55, 5  ;;  %v2180_v16 = vshll.u32 %v1375_v55, 16  ;;  %v2184_v44 = vshrl.u32 %v1375_v55, 16  ;;  %2491 = vmatmul.bf16.gmra.mxu1 %v6233_v59  ;;  %v2202_v47 = vrot.slane %v1376_v36, 5 }
 0x1ef   : > { %v2190_v49 = vshll.u32 %v1376_v36, 16  ;;  %v2536_v26 = vpop.f32.mrf.mxu2  ;;  %v2833_v22 = vpop.f32.mrf.mxu0  ;;  %v2178_v55 = vrot.slane %v2177_v62, 4  ;;  %v1406_v62 = vsel %vm5697_vm14, %v1401_v48, %v1405_v58  ;;  %v1820_v58 = vrot.slane %v6166_v31, 5  ;;  %v4941_v31 = vld [vmem:[#allocation8 + $0x1f0] sm:$0xff] }
 0x1f0   : > { %v2200_v5 = vsel %vm5685_vm11, %v4469_v32, %v2199_v23  ;;  %v2201_v39 = vrot.slane %v2199_v23, 4  ;;  %v2182_v6 = vrot.slane %v2180_v16, 5  ;;  %v2186_v35 = vrot.slane %v2184_v44, 4  ;;  %3414 = vmatpush.bf16.msra.mxu0 %v4941_v31 }
 0x1f1   : > { %v2537_v33 = vadd.f32 %v2536_v26, %v6171_v20  ;;  %v6240_v51 = vadd.f32 %v2833_v22, %v6014_v18  ;;  %v2212_v36 = vunpack.c.l.b16 %v2200_v5  ;;  %v1396_v23 = vsel %vm5697_vm14, %v1391_v4, %v6211_v15 }
 0x1f2   : > { %v2627_v7 = vpop.f32.mrf.mxu3  ;;  %v2203_v14 = vsel %vm5685_vm11, %v2201_v39, %v2202_v47  ;;  %v2187_v38 = vor.u32 %v2186_v35, %v2182_v6  ;;  %2872 = vmatmul.bf16.gmra.mxu0 %v6244_v27  ;;  %v2454_v18 = vpop.f32.mrf.mxu1  ;;  %v2183_v16 = vsel %vm5697_vm14, %v2178_v55, %v2182_v6  ;;  %v2192_v47 = vrot.slane %v2190_v49, 5 }
 0x1f3   : > { %v2213_v32 = vunpack.c.l.b16 %v2203_v14  ;;  %v6250_v20 = vadd.f32 %v2625_v45, %v2537_v33  ;;  %v2208_v5 = vunpack.c.l.b16 %v2183_v16  ;;  %v1994_v45 = vunpack.c.l.b16 %v1396_v23 }
 0x1f4   : > { %v2188_v44 = vrot.slane %v2187_v38, 4  ;;  %v1995_v4 = vunpack.c.l.b16 %v1406_v62  ;;  %v1823_v23 = vrot.slane %v6215_v0, 5 }
 0x1f5   : > { %v6256_v26 = vpack.c.b16 %v2213_v32, %v2212_v36  ;;  %v4389_v36 = vrot.slane %v6162_v43, 9  ;;  %v1822_v32 = vrot.slane %v1820_v58, 4 }
 0x1f6   : > { %v2193_v22 = vsel %vm5697_vm14, %v2188_v44, %v2192_v47  ;;  %v2026_v14 = vpack.c.b16 %v1995_v4, %v1994_v45  ;;  %v4949_v47 = vld [vmem:[#allocation8 + $0x230] sm:$0xff] }
 0x1f7   : > { %7101 = vst [vmem:[#allocation44_spill] sm:$0xff] %v6256_v26  ;;  %v2209_v15 = vunpack.c.l.b16 %v2193_v22  ;;  %v2538_v39 = vpop.f32.mrf.mxu2  ;;  %v2835_v35 = vpop.f32.mrf.mxu0  ;;  %v1821_v62 = vsel %vm5685_vm11, %v4389_v36, %v1820_v58  ;;  %v1824_v43 = vsel %vm5685_vm11, %v1822_v32, %v1823_v23  ;;  %v6281_v22 = vld [vmem:[#allocation2 + $0x78] sm:$0xff]  ;;  %3503 = vmatpush.bf16.msra.mxu1 %v4949_v47 }
 0x1f8   : > { %2669 = vmatmul.bf16.gmra.mxu3 %v6256_v26  ;;  %v2539_v6 = vadd.f32 %v2538_v39, %v6199_v8  ;;  %v6263_v49 = vadd.f32 %v2835_v35, %v6033_v40 }
 0x1f9   : > { %v6265_v33 = vpack.c.b16 %v2209_v15, %v2208_v5  ;;  %v2059_v5 = vunpack.c.l.b16 %v1824_v43  ;;  %v5171_v15 = vld [vmem:[#allocation2 + $0x18] sm:$0xff] }
 0x1fa   : > { %v2630_v48 = vpop.f32.mrf.mxu3  ;;  %v6268_v55 = vadd.f32 %v2627_v7, %v2539_v6  ;;  %v2457_v38 = vpop.f32.mrf.mxu1 }
 0x1fd   : > { %2580 = vmatmul.bf16.gmra.mxu2 %v6265_v33 }
 0x1fe   : > { %2916 = vmatmul.bf16.vlgmr.msrb.gmra.mxu1 %v2026_v14 }
 0x1ff   : > { %v2541_v8 = vpop.f32.mrf.mxu2  ;;  %v2838_v40 = vpop.f32.mrf.mxu0 }
 0x200   : > { %v2542_v16 = vadd.f32 %v2541_v8, %v6230_v9  ;;  %v6275_v44 = vadd.f32 %v2838_v40, %v6056_v54  ;;  %v2058_v54 = vunpack.c.l.b16 %v1821_v62 }
 0x202   : > { %v2632_v7 = vpop.f32.mrf.mxu3  ;;  %2877 = vmatmul.bf16.gmra.mxu0 %v6281_v22  ;;  %v6284_v0 = vadd.f32 %v2630_v48, %v2542_v16  ;;  %v2459_v9 = vpop.f32.mrf.mxu1  ;;  %v2090_v6 = vpack.c.b16 %v2059_v5, %v2058_v54  ;;  %v5172_v16 = vld [vmem:[#allocation2 + $0x24] sm:$0xff] }
 0x207   : > { %v2543_v45 = vpop.f32.mrf.mxu2  ;;  %v2840_v4 = vpop.f32.mrf.mxu0 }
 0x208   : > { %3332 = vmatmul.bf16.vlgmr.msrb.gmra.mxu3 %v5171_v15  ;;  %v2544_v39 = vadd.f32 %v2543_v45, %v2454_v18  ;;  %v6287_v35 = vadd.f32 %v2840_v4, %v6075_v2  ;;  %v4940_v15 = vld [vmem:[#allocation8 + $0x1e8] sm:$0xff] }
 0x209   : > { %v4948_v45 = vld [vmem:[#allocation8 + $0x228] sm:$0xff]  ;;  %3415 = vmatpush.bf16.msra.mxu0 %v4940_v15 }
 0x20a   : > { %v2635_v58 = vpop.f32.mrf.mxu3  ;;  %v6289_v14 = vadd.f32 %v2632_v7, %v2544_v39  ;;  %v2462_v36 = vpop.f32.mrf.mxu1  ;;  %3504 = vmatpush.bf16.msra.mxu1 %v4948_v45 }
 0x20d   : > { %3005 = vmatmul.bf16.vlgmr.msrb.gmra.mxu2 %v2090_v6 }
 0x20e   : > { %2921 = vmatmul.bf16.gmra.mxu1 %v5719_v46 }
 0x20f   : > { %v2546_v48 = vpop.f32.mrf.mxu2  ;;  %v2843_v32 = vpop.f32.mrf.mxu0 }
 0x210   : > { %v2547_v23 = vadd.f32 %v2546_v48, %v2457_v38  ;;  %v6293_v8 = vadd.f32 %v2843_v32, %v6098_v10 }
 0x212   : > { %v2637_v40 = vpop.f32.mrf.mxu3  ;;  %2882 = vmatmul.bf16.gmra.mxu0 %v5996_v25  ;;  %v6296_v18 = vadd.f32 %v2635_v58, %v2547_v23  ;;  %v2464_v2 = vpop.f32.mrf.mxu1 }
 0x217   : > { %v2548_v31 = vpop.f32.mrf.mxu2  ;;  %v2845_v47 = vpop.f32.mrf.mxu0 }
 0x218   : > { %3337 = vmatmul.bf16.gmra.mxu3 %v5172_v16  ;;  %v2549_v7 = vadd.f32 %v2548_v31, %v2459_v9  ;;  %v6299_v62 = vadd.f32 %v2845_v47, %v6123_v57  ;;  %v4938_v31 = vld [vmem:[#allocation8 + $0x1d8] sm:$0xff] }
 0x21a   : > { %v2640_v46 = vpop.f32.mrf.mxu3  ;;  %v6301_v43 = vadd.f32 %v2637_v40, %v2549_v7  ;;  %v2467_v38 = vpop.f32.mrf.mxu1 }
 0x21d   : > { %3010 = vmatmul.bf16.gmra.mxu2 %v5711_v21 }
 0x21e   : > { %2926 = vmatmul.bf16.gmra.mxu1 %v5746_v52 }
 0x21f   : > { %v2848_v10 = vpop.f32.mrf.mxu0 }
 0x220   : > { %v2551_v25 = vpop.f32.mrf.mxu2  ;;  %v6306_v5 = vadd.f32 %v2848_v10, %v6147_v56 }
 0x221   : > { %v2552_v54 = vadd.f32 %v2551_v25, %v2462_v36 }
 0x222   : > { %v2642_v9 = vpop.f32.mrf.mxu3  ;;  %2887 = vmatmul.bf16.gmra.mxu0 %v6038_v11  ;;  %v2469_v4 = vpop.f32.mrf.mxu1 }
 0x223   : > { %v6309_v57 = vadd.f32 %v2640_v46, %v2552_v54 }
 0x227   : > { %v2850_v39 = vpop.f32.mrf.mxu0 }
 0x228   : > { %3342 = vmatmul.bf16.gmra.mxu3 %v6005_v19  ;;  %v2553_v21 = vpop.f32.mrf.mxu2  ;;  %v6313_v58 = vadd.f32 %v2850_v39, %v6174_v37  ;;  %v4939_v19 = vld [vmem:[#allocation8 + $0x1e0] sm:$0xff] }
 0x229   : > { %v2554_v6 = vadd.f32 %v2553_v21, %v2464_v2  ;;  %3416 = vmatpush.bf16.msra.mxu0 %v4939_v19 }
 0x22a   : > { %v2645_v56 = vpop.f32.mrf.mxu3  ;;  %v2472_v48 = vpop.f32.mrf.mxu1 }
 0x22b   : > { %v6315_v36 = vadd.f32 %v2642_v9, %v2554_v6 }
 0x22d   : > { %3015 = vmatmul.bf16.gmra.mxu2 %v5738_v28  ;;  %3417 = vmatpush.bf16.msra.mxu0 %v4938_v31  ;;  %v7103_v31 = vld [vmem:[#allocation22_spill] sm:$0xff] }
 0x22e   : > { %2931 = vmatmul.bf16.gmra.mxu1 %v5773_v60 }
 0x22f   : > { %v2853_v32 = vpop.f32.mrf.mxu0 }
 0x230   : > { %v2556_v11 = vpop.f32.mrf.mxu2  ;;  %v6320_v40 = vadd.f32 %v2853_v32, %v6222_v63  ;;  %v4937_v63 = vld [vmem:[#allocation8 + $0x1d0] sm:$0xff] }
 0x231   : > { %v2557_v23 = vadd.f32 %v2556_v11, %v2467_v38  ;;  %3418 = vmatpush.bf16.msra.mxu0 %v4937_v63 }
 0x232   : > { %v2647_v16 = vpop.f32.mrf.mxu3  ;;  %2892 = vmatmul.bf16.gmra.mxu0 %v6080_v13  ;;  %v2474_v2 = vpop.f32.mrf.mxu1  ;;  %v4936_v13 = vld [vmem:[#allocation8 + $0x1c8] sm:$0xff] }
 0x233   : > { %v6323_v37 = vadd.f32 %v2645_v56, %v2557_v23 }
 0x235   : > { %3419 = vmatpush.bf16.msra.mxu0 %v4936_v13  ;;  %v7105_v13 = vld [vmem:[#allocation39_spill] sm:$0xff] }
 0x237   : > { %v2855_v7 = vpop.f32.mrf.mxu0 }
 0x238   : > { %3347 = vmatmul.bf16.gmra.mxu3 %v6047_v53  ;;  %v2558_v47 = vpop.f32.mrf.mxu2  ;;  %v6327_v38 = vadd.f32 %v2855_v7, %v6228_v24  ;;  %v4935_v24 = vld [vmem:[#allocation8 + $0x1c0] sm:$0xff] }
 0x239   : > { %v2559_v46 = vadd.f32 %v2558_v47, %v2469_v4  ;;  %v4947_v4 = vld [vmem:[#allocation8 + $0x220] sm:$0xff]  ;;  %3420 = vmatpush.bf16.msra.mxu0 %v4935_v24 }
 0x23a   : > { %v2650_v25 = vpop.f32.mrf.mxu3  ;;  %v2477_v54 = vpop.f32.mrf.mxu1  ;;  %3505 = vmatpush.bf16.msra.mxu1 %v4947_v4 }
 0x23b   : > { %v6329_v10 = vadd.f32 %v2647_v16, %v2559_v46  ;;  %v7102_v16 = vld [vmem:[#allocation20_spill] sm:$0xff] }
 0x23d   : > { %3020 = vmatmul.bf16.gmra.mxu2 %v5765_v34 }
 0x23e   : > { %2936 = vmatmul.bf16.gmra.mxu1 %v5806_v12 }
 0x23f   : > { %v2858_v53 = vpop.f32.mrf.mxu0 }
 0x240   : > { %v2561_v15 = vpop.f32.mrf.mxu2  ;;  %v6334_v9 = vadd.f32 %v2858_v53, %v6250_v20 }
 0x241   : > { %v2562_v45 = vadd.f32 %v2561_v15, %v2472_v48 }
 0x242   : > { %v2652_v21 = vpop.f32.mrf.mxu3  ;;  %2897 = vmatmul.bf16.gmra.mxu0 %v6128_v1  ;;  %v2479_v6 = vpop.f32.mrf.mxu1 }
 0x243   : > { %v6337_v39 = vadd.f32 %v2650_v25, %v2562_v45  ;;  %v7104_v25 = vld [vmem:[#allocation42_spill] sm:$0xff] }
 0x247   : > { %v2860_v11 = vpop.f32.mrf.mxu0 }
 0x248   : > { %3352 = vmatmul.bf16.gmra.mxu3 %v6089_v30  ;;  %v2563_v56 = vpop.f32.mrf.mxu2  ;;  %v6341_v48 = vadd.f32 %v2860_v11, %v6268_v55 }
 0x249   : > { %v2564_v32 = vadd.f32 %v2563_v56, %v2474_v2  ;;  %v7107_v56 = vld [vmem:[#allocation24_spill] sm:$0xff] }
 0x24a   : > { %v2655_v20 = vpop.f32.mrf.mxu3 }
 0x24b   : > { %v6343_v23 = vadd.f32 %v2652_v21, %v2564_v32  ;;  %v2482_v19 = vpop.f32.mrf.mxu1 }
 0x24d   : > { %3025 = vmatmul.bf16.gmra.mxu2 %v7102_v16 }
 0x24e   : > { %2941 = vmatmul.bf16.gmra.mxu1 %v7103_v31 }
 0x24f   : > { %v2863_v7 = vpop.f32.mrf.mxu0 }
 0x250   : > { %v2566_v47 = vpop.f32.mrf.mxu2  ;;  %v6348_v63 = vadd.f32 %v2863_v7, %v6284_v0  ;;  %v7106_v0 = vld [vmem:[#allocation21_spill] sm:$0xff]  ;;  %v4946_v7 = vld [vmem:[#allocation8 + $0x218] sm:$0xff] }
 0x251   : > { %v2567_v46 = vadd.f32 %v2566_v47, %v2477_v54  ;;  %3506 = vmatpush.bf16.msra.mxu1 %v4946_v7 }
 0x252   : > { %v2657_v30 = vpop.f32.mrf.mxu3  ;;  %2902 = vmatmul.bf16.gmra.mxu0 %v7104_v25 }
 0x253   : > { %v6351_v2 = vadd.f32 %v2655_v20, %v2567_v46  ;;  %v2484_v55 = vpop.f32.mrf.mxu1 }
 0x257   : > { %v2865_v53 = vpop.f32.mrf.mxu0 }
 0x258   : > { %3357 = vmatmul.bf16.gmra.mxu3 %v7105_v13  ;;  %v2568_v15 = vpop.f32.mrf.mxu2  ;;  %v6355_v24 = vadd.f32 %v2865_v53, %v6289_v14 }
 0x259   : > { %v2569_v45 = vadd.f32 %v2568_v15, %v2479_v6 }
 0x25b   : > { %v2660_v4 = vpop.f32.mrf.mxu3  ;;  %v6357_v21 = vadd.f32 %v2657_v30, %v2569_v45  ;;  %v2487_v54 = vpop.f32.mrf.mxu1 }
 0x25d   : > { %3030 = vmatmul.bf16.gmra.mxu2 %v7106_v0 }
 0x25e   : > { %2946 = vmatmul.bf16.gmra.mxu1 %v7107_v56 }
 0x25f   : > { %v2868_v32 = vpop.f32.mrf.mxu0 }
 0x260   : > { %v2571_v11 = vpop.f32.mrf.mxu2  ;;  %v6362_v47 = vadd.f32 %v2868_v32, %v6296_v18  ;;  %v7109_v32 = vld [vmem:[#allocation26_spill] sm:$0xff] }
 0x261   : > { %v2572_v20 = vadd.f32 %v2571_v11, %v2482_v19  ;;  %v7108_v11 = vld [vmem:[#allocation23_spill] sm:$0xff] }
 0x262   : > { %3421 = vmatmul.bf16.vlgmr.msra.gmra.mxu0 %v5746_v52 }
 0x263   : > { %v2662_v46 = vpop.f32.mrf.mxu3  ;;  %v6365_v14 = vadd.f32 %v2660_v4, %v2572_v20  ;;  %v2489_v6 = vpop.f32.mrf.mxu1 }
 0x267   : > { %v2870_v13 = vpop.f32.mrf.mxu0 }
 0x268   : > { %3362 = vmatmul.bf16.gmra.mxu3 %v6196_v61  ;;  %v2573_v30 = vpop.f32.mrf.mxu2  ;;  %v6369_v53 = vadd.f32 %v2870_v13, %v6301_v43  ;;  %v4958_v61 = vld [vmem:[#allocation9 + $0x38] sm:$0xff] }
 0x269   : > { %v2574_v15 = vadd.f32 %v2573_v30, %v2484_v55  ;;  %3775 = vmatpush.bf16.msra.mxu2 %v4958_v61 }
 0x26b   : > { %v2665_v19 = vpop.f32.mrf.mxu3  ;;  %v6371_v45 = vadd.f32 %v2662_v46, %v2574_v15  ;;  %v2492_v18 = vpop.f32.mrf.mxu1 }
 0x26d   : > { %3035 = vmatmul.bf16.gmra.mxu2 %v7108_v11 }
 0x26e   : > { %2951 = vmatmul.bf16.gmra.mxu1 %v7109_v32 }
 0x26f   : > { %v2873_v4 = vpop.f32.mrf.mxu0 }
 0x270   : > { %v2576_v52 = vpop.f32.mrf.mxu2  ;;  %v6376_v7 = vadd.f32 %v2873_v4, %v6309_v57  ;;  %v7110_v4 = vld [vmem:[#allocation25_spill] sm:$0xff] }
 0x271   : > { %v2577_v20 = vadd.f32 %v2576_v52, %v2487_v54 }
 0x272   : > { %3426 = vmatmul.bf16.gmra.mxu0 %v5773_v60  ;;  %v7111_v60 = vld [vmem:[#allocation43_spill] sm:$0xff] }
 0x273   : > { %v6379_v43 = vadd.f32 %v2665_v19, %v2577_v20  ;;  %v2494_v55 = vpop.f32.mrf.mxu1  ;;  %v2667_v46 = vpop.f32.mrf.mxu3  ;;  %v7112_v20 = vld [vmem:[#allocation28_spill] sm:$0xff] }
 0x277   : > { %v2875_v13 = vpop.f32.mrf.mxu0 }
 0x278   : > { %3367 = vmatmul.bf16.gmra.mxu3 %v6244_v27  ;;  %v2578_v30 = vpop.f32.mrf.mxu2  ;;  %v6383_v54 = vadd.f32 %v2875_v13, %v6315_v36 }
 0x279   : > { %v2579_v15 = vadd.f32 %v2578_v30, %v2489_v6  ;;  %v4945_v6 = vld [vmem:[#allocation8 + $0x210] sm:$0xff] }
 0x27a   : > { %3507 = vmatpush.bf16.msra.mxu1 %v4945_v6 }
 0x27b   : > { %v6385_v57 = vadd.f32 %v2667_v46, %v2579_v15  ;;  %v2917_v52 = vpop.f32.mrf.mxu1  ;;  %v2670_v19 = vpop.f32.mrf.mxu3 }
 0x27c   : > { %v2918_v61 = vadd.f32 %v2917_v52, %v7111_v60 }
 0x27d   : > { %3040 = vmatmul.bf16.gmra.mxu2 %v7110_v4 }
 0x27e   : > { %2956 = vmatmul.bf16.gmra.mxu1 %v7112_v20 }
 0x27f   : > { %v2878_v26 = vpop.f32.mrf.mxu0 }
 0x280   : > { %v2581_v42 = vpop.f32.mrf.mxu2  ;;  %v6391_v27 = vadd.f32 %v2878_v26, %v6323_v37 }
 0x281   : > { %v2582_v3 = vadd.f32 %v2581_v42, %v2492_v18  ;;  %v7113_v42 = vld [vmem:[#allocation27_spill] sm:$0xff] }
 0x282   : > { %3431 = vmatmul.bf16.gmra.mxu0 %v5806_v12  ;;  %v7114_v12 = vld [vmem:[#allocation30_spill] sm:$0xff] }
 0x283   : > { %v6394_v36 = vadd.f32 %v2670_v19, %v2582_v3  ;;  %v2919_v46 = vpop.f32.mrf.mxu1  ;;  %v2672_v18 = vpop.f32.mrf.mxu3 }
 0x284   : > { %v2920_v30 = vadd.f32 %v2919_v46, %v6219_v41 }
 0x287   : > { %v2880_v15 = vpop.f32.mrf.mxu0 }
 0x288   : > { %3372 = vmatmul.bf16.gmra.mxu3 %v6281_v22  ;;  %v2583_v13 = vpop.f32.mrf.mxu2  ;;  %v6399_v60 = vadd.f32 %v2880_v15, %v6329_v10  ;;  %v4965_v10 = vld [vmem:[#allocation11 + $0x30] sm:$0xff] }
 0x289   : > { %v2584_v52 = vadd.f32 %v2583_v13, %v2494_v55  ;;  %v4957_v55 = vld [vmem:[#allocation9 + $0x30] sm:$0xff]  ;;  %3933 = vmatpush.bf16.msra.mxu3 %v4965_v10 }
 0x28a   : > { %3776 = vmatpush.bf16.msra.mxu2 %v4957_v55  ;;  %v5173_v15 = vld [vmem:[#allocation2 + $0x84] sm:$0xff] }
 0x28b   : > { %v6401_v26 = vadd.f32 %v2672_v18, %v2584_v52  ;;  %v2922_v37 = vpop.f32.mrf.mxu1 }
 0x28c   : > { %v2923_v3 = vadd.f32 %v2922_v37, %v6240_v51  ;;  %v7115_v37 = vld [vmem:[#allocation29_spill] sm:$0xff] }
 0x28d   : > { %3045 = vmatmul.bf16.gmra.mxu2 %v7113_v42 }
 0x28e   : > { %2961 = vmatmul.bf16.gmra.mxu1 %v7114_v12 }
 0x28f   : > { %v2883_v41 = vpop.f32.mrf.mxu0 }
 0x290   : > { %v3006_v19 = vpop.f32.mrf.mxu2  ;;  %v6409_v22 = vadd.f32 %v2883_v41, %v6337_v39 }
 0x291   : > { %v6406_v6 = vadd.f32 %v3006_v19, %v2918_v61 }
 0x292   : > { %3436 = vmatmul.bf16.gmra.mxu0 %v7103_v31  ;;  %v7116_v31 = vld [vmem:[#allocation32_spill] sm:$0xff] }
 0x293   : > { %v2924_v46 = vpop.f32.mrf.mxu1 }
 0x294   : > { %v2925_v13 = vadd.f32 %v2924_v46, %v6263_v49  ;;  %v4944_v46 = vld [vmem:[#allocation8 + $0x208] sm:$0xff] }
 0x295   : > { %3508 = vmatpush.bf16.msra.mxu1 %v4944_v46 }
 0x297   : > { %v2885_v52 = vpop.f32.mrf.mxu0 }
 0x298   : > { %3377 = vmatmul.bf16.gmra.mxu3 %v5173_v15  ;;  %v3008_v51 = vpop.f32.mrf.mxu2  ;;  %v6416_v61 = vadd.f32 %v2885_v52, %v6343_v23  ;;  %v5174_v15 = vld [vmem:[#allocation2 + $0x90] sm:$0xff] }
 0x299   : > { %v6413_v18 = vadd.f32 %v3008_v51, %v2920_v30 }
 0x29b   : > { %v2927_v39 = vpop.f32.mrf.mxu1 }
 0x29c   : > { %v2928_v19 = vadd.f32 %v2927_v39, %v6275_v44 }
 0x29d   : > { %3050 = vmatmul.bf16.gmra.mxu2 %v7115_v37 }
 0x29e   : > { %2966 = vmatmul.bf16.gmra.mxu1 %v7116_v31 }
 0x29f   : > { %v2888_v55 = vpop.f32.mrf.mxu0 }
 0x2a0   : > { %v3011_v41 = vpop.f32.mrf.mxu2  ;;  %v6424_v49 = vadd.f32 %v2888_v55, %v6351_v2  ;;  %v7119_v55 = vld [vmem:[#allocation34_spill] sm:$0xff] }
 0x2a1   : > { %v6421_v10 = vadd.f32 %v3011_v41, %v2923_v3  ;;  %v7118_v41 = vld [vmem:[#allocation31_spill] sm:$0xff] }
 0x2a2   : > { %3441 = vmatmul.bf16.gmra.mxu0 %v7107_v56 }
 0x2a3   : > { %7117 = vst [vmem:[#allocation20_spill] sm:$0xff] %v6421_v10  ;;  %v2929_v23 = vpop.f32.mrf.mxu1 }
 0x2a4   : > { %v2930_v30 = vadd.f32 %v2929_v23, %v6287_v35  ;;  %v4956_v23 = vld [vmem:[#allocation9 + $0x28] sm:$0xff] }
 0x2a5   : > { %3777 = vmatpush.bf16.msra.mxu2 %v4956_v23  ;;  %v7123_v23 = vld [vmem:[#allocation36_spill] sm:$0xff] }
 0x2a7   : > { %v2890_v44 = vpop.f32.mrf.mxu0 }
 0x2a8   : > { %3382 = vmatmul.bf16.gmra.mxu3 %v5174_v15  ;;  %v3013_v51 = vpop.f32.mrf.mxu2  ;;  %v6431_v39 = vadd.f32 %v2890_v44, %v6357_v21  ;;  %v6441_v15 = vpop.f32.mrf.mxu3 }
 0x2a9   : > { %v6428_v52 = vadd.f32 %v3013_v51, %v2925_v13  ;;  %v4964_v13 = vld [vmem:[#allocation11 + $0x28] sm:$0xff] }
 0x2aa   : > { %3934 = vmatpush.bf16.msra.mxu3 %v4964_v13  ;;  %v5175_v51 = vld [vmem:[#allocation2 + $0x9c] sm:$0xff] }
 0x2ab   : > { %v2932_v3 = vpop.f32.mrf.mxu1 }
 0x2ac   : > { %v2933_v2 = vadd.f32 %v2932_v3, %v6293_v8 }
 0x2ad   : > { %3055 = vmatmul.bf16.gmra.mxu2 %v7118_v41 }
 0x2ae   : > { %2971 = vmatmul.bf16.gmra.mxu1 %v7119_v55 }
 0x2af   : > { %v2893_v46 = vpop.f32.mrf.mxu0 }
 0x2b0   : > { %v3016_v56 = vpop.f32.mrf.mxu2  ;;  %v6439_v35 = vadd.f32 %v2893_v46, %v6365_v14  ;;  %v6450_v46 = vpop.f32.mrf.mxu3 }
 0x2b1   : > { %v6436_v10 = vadd.f32 %v3016_v56, %v2928_v19 }
 0x2b2   : > { %3446 = vmatmul.bf16.gmra.mxu0 %v7109_v32 }
 0x2b3   : > { %7120 = vst [vmem:[#allocation22_spill] sm:$0xff] %v6436_v10  ;;  %v2934_v21 = vpop.f32.mrf.mxu1  ;;  %v7122_v10 = vld [vmem:[#allocation33_spill] sm:$0xff] }
 0x2b4   : > { %v2935_v8 = vadd.f32 %v2934_v21, %v6299_v62 }
 0x2b7   : > { %v2895_v3 = vpop.f32.mrf.mxu0 }
 0x2b8   : > { %3387 = vmatmul.bf16.gmra.mxu3 %v5175_v51  ;;  %v3018_v44 = vpop.f32.mrf.mxu2  ;;  %v6448_v14 = vadd.f32 %v2895_v3, %v6371_v45  ;;  %v6464_v3 = vpop.f32.mrf.mxu3 }
 0x2b9   : > { %v6445_v19 = vadd.f32 %v3018_v44, %v2930_v30  ;;  %v4943_v30 = vld [vmem:[#allocation8 + $0x200] sm:$0xff] }
 0x2ba   : > { %3509 = vmatpush.bf16.msra.mxu1 %v4943_v30 }
 0x2bb   : > { %7121 = vst [vmem:[#allocation42_spill] sm:$0xff] %v6445_v19  ;;  %v2937_v56 = vpop.f32.mrf.mxu1 }
 0x2bc   : > { %v2938_v32 = vadd.f32 %v2937_v56, %v6306_v5 }
 0x2bd   : > { %3060 = vmatmul.bf16.gmra.mxu2 %v7122_v10 }
 0x2be   : > { %2976 = vmatmul.bf16.gmra.mxu1 %v7123_v23 }
 0x2bf   : > { %v2898_v62 = vpop.f32.mrf.mxu0 }
 0x2c0   : > { %v3021_v13 = vpop.f32.mrf.mxu2  ;;  %v6458_v51 = vadd.f32 %v2898_v62, %v6379_v43  ;;  %v7126_v62 = vld [vmem:[#allocation38_spill] sm:$0xff] }
 0x2c1   : > { %v6455_v21 = vadd.f32 %v3021_v13, %v2933_v2  ;;  %v7125_v13 = vld [vmem:[#allocation35_spill] sm:$0xff] }
 0x2c2   : > { %3451 = vmatmul.bf16.gmra.mxu0 %v7112_v20 }
 0x2c3   : > { %v2939_v45 = vpop.f32.mrf.mxu1 }
 0x2c4   : > { %v6462_v44 = vadd.f32 %v2939_v45, %v6313_v58 }
 0x2c6   : > { %7124 = vst [vmem:[#allocation39_spill] sm:$0xff] %v6462_v44  ;;  %v4955_v44 = vld [vmem:[#allocation9 + $0x20] sm:$0xff] }
 0x2c7   : > { %v2900_v56 = vpop.f32.mrf.mxu0  ;;  %3778 = vmatpush.bf16.msra.mxu2 %v4955_v44  ;;  %v7130_v44 = vld [vmem:[#allocation41_spill] sm:$0xff] }
 0x2c8   : > { %3392 = vmatmul.bf16.gmra.mxu3 %v6128_v1  ;;  %v3023_v5 = vpop.f32.mrf.mxu2  ;;  %v6470_v2 = vadd.f32 %v2900_v56, %v6385_v57 }
 0x2c9   : > { %v6467_v19 = vadd.f32 %v3023_v5, %v2935_v8  ;;  %v4963_v8 = vld [vmem:[#allocation11 + $0x20] sm:$0xff]  ;;  %v6480_v5 = vpop.f32.mrf.mxu3 }
 0x2ca   : > { %3935 = vmatpush.bf16.msra.mxu3 %v4963_v8 }
 0x2cb   : > { %v2942_v43 = vpop.f32.mrf.mxu1 }
 0x2cc   : > { %v2943_v20 = vadd.f32 %v2942_v43, %v6320_v40 }
 0x2cd   : > { %3065 = vmatmul.bf16.gmra.mxu2 %v7125_v13 }
 0x2ce   : > { %2981 = vmatmul.bf16.gmra.mxu1 %v7126_v62 }
 0x2cf   : > { %v2903_v30 = vpop.f32.mrf.mxu0 }
 0x2d0   : > { %v3026_v58 = vpop.f32.mrf.mxu2  ;;  %v6478_v1 = vadd.f32 %v2903_v30, %v6394_v36  ;;  %v7129_v30 = vld [vmem:[#allocation37_spill] sm:$0xff] }
 0x2d1   : > { %v6475_v45 = vadd.f32 %v3026_v58, %v2938_v32  ;;  %v6492_v43 = vpop.f32.mrf.mxu3 }
 0x2d2   : > { %3456 = vmatmul.bf16.gmra.mxu0 %v7114_v12 }
 0x2d3   : > { %v2944_v57 = vpop.f32.mrf.mxu1 }
 0x2d4   : > { %v6484_v40 = vadd.f32 %v2944_v57, %v6327_v38 }
 0x2d6   : > { %7127 = vst [vmem:[#allocation21_spill] sm:$0xff] %v6484_v40 }
 0x2d7   : > { %v2905_v32 = vpop.f32.mrf.mxu0 }
 0x2d8   : > { %3397 = vmatmul.bf16.gmra.mxu3 %v7104_v25  ;;  %v6487_v56 = vpop.f32.mrf.mxu2  ;;  %v6490_v36 = vadd.f32 %v2905_v32, %v6401_v26 }
 0x2d9   : > { %7128 = vst [vmem:[#allocation24_spill] sm:$0xff] %v6487_v56  ;;  %v6503_v26 = vpop.f32.mrf.mxu3  ;;  %v7132_v56 = vld [vmem:[#allocation40_spill] sm:$0xff] }
 0x2db   : > { %v2947_v58 = vpop.f32.mrf.mxu1 }
 0x2dc   : > { %v2948_v12 = vadd.f32 %v2947_v58, %v6334_v9 }
 0x2dd   : > { %3070 = vmatmul.bf16.gmra.mxu2 %v7129_v30 }
 0x2de   : > { %2986 = vmatmul.bf16.gmra.mxu1 %v7130_v44 }
 0x2e0   : > { %v3031_v8 = vpop.f32.mrf.mxu2 }
 0x2e1   : > { %v6497_v38 = vadd.f32 %v3031_v8, %v2943_v20  ;;  %v6511_v20 = vpop.f32.mrf.mxu3  ;;  %v4962_v8 = vld [vmem:[#allocation11 + $0x18] sm:$0xff] }
 0x2e2   : > { %3461 = vmatmul.bf16.gmra.mxu0 %v7116_v31  ;;  %3936 = vmatpush.bf16.msra.mxu3 %v4962_v8 }
 0x2e3   : > { %v2949_v25 = vpop.f32.mrf.mxu1 }
 0x2e4   : > { %v6501_v57 = vadd.f32 %v2949_v25, %v6341_v48  ;;  %v4954_v48 = vld [vmem:[#allocation9 + $0x18] sm:$0xff] }
 0x2e5   : > { %3779 = vmatpush.bf16.msra.mxu2 %v4954_v48 }
 0x2e6   : > { %7131 = vst [vmem:[#allocation23_spill] sm:$0xff] %v6501_v57 }
 0x2e8   : > { %3402 = vmatmul.bf16.gmra.mxu3 %v6233_v59  ;;  %v6506_v32 = vpop.f32.mrf.mxu2 }
 0x2eb   : > { %v2952_v40 = vpop.f32.mrf.mxu1 }
 0x2ec   : > { %v2953_v9 = vadd.f32 %v2952_v40, %v6348_v63  ;;  %v6521_v63 = vpop.f32.mrf.mxu3 }
 0x2ed   : > { %3075 = vmatmul.bf16.gmra.mxu2 %v7132_v56 }
 0x2ee   : > { %2991 = vmatmul.bf16.gmra.mxu1 %v6224_v50 }
 0x2f0   : > { %v3036_v31 = vpop.f32.mrf.mxu2 }
 0x2f1   : > { %v6513_v58 = vadd.f32 %v3036_v31, %v2948_v12 }
 0x2f2   : > { %3466 = vmatmul.bf16.gmra.mxu0 %v7119_v55 }
 0x2f3   : > { %7133 = vst [vmem:[#allocation26_spill] sm:$0xff] %v6513_v58  ;;  %v2954_v59 = vpop.f32.mrf.mxu1 }
 0x2f4   : > { %v6517_v25 = vadd.f32 %v2954_v59, %v6355_v24  ;;  %v6529_v55 = vpop.f32.mrf.mxu3 }
 0x2f6   : > { %7134 = vst [vmem:[#allocation25_spill] sm:$0xff] %v6517_v25 }
 0x2f8   : > { %v6519_v57 = vpop.f32.mrf.mxu2 }
 0x2f9   : > { %7135 = vst [vmem:[#allocation43_spill] sm:$0xff] %v6519_v57 }
 0x2fb   : > { %v2957_v40 = vpop.f32.mrf.mxu1 }
 0x2fc   : > { %v2958_v12 = vadd.f32 %v2957_v40, %v6362_v47  ;;  %v6537_v57 = vpop.f32.mrf.mxu3  ;;  %v6540_v47 = vpop.f32.mrf.mxu0  ;;  %v4961_v40 = vld [vmem:[#allocation11 + $0x10] sm:$0xff] }
 0x2fd   : > { %3080 = vmatmul.bf16.gmra.mxu2 %v6205_v29  ;;  %3937 = vmatpush.bf16.msra.mxu3 %v4961_v40 }
 0x2fe   : > { %3510 = vmatmul.bf16.vlgmr.msra.gmra.mxu1 %v5738_v28 }
 0x300   : > { %v3041_v31 = vpop.f32.mrf.mxu2 }
 0x301   : > { %v6526_v58 = vadd.f32 %v3041_v31, %v2953_v9 }
 0x302   : > { %3471 = vmatmul.bf16.gmra.mxu0 %v7123_v23  ;;  %v4953_v23 = vld [vmem:[#allocation9 + $0x10] sm:$0xff] }
 0x303   : > { %7136 = vst [vmem:[#allocation28_spill] sm:$0xff] %v6526_v58  ;;  %v2959_v24 = vpop.f32.mrf.mxu1  ;;  %3780 = vmatpush.bf16.msra.mxu2 %v4953_v23 }
 0x304   : > { %v6532_v48 = vadd.f32 %v2959_v24, %v6369_v53 }
 0x306   : > { %7137 = vst [vmem:[#allocation27_spill] sm:$0xff] %v6532_v48 }
 0x308   : > { %v6534_v8 = vpop.f32.mrf.mxu2 }
 0x309   : > { %7138 = vst [vmem:[#allocation30_spill] sm:$0xff] %v6534_v8 }
 0x30b   : > { %v2962_v59 = vpop.f32.mrf.mxu1 }
 0x30c   : > { %v2963_v25 = vadd.f32 %v2962_v59, %v6376_v7  ;;  %v6548_v7 = vpop.f32.mrf.mxu3 }
 0x30e   : > { %3515 = vmatmul.bf16.gmra.mxu1 %v5765_v34  ;;  %v6552_v34 = vpop.f32.mrf.mxu0 }
 0x310   : > { %v3046_v28 = vpop.f32.mrf.mxu2 }
 0x311   : > { %v6542_v9 = vadd.f32 %v3046_v28, %v2958_v12 }
 0x312   : > { %3476 = vmatmul.bf16.gmra.mxu0 %v7126_v62 }
 0x313   : > { %7139 = vst [vmem:[#allocation29_spill] sm:$0xff] %v6542_v9  ;;  %v2964_v53 = vpop.f32.mrf.mxu1 }
 0x314   : > { %v6546_v31 = vadd.f32 %v2964_v53, %v6383_v54  ;;  %v6558_v62 = vpop.f32.mrf.mxu3 }
 0x316   : > { %7140 = vst [vmem:[#allocation32_spill] sm:$0xff] %v6546_v31  ;;  %v6561_v23 = vpop.f32.mrf.mxu0 }
 0x318   : > { %v6550_v24 = vpop.f32.mrf.mxu2 }
 0x319   : > { %7141 = vst [vmem:[#allocation31_spill] sm:$0xff] %v6550_v24 }
 0x31b   : > { %v2967_v59 = vpop.f32.mrf.mxu1 }
 0x31c   : > { %v2968_v12 = vadd.f32 %v2967_v59, %v6391_v27  ;;  %v6568_v31 = vpop.f32.mrf.mxu3 }
 0x31e   : > { %3520 = vmatmul.bf16.gmra.mxu1 %v7102_v16  ;;  %v6571_v59 = vpop.f32.mrf.mxu0 }
 0x320   : > { %v3051_v28 = vpop.f32.mrf.mxu2 }
 0x321   : > { %v6556_v48 = vadd.f32 %v3051_v28, %v2963_v25 }
 0x322   : > { %3481 = vmatmul.bf16.gmra.mxu0 %v7130_v44  ;;  %v4952_v44 = vld [vmem:[#allocation9 + $0x8] sm:$0xff] }
 0x323   : > { %7142 = vst [vmem:[#allocation34_spill] sm:$0xff] %v6556_v48  ;;  %v2969_v54 = vpop.f32.mrf.mxu1  ;;  %v4960_v48 = vld [vmem:[#allocation11 + $0x8] sm:$0xff]  ;;  %3781 = vmatpush.bf16.msra.mxu2 %v4952_v44 }
 0x324   : > { %v6564_v40 = vadd.f32 %v2969_v54, %v6399_v60  ;;  %3938 = vmatpush.bf16.msra.mxu3 %v4960_v48 }
 0x326   : > { %7143 = vst [vmem:[#allocation33_spill] sm:$0xff] %v6564_v40  ;;  %v6580_v40 = vpop.f32.mrf.mxu3 }
 0x328   : > { %v6566_v53 = vpop.f32.mrf.mxu2 }
 0x329   : > { %7144 = vst [vmem:[#allocation36_spill] sm:$0xff] %v6566_v53 }
 0x32b   : > { %v2972_v27 = vpop.f32.mrf.mxu1 }
 0x32c   : > { %v2973_v16 = vadd.f32 %v2972_v27, %v6409_v22  ;;  %v6584_v27 = vpop.f32.mrf.mxu0 }
 0x32e   : > { %3525 = vmatmul.bf16.gmra.mxu1 %v7106_v0 }
 0x330   : > { %v3056_v25 = vpop.f32.mrf.mxu2 }
 0x331   : > { %v6574_v28 = vadd.f32 %v3056_v25, %v2968_v12  ;;  %v6588_v25 = vpop.f32.mrf.mxu3 }
 0x332   : > { %3486 = vmatmul.bf16.gmra.mxu0 %v6224_v50 }
 0x333   : > { %7145 = vst [vmem:[#allocation35_spill] sm:$0xff] %v6574_v28  ;;  %v2974_v60 = vpop.f32.mrf.mxu1  ;;  %v4959_v28 = vld [vmem:[#allocation11] sm:$0xff] }
 0x334   : > { %v6578_v54 = vadd.f32 %v2974_v60, %v6416_v61  ;;  %v6592_v48 = vpop.f32.mrf.mxu0  ;;  %3939 = vmatpush.bf16.msra.mxu3 %v4959_v28 }
 0x336   : > { %7146 = vst [vmem:[#allocation38_spill] sm:$0xff] %v6578_v54 }
 0x338   : > { %v6582_v22 = vpop.f32.mrf.mxu2 }
 0x339   : > { %7147 = vst [vmem:[#allocation37_spill] sm:$0xff] %v6582_v22  ;;  %v6600_v22 = vpop.f32.mrf.mxu3 }
 0x33b   : > { %v2977_v0 = vpop.f32.mrf.mxu1 }
 0x33c   : > { %v2978_v12 = vadd.f32 %v2977_v0, %v6424_v49  ;;  %v830_v0 = vld [vmem:[#allocation2 + $0xcc] sm:$0x1] }
 0x33e   : > { %3530 = vmatmul.bf16.gmra.mxu1 %v7108_v11 }
 0x340   : > { %v3061_v50 = vpop.f32.mrf.mxu2 }
 0x341   : > { %v6590_v44 = vadd.f32 %v3061_v50, %v2973_v16  ;;  %v831_v50 = vsel %vm5634_vm2, 0, %v830_v0 }
 0x342   : > { %3491 = vmatmul.bf16.gmra.mxu0 %v6265_v33  ;;  %v4951_v33 = vld [vmem:[#allocation9] sm:$0xff]  ;;  %832 = vst [vmem:[#allocation2 + $0xcc] sm:$0x1] %v831_v50 }
 0x343   : > { %7148 = vst [vmem:[#allocation41_spill] sm:$0xff] %v6590_v44  ;;  %v2979_v61 = vpop.f32.mrf.mxu1  ;;  %3782 = vmatpush.bf16.msra.mxu2 %v4951_v33 }
 0x344   : > { %v6596_v60 = vadd.f32 %v2979_v61, %v6431_v39  ;;  %v886_v39 = vld [vmem:[#allocation2 + $0xd4] sm:$0x1]  ;;  %v6608_v61 = vpop.f32.mrf.mxu3 }
 0x345   : > { %7152 = vst [vmem:[#allocation47_spill] sm:$0xff] %v6608_v61 }
 0x346   : > { %7149 = vst [vmem:[#allocation40_spill] sm:$0xff] %v6596_v60 }
 0x348   : > { %v6598_v54 = vpop.f32.mrf.mxu2 }
 0x349   : > { %7150 = vst [vmem:[#allocation45_spill] sm:$0xff] %v6598_v54  ;;  %v4878_v0 = vld [vmem:[#allocation2 + $0xcc] sm:$0xff] }
 0x34a   : > { %3407 = vmatmul.bf16.gmra.mxu3 %v4878_v0 }
 0x34b   : > { %v2982_v49 = vpop.f32.mrf.mxu1 }
 0x34c   : > { %v2983_v11 = vadd.f32 %v2982_v49, %v6439_v35  ;;  %v887_v35 = vsel %vm5641_vm4, 0, %v886_v39  ;;  %v6619_v49 = vld [vmem:[#allocation2 + $0xd0] sm:$0xf]  ;;  %v6631_v9 = vpop.f32.mrf.mxu3 }
 0x34d   : > { %888 = vst [vmem:[#allocation2 + $0xd4] sm:$0x1] %v887_v35  ;;  %v3096_v50 = vshll.u32 %v6619_v49, 16  ;;  %v3100_v54 = vshrl.u32 %v6619_v49, 16 }
 0x34e   : > { %3535 = vmatmul.bf16.gmra.mxu1 %v7110_v4 }
 0x34f   : > { %v3098_v35 = vrot.slane %v3096_v50, 5 }
 0x350   : > { %v3066_v16 = vpop.f32.mrf.mxu2 }
 0x351   : > { %v6606_v44 = vadd.f32 %v3066_v16, %v2978_v12  ;;  %v6617_v12 = vld [vmem:[#allocation2 + $0xcc] sm:$0xf] }
 0x352   : > { %v3087_v28 = vshrl.u32 %v6617_v12, 16  ;;  %v3090_v16 = vshll.u32 %v6617_v12, 16 }
 0x353   : > { %7151 = vst [vmem:[#allocation46_spill] sm:$0xff] %v6606_v44  ;;  %v2984_v60 = vpop.f32.mrf.mxu1 }
 0x354   : > { %v6613_v4 = vadd.f32 %v2984_v60, %v6448_v14  ;;  %v3089_v33 = vrot.slane %v3087_v28, 4  ;;  %v3092_v14 = vrot.slane %v3090_v16, 5  ;;  %v6625_v39 = vld [vmem:[#allocation2 + $0xd4] sm:$0x1] }
 0x355   : > { %v3106_v24 = vshll.u32 %v6625_v39, 16 }
 0x356   : > { %7154 = vst [vmem:[#allocation17_spill] sm:$0xff] %v6613_v4  ;;  %v3102_v4 = vrot.slane %v3100_v54, 4  ;;  %v3093_v53 = vor.u32 %v3092_v14, %v3089_v33 }
 0x357   : > { %v3108_v28 = vrot.slane %v3106_v24, 5  ;;  %v6645_v24 = vpop.f32.mrf.mxu3 }
 0x358   : > { %v6615_v17 = vpop.f32.mrf.mxu2  ;;  %v3103_v61 = vor.u32 %v3102_v4, %v3098_v35  ;;  %v3094_v0 = vrot.slane %v3093_v53, 4 }
 0x359   : > { %7155 = vst [vmem:[#allocation48_spill] sm:$0xff] %v6615_v17  ;;  %v6627_v17 = vpop.f32.mrf.mxu0 }
 0x35a   : > { %v3104_v8 = vrot.slane %v3103_v61, 4  ;;  %v3099_v54 = vsel %vm5697_vm14, %v3094_v0, %v3098_v35  ;;  %v5176_v61 = vld [vmem:[%s5612_s25] sm:$0xff] }
 0x35b   : > { %v2987_v60 = vpop.f32.mrf.mxu1  ;;  %v3124_v33 = vunpack.c.l.b16 %v3099_v54  ;;  %3940 = vmatmul.bf16.vlgmr.msra.gmra.mxu3 %v5176_v61 }
 0x35c   : > { %v2988_v44 = vadd.f32 %v2987_v60, %v6458_v51  ;;  %v3109_v51 = vsel %vm5697_vm14, %v3104_v8, %v3108_v28 }
 0x35d   : > { %v3125_v14 = vunpack.c.l.b16 %v3109_v51  ;;  %v3423_v51 = vadd.f32 %v6540_v47, %v6441_v15  ;;  %v6675_v15 = vld [vmem:[%s6990_s5] ss:$0 sm:$0xff] }
 0x35e   : > { %3540 = vmatmul.bf16.gmra.mxu1 %v7113_v42 }
 0x35f   : > { %v3126_v42 = vpack.c.b16 %v3125_v14, %v3124_v33  ;;  %v5177_v33 = vld [vmem:[%s5612_s25 + $0x8] sm:$0xff] }
 0x360   : > { %v3071_v16 = vpop.f32.mrf.mxu2 }
 0x361   : > { %v6634_v58 = vadd.f32 %v3071_v16, %v2983_v11  ;;  %v6643_v53 = vpop.f32.mrf.mxu0  ;;  %3496 = vmatmul.bf16.gmra.mxu0 %v3126_v42 }
 0x363   : > { %v2989_v60 = vpop.f32.mrf.mxu1 }
 0x364   : > { %v6641_v4 = vadd.f32 %v2989_v60, %v6470_v2  ;;  %v6654_v2 = vpop.f32.mrf.mxu3 }
 0x368   : > { %v6647_v11 = vpop.f32.mrf.mxu2 }
 0x36b   : > { %v2992_v35 = vpop.f32.mrf.mxu1  ;;  %3945 = vmatmul.bf16.gmra.mxu3 %v5177_v33 }
 0x36c   : > { %v2993_v8 = vadd.f32 %v2992_v35, %v6478_v1  ;;  %v6664_v14 = vpop.f32.mrf.mxu3 }
 0x36e   : > { %3545 = vmatmul.bf16.gmra.mxu1 %v7115_v37 }
 0x370   : > { %v3076_v0 = vpop.f32.mrf.mxu2 }
 0x371   : > { %v6652_v28 = vadd.f32 %v3076_v0, %v2988_v44 }
 0x373   : > { %v2994_v16 = vpop.f32.mrf.mxu1 }
 0x374   : > { %v6657_v50 = vadd.f32 %v2994_v16, %v6490_v36  ;;  %v3425_v36 = vadd.f32 %v6552_v34, %v6450_v46  ;;  %v6677_v35 = vpop.f32.mrf.mxu3  ;;  %v5178_v34 = vld [vmem:[%s5612_s25 + $0x10] sm:$0xff] }
 0x378   : > { %v6659_v54 = vpop.f32.mrf.mxu2 }
 0x37b   : > { %v3511_v1 = vpop.f32.mrf.mxu1  ;;  %3950 = vmatmul.bf16.gmra.mxu3 %v5178_v34 }
 0x37c   : > { %v3512_v37 = vadd.f32 %v3511_v1, %v3423_v51  ;;  %v3442_v51 = vpop.f32.mrf.mxu0 }
 0x37e   : > { %v3591_v44 = vadd.f32 %v3512_v37, %v6406_v6  ;;  %3550 = vmatmul.bf16.gmra.mxu1 %v7118_v41 }
 0x380   : > { %v3081_v60 = vpop.f32.mrf.mxu2  ;;  %v3627_v0 = vadd.f32 %v6675_v15, %v3591_v44  ;;  %v3430_v44 = vadd.f32 %v6571_v59, %v6480_v5 }
 0x381   : > { %v6668_v42 = vadd.f32 %v3081_v60, %v2993_v8  ;;  %v3428_v8 = vadd.f32 %v6561_v23, %v6464_v3  ;;  %v7157_v60 = vld [vmem:[#allocation20_spill] sm:$0xff] }
 0x382   : > { %v3659_v16 = vmax.f32 %v3627_v0, 0.0 }
 0x383   : > { %v3513_v47 = vpop.f32.mrf.mxu1 }
 0x384   : > { %v3514_v61 = vadd.f32 %v3513_v47, %v3425_v36  ;;  %v3444_v47 = vpop.f32.mrf.mxu0 }
 0x386   : > { %v3592_v6 = vadd.f32 %v3514_v61, %v6413_v18  ;;  %v6687_v18 = vpop.f32.mrf.mxu3 }
 0x388   : > { %v3628_v41 = vadd.f32 %v6675_v15, %v3592_v6 }
 0x38a   : > { %v3660_v46 = vmax.f32 %v3628_v41, 0.0 }
 0x38b   : > { %v3516_v33 = vpop.f32.mrf.mxu1 }
 0x38c   : > { %v3691_v1 = vpack.c.bf16 %v3660_v46, %v3659_v16  ;;  %v3517_v37 = vadd.f32 %v3516_v33, %v3428_v8  ;;  %v5179_v46 = vld [vmem:[%s5612_s25 + $0x18] sm:$0xff]  ;;  %v7158_v33 = vld [vmem:[#allocation22_spill] sm:$0xff] }
 0x38d   : > { %3955 = vmatmul.bf16.gmra.mxu3 %v5179_v46 }
 0x38e   : > { %v3593_v36 = vadd.f32 %v3517_v37, %v7157_v60  ;;  %3555 = vmatmul.bf16.gmra.mxu1 %v7122_v10  ;;  %3783 = vmatmul.bf16.vlgmr.msra.gmra.mxu2 %v3691_v1  ;;  %v6694_v41 = vpop.f32.mrf.mxu3  ;;  %v3433_v10 = vadd.f32 %v6584_v27, %v6492_v43  ;;  %v3435_v37 = vadd.f32 %v6592_v48, %v6503_v26 }
 0x390   : > { %v3629_v61 = vadd.f32 %v6675_v15, %v3593_v36 }
 0x392   : > { %v3661_v8 = vmax.f32 %v3629_v61, 0.0 }
 0x393   : > { %v3518_v3 = vpop.f32.mrf.mxu1 }
 0x394   : > { %v3519_v23 = vadd.f32 %v3518_v3, %v3430_v44  ;;  %v7159_v44 = vld [vmem:[#allocation42_spill] sm:$0xff] }
 0x396   : > { %v3594_v0 = vadd.f32 %v3519_v23, %v6428_v52  ;;  %v3447_v52 = vpop.f32.mrf.mxu0  ;;  %v6703_v60 = vpop.f32.mrf.mxu3 }
 0x398   : > { %v3630_v6 = vadd.f32 %v6675_v15, %v3594_v0  ;;  %v3438_v0 = vadd.f32 %v6627_v17, %v6511_v20 }
 0x39a   : > { %v3662_v16 = vmax.f32 %v3630_v6, 0.0 }
 0x39b   : > { %v3521_v34 = vpop.f32.mrf.mxu1 }
 0x39c   : > { %v3522_v5 = vadd.f32 %v3521_v34, %v3433_v10  ;;  %v3692_v59 = vpack.c.bf16 %v3662_v16, %v3661_v8  ;;  %v5180_v10 = vld [vmem:[%s5612_s25 + $0x20] sm:$0xff]  ;;  %v3440_v34 = vadd.f32 %v6643_v53, %v6521_v63 }
 0x39d   : > { %3960 = vmatmul.bf16.gmra.mxu3 %v5180_v10 }
 0x39e   : > { %v3595_v1 = vadd.f32 %v3522_v5, %v7158_v33  ;;  %3560 = vmatmul.bf16.gmra.mxu1 %v7125_v13  ;;  %3788 = vmatmul.bf16.gmra.mxu2 %v3692_v59  ;;  %v3449_v61 = vpop.f32.mrf.mxu0  ;;  %v6711_v16 = vpop.f32.mrf.mxu3 }
 0x3a0   : > { %v3631_v36 = vadd.f32 %v6675_v15, %v3595_v1 }
 0x3a2   : > { %v3663_v13 = vmax.f32 %v3631_v36, 0.0  ;;  %v3443_v36 = vadd.f32 %v3442_v51, %v6529_v55 }
 0x3a3   : > { %v3523_v43 = vpop.f32.mrf.mxu1 }
 0x3a4   : > { %v3524_v27 = vadd.f32 %v3523_v43, %v3435_v37 }
 0x3a6   : > { %v3596_v3 = vadd.f32 %v3524_v27, %v7159_v44  ;;  %v3452_v5 = vpop.f32.mrf.mxu0  ;;  %v6719_v1 = vpop.f32.mrf.mxu3 }
 0x3a8   : > { %v3632_v23 = vadd.f32 %v6675_v15, %v3596_v3 }
 0x3aa   : > { %v3664_v6 = vmax.f32 %v3632_v23, 0.0 }
 0x3ab   : > { %v3526_v8 = vpop.f32.mrf.mxu1 }
 0x3ac   : > { %v3527_v26 = vadd.f32 %v3526_v8, %v3438_v0  ;;  %v3693_v48 = vpack.c.bf16 %v3664_v6, %v3663_v13  ;;  %v7160_v13 = vld [vmem:[#allocation39_spill] sm:$0xff]  ;;  %v7161_v6 = vld [vmem:[#allocation24_spill] sm:$0xff] }
 0x3ad   : > { %v3029_v10 = vadd.f32 %v7161_v6, %v7160_v13  ;;  %v7163_v6 = vld [vmem:[#allocation44_spill] sm:$0xff] }
 0x3ae   : > { %v3597_v46 = vadd.f32 %v3527_v26, %v6455_v21  ;;  %3565 = vmatmul.bf16.gmra.mxu1 %v7129_v30  ;;  %3793 = vmatmul.bf16.gmra.mxu2 %v3693_v48  ;;  %v5181_v21 = vld [vmem:[%s5612_s25 + $0x28] sm:$0xff]  ;;  %v3454_v63 = vpop.f32.mrf.mxu0  ;;  %v6725_v3 = vpop.f32.mrf.mxu3 }
 0x3af   : > { %3965 = vmatmul.bf16.gmra.mxu3 %v5181_v21 }
 0x3b0   : > { %v3633_v59 = vadd.f32 %v6675_v15, %v3597_v46 }
 0x3b2   : > { %v3665_v43 = vmax.f32 %v3633_v59, 0.0 }
 0x3b3   : > { %v3528_v20 = vpop.f32.mrf.mxu1 }
 0x3b4   : > { %v3529_v17 = vadd.f32 %v3528_v20, %v3440_v34  ;;  %v5182_v34 = vld [vmem:[%s5612_s25 + $0x30] sm:$0xff] }
 0x3b6   : > { %v3598_v33 = vadd.f32 %v3529_v17, %v6467_v19  ;;  %v3445_v19 = vadd.f32 %v3444_v47, %v6537_v57  ;;  %v3457_v26 = vpop.f32.mrf.mxu0  ;;  %v6734_v20 = vpop.f32.mrf.mxu3 }
 0x3b8   : > { %v3634_v37 = vadd.f32 %v6675_v15, %v3598_v33  ;;  %v3450_v33 = vadd.f32 %v3449_v61, %v6558_v62  ;;  %v3453_v61 = vadd.f32 %v3452_v5, %v6568_v31 }
 0x3ba   : > { %v3666_v27 = vmax.f32 %v3634_v37, 0.0 }
 0x3bb   : > { %v3531_v30 = vpop.f32.mrf.mxu1 }
 0x3bc   : > { %v3694_v44 = vpack.c.bf16 %v3666_v27, %v3665_v43  ;;  %v3532_v53 = vadd.f32 %v3531_v30, %v3443_v36  ;;  %v7162_v27 = vld [vmem:[#allocation21_spill] sm:$0xff] }
 0x3bd   : > { %v3034_v21 = vadd.f32 %v6506_v32, %v7162_v27 }
 0x3be   : > { %3570 = vmatmul.bf16.gmra.mxu1 %v7132_v56  ;;  %3798 = vmatmul.bf16.gmra.mxu2 %v3694_v44  ;;  %v3599_v23 = vadd.f32 %v3532_v53, %v6475_v45  ;;  %v3448_v45 = vadd.f32 %v3447_v52, %v6548_v7  ;;  %v3459_v59 = vpop.f32.mrf.mxu0  ;;  %v6742_v36 = vpop.f32.mrf.mxu3 }
 0x3bf   : > { %3970 = vmatmul.bf16.gmra.mxu3 %v5182_v34  ;;  %v7166_v34 = vld [vmem:[#allocation23_spill] sm:$0xff] }
 0x3c0   : > { %v3635_v55 = vadd.f32 %v6675_v15, %v3599_v23 }
 0x3c2   : > { %v3667_v46 = vmax.f32 %v3635_v55, 0.0  ;;  %v3118_v55 = vrot.slane %v6625_v39, 5 }
 0x3c3   : > { %v3533_v0 = vpop.f32.mrf.mxu1 }
 0x3c4   : > { %v3534_v8 = vadd.f32 %v3533_v0, %v3445_v19  ;;  %v5183_v19 = vld [vmem:[%s5612_s25 + $0x38] sm:$0xff] }
 0x3c6   : > { %v3600_v51 = vadd.f32 %v3534_v8, %v3029_v10  ;;  %v3462_v23 = vpop.f32.mrf.mxu0  ;;  %v4666_v10 = vrot.slane %v6617_v12, 9 }
 0x3c8   : > { %v3636_v48 = vadd.f32 %v6675_v15, %v3600_v51  ;;  %v3455_v51 = vadd.f32 %v3454_v63, %v6580_v40 }
 0x3ca   : > { %v3668_v56 = vmax.f32 %v3636_v48, 0.0  ;;  %v7164_v48 = vld [vmem:[#allocation26_spill] sm:$0xff] }
 0x3cb   : > { %v3536_v57 = vpop.f32.mrf.mxu1 }
 0x3cc   : > { %v3695_v47 = vpack.c.bf16 %v3668_v56, %v3667_v46  ;;  %v3537_v17 = vadd.f32 %v3536_v57, %v3448_v45  ;;  %v7167_v57 = vld [vmem:[#allocation43_spill] sm:$0xff]  ;;  %v5185_v56 = vld [vmem:[%s5612_s25 + $0x48] sm:$0xff] }
 0x3cd   : > { %v6749_v32 = vpop.f32.mrf.mxu3  ;;  %v3039_v45 = vadd.f32 %v7167_v57, %v7166_v34 }
 0x3ce   : > { %3575 = vmatmul.bf16.gmra.mxu1 %v6205_v29  ;;  %3803 = vmatmul.bf16.gmra.mxu2 %v3695_v47  ;;  %v3601_v37 = vadd.f32 %v3537_v17, %v6497_v38  ;;  %v3115_v38 = vrot.slane %v6619_v49, 5  ;;  %v3464_v12 = vpop.f32.mrf.mxu0 }
 0x3cf   : > { %3975 = vmatmul.bf16.gmra.mxu3 %v5183_v19  ;;  %v3465_v57 = vadd.f32 %v3464_v12, %v6631_v9  ;;  %v5186_v12 = vld [vmem:[%s5612_s25 + $0x50] sm:$0xff] }
 0x3d0   : > { %v3637_v7 = vadd.f32 %v6675_v15, %v3601_v37  ;;  %v3117_v8 = vrot.slane %v3115_v38, 4  ;;  %v3116_v31 = vsel %vm5685_vm11, %v4666_v10, %v3115_v38  ;;  %v7168_v38 = vld [vmem:[#allocation28_spill] sm:$0xff] }
 0x3d1   : > { %v3128_v63 = vunpack.c.l.b16 %v3116_v31 }
 0x3d2   : > { %v3669_v53 = vmax.f32 %v3637_v7, 0.0  ;;  %v3119_v5 = vsel %vm5685_vm11, %v3117_v8, %v3118_v55 }
 0x3d3   : > { %v3538_v43 = vpop.f32.mrf.mxu1 }
 0x3d4   : > { %v3539_v30 = vadd.f32 %v3538_v43, %v3450_v33  ;;  %v3129_v33 = vunpack.c.l.b16 %v3119_v5 }
 0x3d5   : > { %v6762_v17 = vpop.f32.mrf.mxu3 }
 0x3d6   : > { %v3602_v52 = vadd.f32 %v3539_v30, %v3034_v21  ;;  %v3130_v21 = vpack.c.b16 %v3129_v33, %v3128_v63  ;;  %v5184_v30 = vld [vmem:[%s5612_s25 + $0x40] sm:$0xff]  ;;  %v3467_v19 = vpop.f32.mrf.mxu0  ;;  %v7173_v33 = vld [vmem:[#allocation27_spill] sm:$0xff] }
 0x3d8   : > { %v3638_v44 = vadd.f32 %v6675_v15, %v3602_v52  ;;  %v3458_v52 = vadd.f32 %v3457_v26, %v6588_v25 }
 0x3da   : > { %v3670_v29 = vmax.f32 %v3638_v44, 0.0 }
 0x3db   : > { %v3541_v62 = vpop.f32.mrf.mxu1 }
 0x3dc   : > { %v3696_v0 = vpack.c.bf16 %v3670_v29, %v3669_v53  ;;  %v3542_v13 = vadd.f32 %v3541_v62, %v3453_v61  ;;  %v3460_v62 = vadd.f32 %v3459_v59, %v6600_v22  ;;  %v7171_v22 = vld [vmem:[#allocation47_spill] sm:$0xff] }
 0x3dd   : > { %v3463_v59 = vadd.f32 %v3462_v23, %v7171_v22 }
 0x3de   : > { %3580 = vmatmul.bf16.gmra.mxu1 %v7163_v6  ;;  %3808 = vmatmul.bf16.gmra.mxu2 %v3696_v0  ;;  %v3603_v46 = vadd.f32 %v3542_v13, %v7164_v48  ;;  %v3941_v29 = vpop.f32.mrf.mxu3  ;;  %v7169_v13 = vld [vmem:[#allocation25_spill] sm:$0xff]  ;;  %v7170_v6 = vld [vmem:[#allocation30_spill] sm:$0xff]  ;;  %v3469_v48 = vpop.f32.mrf.mxu0 }
 0x3df   : > { %3980 = vmatmul.bf16.gmra.mxu3 %v5184_v30  ;;  %v3044_v10 = vadd.f32 %v7170_v6, %v7169_v13  ;;  %v3470_v6 = vadd.f32 %v3469_v48, %v6654_v2 }
 0x3e0   : > { %v3639_v39 = vadd.f32 %v6675_v15, %v3603_v46 }
 0x3e2   : > { %v3671_v43 = vmax.f32 %v3639_v39, 0.0 }
 0x3e3   : > { %v3543_v49 = vpop.f32.mrf.mxu1 }
 0x3e4   : > { %v3544_v47 = vadd.f32 %v3543_v49, %v3455_v51 }
 0x3e6   : > { %v3604_v40 = vadd.f32 %v3544_v47, %v3039_v45  ;;  %v3943_v26 = vpop.f32.mrf.mxu3  ;;  %v7172_v45 = vld [vmem:[#allocation29_spill] sm:$0xff] }
 0x3e8   : > { %v3640_v37 = vadd.f32 %v6675_v15, %v3604_v40  ;;  %v3472_v40 = vpop.f32.mrf.mxu0 }
 0x3ea   : > { %v3672_v27 = vmax.f32 %v3640_v37, 0.0  ;;  %v7174_v37 = vld [vmem:[#allocation31_spill] sm:$0xff] }
 0x3eb   : > { %v3546_v7 = vpop.f32.mrf.mxu1 }
 0x3ec   : > { %v3697_v44 = vpack.c.bf16 %v3672_v27, %v3671_v43  ;;  %v3547_v53 = vadd.f32 %v3546_v7, %v3458_v52  ;;  %v3049_v43 = vadd.f32 %v7174_v37, %v7173_v33  ;;  %v6784_v7 = vpop.f32.mrf.mxu2 }
 0x3ee   : > { %3585 = vmatmul.bf16.gmra.mxu1 %v3130_v21  ;;  %3813 = vmatmul.bf16.gmra.mxu2 %v3697_v44  ;;  %v3605_v61 = vadd.f32 %v3547_v53, %v7168_v38  ;;  %v6778_v39 = vpop.f32.mrf.mxu3 }
 0x3ef   : > { %3985 = vmatmul.bf16.gmra.mxu3 %v5185_v56 }
 0x3f0   : > { %v3641_v55 = vadd.f32 %v6675_v15, %v3605_v61  ;;  %v3474_v61 = vpop.f32.mrf.mxu0 }
 0x3f2   : > { %v3673_v46 = vmax.f32 %v3641_v55, 0.0 }
 0x3f3   : > { %v3548_v0 = vpop.f32.mrf.mxu1 }
 0x3f4   : > { %v3549_v8 = vadd.f32 %v3548_v0, %v3460_v62  ;;  %v3468_v62 = vadd.f32 %v3467_v19, %v6645_v24 }
 0x3f6   : > { %v3606_v51 = vadd.f32 %v3549_v8, %v3044_v10  ;;  %v3948_v9 = vpop.f32.mrf.mxu3  ;;  %v6792_v10 = vld [vmem:[%s6993_s8] ss:$0 sm:$0xff] }
 0x3f7   : > { %v7175_v8 = vld [vmem:[#allocation34_spill] sm:$0xff]  ;;  %v3942_v48 = vadd.f32 %v6792_v10, %v3941_v29 }
 0x3f8   : > { %v3642_v25 = vadd.f32 %v6675_v15, %v3606_v51  ;;  %v6798_v51 = vld [vmem:[%s6991_s6] ss:$0 sm:$0xff] }
 0x3fa   : > { %v3674_v49 = vmax.f32 %v3642_v25, 0.0  ;;  %v7176_v25 = vld [vmem:[#allocation32_spill] sm:$0xff] }
 0x3fb   : > { %v3551_v31 = vpop.f32.mrf.mxu1 }
 0x3fc   : > { %v3698_v5 = vpack.c.bf16 %v3674_v49, %v3673_v46  ;;  %v3552_v34 = vadd.f32 %v3551_v31, %v3463_v59  ;;  %v7177_v46 = vld [vmem:[#allocation36_spill] sm:$0xff]  ;;  %v3477_v59 = vpop.f32.mrf.mxu0 }
 0x3fd   : > { %v3054_v49 = vadd.f32 %v7177_v46, %v7176_v25 }
 0x3fe   : > { %3818 = vmatmul.bf16.gmra.mxu2 %v3698_v5  ;;  %v3607_v47 = vadd.f32 %v3552_v34, %v7172_v45  ;;  %v6800_v24 = vpop.f32.mrf.mxu3  ;;  %v3944_v34 = vadd.f32 %v6792_v10, %v3943_v26 }
 0x3ff   : > { %3990 = vmatmul.bf16.gmra.mxu3 %v5186_v12 }
 0x400   : > { %v3643_v21 = vadd.f32 %v6675_v15, %v3607_v47 }
 0x402   : > { %v3675_v52 = vmax.f32 %v3643_v21, 0.0 }
 0x403   : > { %v3553_v63 = vpop.f32.mrf.mxu1 }
 0x404   : > { %v3554_v27 = vadd.f32 %v3553_v63, %v3465_v57  ;;  %v3479_v12 = vpop.f32.mrf.mxu0 }
 0x406   : > { %v3608_v30 = vadd.f32 %v3554_v27, %v3049_v43  ;;  %v3953_v37 = vpop.f32.mrf.mxu3  ;;  %v5187_v43 = vld [vmem:[%s5612_s25 + $0x58] sm:$0xff]  ;;  %v3473_v27 = vadd.f32 %v3472_v40, %v6664_v14  ;;  %v7179_v40 = vld [vmem:[#allocation33_spill] sm:$0xff] }
 0x408   : > { %v3644_v23 = vadd.f32 %v6675_v15, %v3608_v30 }
 0x40a   : > { %v3676_v44 = vmax.f32 %v3644_v23, 0.0 }
 0x40b   : > { %v3556_v53 = vpop.f32.mrf.mxu1 }
 0x40c   : > { %v3699_v38 = vpack.c.bf16 %v3676_v44, %v3675_v52  ;;  %v3557_v0 = vadd.f32 %v3556_v53, %v3468_v62  ;;  %v3475_v62 = vadd.f32 %v3474_v61, %v6677_v35 }
 0x40e   : > { %3823 = vmatmul.bf16.gmra.mxu2 %v3699_v38  ;;  %v3609_v55 = vadd.f32 %v3557_v0, %v7175_v8  ;;  %v7178_v38 = vld [vmem:[#allocation35_spill] sm:$0xff] }
 0x40f   : > { %3995 = vmatmul.bf16.gmra.mxu3 %v5187_v43 }
 0x410   : > { %v3645_v56 = vadd.f32 %v6675_v15, %v3609_v55 }
 0x411   : > { %v3784_v13 = vpop.f32.mrf.mxu2 }
 0x412   : > { %v3785_v31 = vadd.f32 %v6798_v51, %v3784_v13  ;;  %v3677_v45 = vmax.f32 %v3645_v56, 0.0  ;;  %v6819_v13 = vpop.f32.mrf.mxu3 }
 0x413   : > { %v3558_v19 = vpop.f32.mrf.mxu1 }
 0x414   : > { %v3559_v2 = vadd.f32 %v3558_v19, %v3470_v6  ;;  %v4021_v47 = vadd.f32 %v3942_v48, %v3785_v31  ;;  %v7180_v6 = vld [vmem:[#allocation37_spill] sm:$0xff]  ;;  %v3947_v19 = vadd.f32 %v6792_v10, %v6778_v39  ;;  %v3482_v39 = vpop.f32.mrf.mxu0 }
 0x415   : > { %v3059_v8 = vadd.f32 %v7180_v6, %v7179_v40  ;;  %v3954_v40 = vadd.f32 %v6792_v10, %v3953_v37 }
 0x416   : > { %v3610_v22 = vadd.f32 %v3559_v2, %v3054_v49  ;;  %v4053_v23 = vmax.f32 %v4021_v47, 0.0  ;;  %v3949_v49 = vadd.f32 %v6792_v10, %v3948_v9 }
 0x418   : > { %v3646_v5 = vadd.f32 %v6675_v15, %v3610_v22 }
 0x419   : > { %v3786_v57 = vpop.f32.mrf.mxu2 }
 0x41a   : > { %v3678_v63 = vmax.f32 %v3646_v5, 0.0  ;;  %v3787_v33 = vadd.f32 %v6798_v51, %v3786_v57  ;;  %v3958_v5 = vpop.f32.mrf.mxu3 }
 0x41b   : > { %v3561_v29 = vpop.f32.mrf.mxu1 }
 0x41c   : > { %v4022_v21 = vadd.f32 %v3944_v34, %v3787_v33  ;;  %v3700_v30 = vpack.c.bf16 %v3678_v63, %v3677_v45  ;;  %v3562_v44 = vadd.f32 %v3561_v29, %v3473_v27  ;;  %v5188_v34 = vld [vmem:[%s5612_s25 + $0x60] sm:$0xff]  ;;  %v3478_v45 = vadd.f32 %v3477_v59, %v6687_v18 }
 0x41e   : > { %v4054_v52 = vmax.f32 %v4022_v21, 0.0  ;;  %3828 = vmatmul.bf16.gmra.mxu2 %v3700_v30  ;;  %v3611_v0 = vadd.f32 %v3562_v44, %v7178_v38  ;;  %v3480_v21 = vadd.f32 %v3479_v12, %v6694_v41  ;;  %v7181_v30 = vld [vmem:[#allocation41_spill] sm:$0xff]  ;;  %v3952_v38 = vadd.f32 %v6792_v10, %v6800_v24 }
 0x41f   : > { %4000 = vmatmul.bf16.gmra.mxu3 %v5188_v34 }
 0x420   : > { %v4971_v26 = vpack.c.bf16 %v4054_v52, %v4053_v23  ;;  %v3647_v35 = vadd.f32 %v6675_v15, %v3611_v0 }
 0x421   : > { %v3789_v53 = vpop.f32.mrf.mxu2 }
 0x422   : > { %4972 = vst [vmem:[%s6815_s1] sm:$0xff] %v4971_v26   ;;  %v3790_v61 = vadd.f32 %v6798_v51, %v3789_v53  ;;  %v3679_v48 = vmax.f32 %v3647_v35, 0.0  ;;  %v6835_v52 = vpop.f32.mrf.mxu3  ;;  %v7182_v26 = vld [vmem:[#allocation38_spill] sm:$0xff]  ;;  %v7183_v53 = vld [vmem:[#allocation45_spill] sm:$0xff] }
 0x423   : > { %v3563_v14 = vpop.f32.mrf.mxu1  ;;  %v3064_v18 = vadd.f32 %v7183_v53, %v7182_v26 }
 0x424   : > { %v3564_v55 = vadd.f32 %v3563_v14, %v3475_v62  ;;  %v4023_v56 = vadd.f32 %v3947_v19, %v3790_v61  ;;  %v3484_v62 = vpop.f32.mrf.mxu0 }
 0x426   : > { %v3612_v25 = vadd.f32 %v3564_v55, %v3059_v8  ;;  %v4055_v33 = vmax.f32 %v4023_v56, 0.0 }
 0x428   : > { %v3648_v46 = vadd.f32 %v6675_v15, %v3612_v25  ;;  %v5189_v25 = vld [vmem:[%s5612_s25 + $0x68] sm:$0xff] }
 0x429   : > { %v3791_v2 = vpop.f32.mrf.mxu2 }
 0x42a   : > { %v3680_v31 = vmax.f32 %v3648_v46, 0.0  ;;  %v3792_v22 = vadd.f32 %v6798_v51, %v3791_v2  ;;  %v3963_v61 = vpop.f32.mrf.mxu3  ;;  %v3483_v46 = vadd.f32 %v3482_v39, %v6703_v60 }
 0x42b   : > { %v3566_v57 = vpop.f32.mrf.mxu1 }
 0x42c   : > { %v4024_v47 = vadd.f32 %v3949_v49, %v3792_v22  ;;  %v3701_v63 = vpack.c.bf16 %v3680_v31, %v3679_v48  ;;  %v3567_v29 = vadd.f32 %v3566_v57, %v3478_v45  ;;  %v3487_v37 = vpop.f32.mrf.mxu0  ;;  %v3485_v57 = vadd.f32 %v3484_v62, %v6711_v16  ;;  %v7184_v45 = vld [vmem:[#allocation46_spill] sm:$0xff] }
 0x42e   : > { %v4056_v43 = vmax.f32 %v4024_v47, 0.0  ;;  %3833 = vmatmul.bf16.gmra.mxu2 %v3701_v63  ;;  %v3613_v23 = vadd.f32 %v3567_v29, %v7181_v30  ;;  %v7186_v29 = vld [vmem:[#allocation48_spill] sm:$0xff] }
 0x42f   : > { %4005 = vmatmul.bf16.gmra.mxu3 %v5189_v25 }
 0x430   : > { %v4976_v9 = vpack.c.bf16 %v4056_v43, %v4055_v33  ;;  %v3649_v0 = vadd.f32 %v6675_v15, %v3613_v23  ;;  %v7185_v43 = vld [vmem:[#allocation40_spill] sm:$0xff] }
 0x431   : > { %v3794_v27 = vpop.f32.mrf.mxu2  ;;  %v3069_v60 = vadd.f32 %v7186_v29, %v7185_v43 }
 0x432   : > { %5048 = vst [vmem:[%s6815_s1 + $0x8] sm:$0xff] %v4976_v9   ;;  %v3795_v14 = vadd.f32 %v6798_v51, %v3794_v27  ;;  %v3681_v8 = vmax.f32 %v3649_v0, 0.0  ;;  %v6851_v63 = vpop.f32.mrf.mxu3  ;;  %v3957_v9 = vadd.f32 %v6792_v10, %v6819_v13  ;;  %v5190_v0 = vld [vmem:[%s5612_s25 + $0x70] sm:$0xff] }
 0x433   : > { %v3568_v44 = vpop.f32.mrf.mxu1 }
 0x434   : > { %v3569_v59 = vadd.f32 %v3568_v44, %v3480_v21  ;;  %v4025_v55 = vadd.f32 %v3952_v38, %v3795_v14  ;;  %v3489_v23 = vpop.f32.mrf.mxu0  ;;  %v3959_v44 = vadd.f32 %v6792_v10, %v3958_v5  ;;  %v3488_v14 = vadd.f32 %v3487_v37, %v6719_v1 }
 0x436   : > { %v3614_v41 = vadd.f32 %v3569_v59, %v3064_v18  ;;  %v4057_v48 = vmax.f32 %v4025_v55, 0.0 }
 0x438   : > { %v3650_v12 = vadd.f32 %v6675_v15, %v3614_v41 }
 0x439   : > { %v3796_v6 = vpop.f32.mrf.mxu2 }
 0x43a   : > { %v3682_v19 = vmax.f32 %v3650_v12, 0.0  ;;  %v3797_v35 = vadd.f32 %v6798_v51, %v3796_v6  ;;  %v3968_v38 = vpop.f32.mrf.mxu3 }
 0x43b   : > { %v3571_v24 = vpop.f32.mrf.mxu1 }
 0x43c   : > { %v4026_v49 = vadd.f32 %v3954_v40, %v3797_v35  ;;  %v3702_v2 = vpack.c.bf16 %v3682_v19, %v3681_v8  ;;  %v3572_v31 = vadd.f32 %v3571_v24, %v3483_v46  ;;  %v3490_v19 = vadd.f32 %v3489_v23, %v6725_v3  ;;  %v3492_v24 = vpop.f32.mrf.mxu0 }
 0x43d   : > { %v3493_v43 = vadd.f32 %v3492_v24, %v6734_v20 }
 0x43e   : > { %v4058_v56 = vmax.f32 %v4026_v49, 0.0  ;;  %3838 = vmatmul.bf16.gmra.mxu2 %v3702_v2  ;;  %v3615_v47 = vadd.f32 %v3572_v31, %v7184_v45  ;;  %v7187_v49 = vld [vmem:[#allocation17_spill] sm:$0xff] }
 0x43f   : > { %4010 = vmatmul.bf16.gmra.mxu3 %v5190_v0  ;;  %v3074_v1 = vadd.f32 %v6647_v11, %v7187_v49 }
 0x440   : > { %v4981_v22 = vpack.c.bf16 %v4058_v56, %v4057_v48  ;;  %v3651_v27 = vadd.f32 %v6675_v15, %v3615_v47  ;;  %v3962_v48 = vadd.f32 %v6792_v10, %v6835_v52 }
 0x441   : > { %v3799_v34 = vpop.f32.mrf.mxu2 }
 0x442   : > { %5049 = vst [vmem:[%s6815_s1 + $0x10] sm:$0xff] %v4981_v22   ;;  %v3800_v21 = vadd.f32 %v6798_v51, %v3799_v34  ;;  %v3683_v53 = vmax.f32 %v3651_v27, 0.0  ;;  %v6867_v25 = vpop.f32.mrf.mxu3 }
 0x443   : > { %v3573_v33 = vpop.f32.mrf.mxu1 }
 0x444   : > { %v3574_v39 = vadd.f32 %v3573_v33, %v3485_v57  ;;  %v4027_v18 = vadd.f32 %v3957_v9, %v3800_v21  ;;  %v5191_v33 = vld [vmem:[%s5612_s25 + $0x78] sm:$0xff] }
 0x446   : > { %v3616_v30 = vadd.f32 %v3574_v39, %v3069_v60  ;;  %v4059_v40 = vmax.f32 %v4027_v18, 0.0  ;;  %v3494_v39 = vpop.f32.mrf.mxu0 }
 0x448   : > { %v3652_v16 = vadd.f32 %v6675_v15, %v3616_v30 }
 0x449   : > { %v3801_v26 = vpop.f32.mrf.mxu2 }
 0x44a   : > { %v3684_v59 = vmax.f32 %v3652_v16, 0.0  ;;  %v3802_v62 = vadd.f32 %v6798_v51, %v3801_v26  ;;  %v3973_v11 = vpop.f32.mrf.mxu3  ;;  %v3495_v16 = vadd.f32 %v3494_v39, %v6742_v36 }
 0x44b   : > { %v3576_v13 = vpop.f32.mrf.mxu1 }
 0x44c   : > { %v4028_v41 = vadd.f32 %v3959_v44, %v3802_v62  ;;  %v3703_v12 = vpack.c.bf16 %v3684_v59, %v3683_v53  ;;  %v3577_v8 = vadd.f32 %v3576_v13, %v3488_v14  ;;  %v3079_v53 = vadd.f32 %v6659_v54, %v6641_v4 }
 0x44d   : > { %v3967_v59 = vadd.f32 %v6792_v10, %v6851_v63 }
 0x44e   : > { %v4060_v6 = vmax.f32 %v4028_v41, 0.0  ;;  %3843 = vmatmul.bf16.gmra.mxu2 %v3703_v12  ;;  %v3617_v35 = vadd.f32 %v3577_v8, %v6634_v58  ;;  %v3964_v58 = vadd.f32 %v6792_v10, %v3963_v61  ;;  %v3497_v18 = vpop.f32.mrf.mxu0 }
 0x44f   : > { %4015 = vmatmul.bf16.gmra.mxu3 %v5191_v33  ;;  %v3498_v14 = vadd.f32 %v3497_v18, %v6749_v32 }
 0x450   : > { %v4986_v5 = vpack.c.bf16 %v4060_v6, %v4059_v40  ;;  %v3653_v56 = vadd.f32 %v6675_v15, %v3617_v35 }
 0x451   : > { %v3804_v55 = vpop.f32.mrf.mxu2 }
 0x452   : > { %5050 = vst [vmem:[%s6815_s1 + $0x18] sm:$0xff] %v4986_v5   ;;  %v3805_v31 = vadd.f32 %v6798_v51, %v3804_v55  ;;  %v3685_v34 = vmax.f32 %v3653_v56, 0.0  ;;  %v3976_v44 = vpop.f32.mrf.mxu3 }
 0x453   : > { %v3578_v46 = vpop.f32.mrf.mxu1 }
 0x454   : > { %v3579_v2 = vadd.f32 %v3578_v46, %v3490_v19  ;;  %v4029_v57 = vadd.f32 %v3962_v48, %v3805_v31  ;;  %v3084_v48 = vadd.f32 %v6784_v7, %v6657_v50  ;;  %v3972_v31 = vadd.f32 %v6792_v10, %v6867_v25 }
 0x456   : > { %v3618_v3 = vadd.f32 %v3579_v2, %v3074_v1  ;;  %v4061_v9 = vmax.f32 %v4029_v57, 0.0  ;;  %v3499_v32 = vpop.f32.mrf.mxu0 }
 0x457   : > { %v3500_v49 = vadd.f32 %v3499_v32, %v6762_v17  ;;  %v3974_v17 = vadd.f32 %v6792_v10, %v3973_v11 }
 0x458   : > { %v3654_v37 = vadd.f32 %v6675_v15, %v3618_v3 }
 0x459   : > { %v3806_v22 = vpop.f32.mrf.mxu2 }
 0x45a   : > { %v3686_v45 = vmax.f32 %v3654_v37, 0.0  ;;  %v3807_v47 = vadd.f32 %v6798_v51, %v3806_v22  ;;  %v3978_v6 = vpop.f32.mrf.mxu3 }
 0x45b   : > { %v3581_v52 = vpop.f32.mrf.mxu1 }
 0x45c   : > { %v4030_v29 = vadd.f32 %v3964_v58, %v3807_v47  ;;  %v3704_v60 = vpack.c.bf16 %v3686_v45, %v3685_v34  ;;  %v3582_v21 = vadd.f32 %v3581_v52, %v3493_v43 }
 0x45e   : > { %v4062_v27 = vmax.f32 %v4030_v29, 0.0  ;;  %3848 = vmatmul.bf16.gmra.mxu2 %v3704_v60  ;;  %v3619_v23 = vadd.f32 %v3582_v21, %v6652_v28  ;;  %v3969_v28 = vadd.f32 %v6792_v10, %v3968_v38 }
 0x460   : > { %v4991_v61 = vpack.c.bf16 %v4062_v27, %v4061_v9  ;;  %v3655_v62 = vadd.f32 %v6675_v15, %v3619_v23  ;;  %v3979_v27 = vadd.f32 %v6792_v10, %v3978_v6 }
 0x461   : > { %v3809_v30 = vpop.f32.mrf.mxu2 }
 0x462   : > { %5051 = vst [vmem:[%s6815_s1 + $0x20] sm:$0xff] %v4991_v61   ;;  %v3810_v0 = vadd.f32 %v6798_v51, %v3809_v30  ;;  %v3687_v12 = vmax.f32 %v3655_v62, 0.0  ;;  %v3981_v1 = vpop.f32.mrf.mxu3 }
 0x463   : > { %v3583_v26 = vpop.f32.mrf.mxu1 }
 0x464   : > { %v3584_v20 = vadd.f32 %v3583_v26, %v3495_v16  ;;  %v4031_v40 = vadd.f32 %v3967_v59, %v3810_v0 }
 0x466   : > { %v3620_v13 = vadd.f32 %v3584_v20, %v3079_v53  ;;  %v4063_v19 = vmax.f32 %v4031_v40, 0.0  ;;  %v3982_v20 = vadd.f32 %v6792_v10, %v3981_v1 }
 0x468   : > { %v3656_v36 = vadd.f32 %v6675_v15, %v3620_v13 }
 0x469   : > { %v3811_v41 = vpop.f32.mrf.mxu2 }
 0x46a   : > { %v3688_v4 = vmax.f32 %v3656_v36, 0.0  ;;  %v3812_v54 = vadd.f32 %v6798_v51, %v3811_v41  ;;  %v3983_v7 = vpop.f32.mrf.mxu3 }
 0x46b   : > { %v3586_v63 = vpop.f32.mrf.mxu1  ;;  %v3984_v0 = vadd.f32 %v6792_v10, %v3983_v7 }
 0x46c   : > { %v4032_v8 = vadd.f32 %v3969_v28, %v3812_v54  ;;  %v3587_v5 = vadd.f32 %v3586_v63, %v3498_v14  ;;  %v3705_v55 = vpack.c.bf16 %v3688_v4, %v3687_v12 }
 0x46e   : > { %v4064_v35 = vmax.f32 %v4032_v8, 0.0  ;;  %v3621_v24 = vadd.f32 %v3587_v5, %v6668_v42  ;;  %3853 = vmatmul.bf16.gmra.mxu2 %v3705_v55 }
 0x470   : > { %v4996_v46 = vpack.c.bf16 %v4064_v35, %v4063_v19  ;;  %v3657_v3 = vadd.f32 %v6675_v15, %v3621_v24 }
 0x471   : > { %v3814_v38 = vpop.f32.mrf.mxu2 }
 0x472   : > { %5052 = vst [vmem:[%s6815_s1 + $0x28] sm:$0xff] %v4996_v46   ;;  %v3815_v42 = vadd.f32 %v6798_v51, %v3814_v38  ;;  %v3689_v34 = vmax.f32 %v3657_v3, 0.0  ;;  %v3986_v60 = vpop.f32.mrf.mxu3 }
 0x473   : > { %v3588_v2 = vpop.f32.mrf.mxu1  ;;  %v3987_v4 = vadd.f32 %v6792_v10, %v3986_v60 }
 0x474   : > { %v3589_v56 = vadd.f32 %v3588_v2, %v3500_v49  ;;  %v4033_v57 = vadd.f32 %v3972_v31, %v3815_v42 }
 0x476   : > { %v3622_v37 = vadd.f32 %v3589_v56, %v3084_v48  ;;  %v4065_v25 = vmax.f32 %v4033_v57, 0.0 }
 0x478   : > { %v3658_v58 = vadd.f32 %v6675_v15, %v3622_v37  ;;  %v3977_v15 = vadd.f32 %v6792_v10, %v3976_v44 }
 0x479   : > { %v3816_v22 = vpop.f32.mrf.mxu2 }
 0x47a   : > { %v3690_v45 = vmax.f32 %v3658_v58, 0.0  ;;  %v3817_v50 = vadd.f32 %v6798_v51, %v3816_v22  ;;  %v3988_v23 = vpop.f32.mrf.mxu3 }
 0x47b   : > { %v3989_v8 = vadd.f32 %v6792_v10, %v3988_v23 }
 0x47c   : > { %v4034_v47 = vadd.f32 %v3974_v17, %v3817_v50  ;;  %v3706_v33 = vpack.c.bf16 %v3690_v45, %v3689_v34 }
 0x47e   : > { %v4066_v52 = vmax.f32 %v4034_v47, 0.0  ;;  %3858 = vmatmul.bf16.gmra.mxu2 %v3706_v33 }
 0x480   : > { %v5001_v43 = vpack.c.bf16 %v4066_v52, %v4065_v25 }
 0x481   : > { %v3819_v29 = vpop.f32.mrf.mxu2 }
 0x482   : > { %5053 = vst [vmem:[%s6815_s1 + $0x30] sm:$0xff] %v5001_v43   ;;  %v3820_v11 = vadd.f32 %v6798_v51, %v3819_v29  ;;  %v3991_v59 = vpop.f32.mrf.mxu3 }
 0x483   : > { %v3992_v38 = vadd.f32 %v6792_v10, %v3991_v59 }
 0x484   : > { %v4035_v9 = vadd.f32 %v3977_v15, %v3820_v11 }
 0x486   : > { %v4067_v30 = vmax.f32 %v4035_v9, 0.0 }
 0x489   : > { %v3821_v39 = vpop.f32.mrf.mxu2 }
 0x48a   : > { %v3822_v21 = vadd.f32 %v6798_v51, %v3821_v39  ;;  %v3993_v40 = vpop.f32.mrf.mxu3 }
 0x48b   : > { %v3994_v56 = vadd.f32 %v6792_v10, %v3993_v40 }
 0x48c   : > { %v4036_v61 = vadd.f32 %v3979_v27, %v3822_v21 }
 0x48e   : > { %v4068_v16 = vmax.f32 %v4036_v61, 0.0 }
 0x490   : > { %v5006_v26 = vpack.c.bf16 %v4068_v16, %v4067_v30 }
 0x491   : > { %v3824_v53 = vpop.f32.mrf.mxu2 }
 0x492   : > { %5054 = vst [vmem:[%s6815_s1 + $0x38] sm:$0xff] %v5006_v26   ;;  %v3825_v44 = vadd.f32 %v6798_v51, %v3824_v53  ;;  %v3996_v19 = vpop.f32.mrf.mxu3 }
 0x493   : > { %v3997_v34 = vadd.f32 %v6792_v10, %v3996_v19 }
 0x494   : > { %v4037_v62 = vadd.f32 %v3982_v20, %v3825_v44 }
 0x496   : > { %v4069_v14 = vmax.f32 %v4037_v62, 0.0 }
 0x499   : > { %v3826_v18 = vpop.f32.mrf.mxu2 }
 0x49a   : > { %v3827_v13 = vadd.f32 %v6798_v51, %v3826_v18  ;;  %v3998_v1 = vpop.f32.mrf.mxu3 }
 0x49b   : > { %v3999_v7 = vadd.f32 %v6792_v10, %v3998_v1 }
 0x49c   : > { %v4038_v36 = vadd.f32 %v3984_v0, %v3827_v13 }
 0x49e   : > { %v4070_v28 = vmax.f32 %v4038_v36, 0.0 }
 0x4a0   : > { %v5011_v41 = vpack.c.bf16 %v4070_v28, %v4069_v14 }
 0x4a1   : > { %v3829_v12 = vpop.f32.mrf.mxu2 }
 0x4a2   : > { %5055 = vst [vmem:[%s6815_s1 + $0x40] sm:$0xff] %v5011_v41   ;;  %v3830_v54 = vadd.f32 %v6798_v51, %v3829_v12  ;;  %v4001_v22 = vpop.f32.mrf.mxu3 }
 0x4a3   : > { %v4002_v11 = vadd.f32 %v6792_v10, %v4001_v22 }
 0x4a4   : > { %v4039_v63 = vadd.f32 %v3987_v4, %v3830_v54 }
 0x4a6   : > { %v4071_v35 = vmax.f32 %v4039_v63, 0.0 }
 0x4a9   : > { %v3831_v6 = vpop.f32.mrf.mxu2 }
 0x4aa   : > { %v3832_v5 = vadd.f32 %v6798_v51, %v3831_v6  ;;  %v4003_v33 = vpop.f32.mrf.mxu3 }
 0x4ab   : > { %v4004_v21 = vadd.f32 %v6792_v10, %v4003_v33 }
 0x4ac   : > { %v4040_v55 = vadd.f32 %v3989_v8, %v3832_v5 }
 0x4ae   : > { %v4072_v24 = vmax.f32 %v4040_v55, 0.0 }
 0x4b0   : > { %v5016_v32 = vpack.c.bf16 %v4072_v24, %v4071_v35 }
 0x4b1   : > { %v3834_v46 = vpop.f32.mrf.mxu2 }
 0x4b2   : > { %5056 = vst [vmem:[%s6815_s1 + $0x48] sm:$0xff] %v5016_v32   ;;  %v3835_v49 = vadd.f32 %v6798_v51, %v3834_v46  ;;  %v4006_v15 = vpop.f32.mrf.mxu3 }
 0x4b3   : > { %v4007_v44 = vadd.f32 %v6792_v10, %v4006_v15 }
 0x4b4   : > { %v4041_v48 = vadd.f32 %v3992_v38, %v3835_v49 }
 0x4b6   : > { %v4073_v42 = vmax.f32 %v4041_v48, 0.0 }
 0x4b9   : > { %v3836_v2 = vpop.f32.mrf.mxu2 }
 0x4ba   : > { %v3837_v31 = vadd.f32 %v6798_v51, %v3836_v2  ;;  %v4008_v26 = vpop.f32.mrf.mxu3 }
 0x4bb   : > { %v4009_v13 = vadd.f32 %v6792_v10, %v4008_v26 }
 0x4bc   : > { %v4042_v3 = vadd.f32 %v3994_v56, %v3837_v31 }
 0x4be   : > { %v4074_v37 = vmax.f32 %v4042_v3, 0.0 }
 0x4c0   : > { %v5021_v58 = vpack.c.bf16 %v4074_v37, %v4073_v42 }
 0x4c1   : > { %v3839_v17 = vpop.f32.mrf.mxu2 }
 0x4c2   : > { %5057 = vst [vmem:[%s6815_s1 + $0x50] sm:$0xff] %v5021_v58   ;;  %v3840_v57 = vadd.f32 %v6798_v51, %v3839_v17  ;;  %v4011_v62 = vpop.f32.mrf.mxu3 }
 0x4c3   : > { %v4012_v54 = vadd.f32 %v6792_v10, %v4011_v62 }
 0x4c4   : > { %v4043_v50 = vadd.f32 %v3997_v34, %v3840_v57 }
 0x4c6   : > { %v4075_v52 = vmax.f32 %v4043_v50, 0.0 }
 0x4c9   : > { %v3841_v45 = vpop.f32.mrf.mxu2 }
 0x4ca   : > { %v3842_v47 = vadd.f32 %v6798_v51, %v3841_v45  ;;  %v4013_v4 = vpop.f32.mrf.mxu3 }
 0x4cb   : > { %v4014_v5 = vadd.f32 %v6792_v10, %v4013_v4 }
 0x4cc   : > { %v4044_v25 = vadd.f32 %v3999_v7, %v3842_v47 }
 0x4ce   : > { %v4076_v43 = vmax.f32 %v4044_v25, 0.0 }
 0x4d0   : > { %v5026_v29 = vpack.c.bf16 %v4076_v43, %v4075_v52 }
 0x4d1   : > { %v3844_v60 = vpop.f32.mrf.mxu2 }
 0x4d2   : > { %5058 = vst [vmem:[%s6815_s1 + $0x58] sm:$0xff] %v5026_v29   ;;  %v3845_v39 = vadd.f32 %v6798_v51, %v3844_v60  ;;  %v4016_v35 = vpop.f32.mrf.mxu3 }
 0x4d3   : > { %v4017_v49 = vadd.f32 %v6792_v10, %v4016_v35 }
 0x4d4   : > { %v4045_v27 = vadd.f32 %v4002_v11, %v3845_v39 }
 0x4d6   : > { %v4077_v16 = vmax.f32 %v4045_v27, 0.0 }
 0x4d9   : > { %v3846_v9 = vpop.f32.mrf.mxu2 }
 0x4da   : > { %v3847_v61 = vadd.f32 %v6798_v51, %v3846_v9  ;;  %v4018_v2 = vpop.f32.mrf.mxu3 }
 0x4db   : > { %v4019_v31 = vadd.f32 %v6792_v10, %v4018_v2 }
 0x4dc   : > { %v4046_v30 = vadd.f32 %v4004_v21, %v3847_v61 }
 0x4de   : > { %v4078_v23 = vmax.f32 %v4046_v30, 0.0 }
 0x4e0   : > { %v5031_v53 = vpack.c.bf16 %v4078_v23, %v4077_v16 }
 0x4e1   : > { %v3849_v20 = vpop.f32.mrf.mxu2 }
 0x4e2   : > { %5059 = vst [vmem:[%s6815_s1 + $0x60] sm:$0xff] %v5031_v53   ;;  %v3850_v18 = vadd.f32 %v6798_v51, %v3849_v20 }
 0x4e4   : > { %v4047_v0 = vadd.f32 %v4007_v44, %v3850_v18 }
 0x4e6   : > { %v4079_v28 = vmax.f32 %v4047_v0, 0.0 }
 0x4e9   : > { %v3851_v59 = vpop.f32.mrf.mxu2 }
 0x4ea   : > { %v3852_v36 = vadd.f32 %v6798_v51, %v3851_v59 }
 0x4ec   : > { %v4048_v14 = vadd.f32 %v4009_v13, %v3852_v36 }
 0x4ee   : > { %v4080_v41 = vmax.f32 %v4048_v14, 0.0 }
 0x4f0   : > { %v5036_v12 = vpack.c.bf16 %v4080_v41, %v4079_v28 }
 0x4f1   : > { %v3854_v40 = vpop.f32.mrf.mxu2 }
 0x4f2   : > { %5060 = vst [vmem:[%s6815_s1 + $0x68] sm:$0xff] %v5036_v12   ;;  %v3855_v6 = vadd.f32 %v6798_v51, %v3854_v40 }
 0x4f4   : > { %v4049_v8 = vadd.f32 %v4012_v54, %v3855_v6 }
 0x4f6   : > { %v4081_v24 = vmax.f32 %v4049_v8, 0.0 }
 0x4f9   : > { %v3856_v63 = vpop.f32.mrf.mxu2 }
 0x4fa   : > { %v3857_v55 = vadd.f32 %v6798_v51, %v3856_v63 }
 0x4fc   : > { %v4050_v19 = vadd.f32 %v4014_v5, %v3857_v55 }
 0x4fe   : > { %v4082_v32 = vmax.f32 %v4050_v19, 0.0 }
 0x500   : > { %v5041_v46 = vpack.c.bf16 %v4082_v32, %v4081_v24 }
 0x501   : > { %v3859_v38 = vpop.f32.mrf.mxu2 }
 0x502   : > { %5061 = vst [vmem:[%s6815_s1 + $0x70] sm:$0xff] %v5041_v46   ;;  %v3860_v1 = vadd.f32 %v6798_v51, %v3859_v38 }
 0x504   : > { %v4051_v56 = vadd.f32 %v4017_v49, %v3860_v1 }
 0x506   : > { %v4083_v37 = vmax.f32 %v4051_v56, 0.0 }
 0x509   : > { %v3861_v48 = vpop.f32.mrf.mxu2 }
 0x50a   : > { %v3862_v3 = vadd.f32 %v6798_v51, %v3861_v48 }
 0x50c   : > { %v4052_v42 = vadd.f32 %v4019_v31, %v3862_v3 }
 0x50e   : > { %v4084_v58 = vmax.f32 %v4052_v42, 0.0 }
 0x510   : > { %v5046_v17 = vpack.c.bf16 %v4084_v58, %v4083_v37 }
 0x512   : > { %5062 = vst [vmem:[%s6815_s1 + $0x78] sm:$0xff] %v5046_v17  }
 0x513   : > { %5369 = shalt.err (!%p5366_p10)
}
 0x514   : > { %s5425_s24 = smov 64   ;;  %s5426_s1 = smov 4  }
 0x515   : > { %5081 = dma.vmem_to_hbm [thread:$0]  (%p5573_p3), %s4163_s28, 2048, %s4165_s19, %s4150_s13, %s5425_s24, %s5425_s24, %s5426_s1  }
 0x516 PF: > { %s4179_s2 = sand.u32 1, %s5404_s30   ;;  %p7188_p12 = scmp.ge.s32.totalorder %s5416_s12, 2 }
 0x517   : > { %s4180_s25 = scalar_lea.sflag [#allocation5], %s4179_s2 }
 0x518   : > { %p5101_p13 = pnand %p7188_p12, %p5512_p6 }
 0x51a   : > { %p5102_p0 = pneg %p5101_p13 }
 0x51c   : > { %5399 = dma.done.wait (%p5102_p0), %s4180_s25, 2048  }
 0x51d   : > { %5401 = vsyncadd (%p5102_p0), %s4180_s25, 4294965248  ;;  %p24_p5 = scmp.ge.s32.totalorder %s5563_s14, 4   ;;  %s7189_s30 = smov %s5408_s10 }
 0x51e   : > { %s7190_s10 = smov %s5412_s11  ;;  %s7191_s11 = smov %s5579_s22 }
 0x51f   : > { %s7192_s12 = smov %s5563_s14  ;;  %26 = sbr.rel (!%p24_p5) target bundleno = 11 (0xb), region = 119 }
 0x524   :  { %4186 = vsyncpa [#allocation4], 1 }
 0x525   :  { %4188 = vsyncpa [#allocation4 + $0x1], 1 }
 0x526   :  { %4189 = vsyncpa [#allocation7], 1 }
 0x527   :  { %4190 = vsyncpa [#allocation10], 1 }
 0x528   :  { %4191 = vsyncpa [#allocation5], 1 }
 0x529   :  { %4193 = vsyncpa [#allocation5 + $0x1], 1 }

</bundles_post_ra>
